<compile_context>
chip_gen: v6e
topology: v6e:2x2x1
jax: 0.10.0
libtpu: 0.0.40
codegen_flags: <defaults>
</compile_context>

<pallas_src>
import functools

import jax
import jax.numpy as jnp
from jax.experimental import pallas as pl
from jax.experimental.pallas import tpu as pltpu


def _attention_kernel(x_ref, wqkv_ref, wproj_ref, bproj_ref, o_ref,
                      *, num_heads, out_dim, use_skip, compute_dtype):
    Bb, N, C = x_ref.shape
    hd = out_dim // num_heads

    # --- qkv projection: one (Bb*N, C) x (C, 3*out_dim) MXU matmul ---------------------
    # (the softmax scale is pre-folded into the Q columns of W_qkv by the wrapper)
    x2 = x_ref[...].reshape(Bb * N, C)
    qkv2 = jnp.dot(x2, wqkv_ref[...], preferred_element_type=jnp.float32)
    qkv_c = qkv2.astype(compute_dtype).reshape(Bb, N, 3 * out_dim)   # bf16 once, then slice

    q = qkv_c[:, :, 0 * out_dim:1 * out_dim]
    k = qkv_c[:, :, 1 * out_dim:2 * out_dim]
    v = qkv_c[:, :, 2 * out_dim:3 * out_dim]

    # --- attention + projection, head concat folded into the proj matmul ---------------
    # out = concat_h(ctx_h) @ W_proj + b == sum_h ctx_h @ W_proj[h*hd:(h+1)*hd, :] + b,
    # so no lane-masked per-head stores into a ctx slab are needed.
    out2 = None
    for h in range(num_heads):     # typical ViT head counts (<=16): full unroll is fine
        sl = slice(h * hd, (h + 1) * hd)
        # scores: contraction over head_dim, k-transpose folded into the einsum (no XLU .T)
        s = jnp.einsum('bqd,bkd->bqk', q[:, :, sl], k[:, :, sl],
                       preferred_element_type=jnp.float32)           # (Bb, N, N) f32
        # numerically-stable softmax; stats/exp in f32, reciprocal on the EUP slot
        s = s - jnp.max(s, axis=-1, keepdims=True)
        p = jnp.exp(s)
        p = p * pl.reciprocal(jnp.sum(p, axis=-1, keepdims=True), approx=True)
        ctx_h = jnp.einsum('bqk,bkd->bqd', p.astype(compute_dtype), v[:, :, sl],
                           preferred_element_type=jnp.float32)       # (Bb, N, hd) f32
        # per-head W_proj block is a free leading-axis index (weights are head-major)
        contrib = jnp.dot(ctx_h.astype(compute_dtype).reshape(Bb * N, hd), wproj_ref[h],
                          preferred_element_type=jnp.float32)        # (Bb*N, out_dim) f32
        out2 = contrib if out2 is None else out2 + contrib

    out = (out2 + bproj_ref[...]).reshape(Bb, N, out_dim)
    if use_skip:
        # v in head-grouped column order, f32 (same ordering as the PyTorch module)
        out = out + qkv2.reshape(Bb, N, 3 * out_dim)[:, :, 2 * out_dim:3 * out_dim]
    o_ref[...] = out.astype(o_ref.dtype)


def _pick_batch_block(B, N, C, out_dim, vmem_limit_bytes):
    # Only pack multiple batch elements when N is sublane-aligned, so the
    # (Bb, N, C) -> (Bb*N, C) row merges inside the kernel are free, tile-aligned
    # reshapes (no per-step VMEM repack copies).
    if N % 8 != 0 or B <= 1:
        return 1
    # ~256 rows per step fills a v6e/v7x MXU pass (and >=128 fills v5e's); keep the
    # grid at >= 2 steps so the "parallel" axis can shard over v7x's two TensorCores.
    bb = min(B, pl.cdiv(256, N), max(1, B // 2))

    def vmem_est(b):
        rows = b * N
        return (2 * rows * C * 2                 # x block, double buffered, bf16
                + rows * 3 * out_dim * (4 + 2)   # f32 qkv intermediate + bf16 copy
                + 2 * b * N * N * 4              # one head's f32 score tile (+exp temp)
                + rows * out_dim * 4             # f32 output accumulator
                + 2 * rows * out_dim * 4)        # output block, double buffered

    budget = int(0.6 * vmem_limit_bytes)
    while bb > 1 and vmem_est(bb) > budget:
        bb -= 1
    while B % bb:
        bb -= 1
    return bb


def attention_pallas(x, w_qkv, w_proj, b_proj, *, num_heads, in_dim, out_dim,
                     qk_scale=None, use_skip=False, compute_dtype=jnp.bfloat16,
                     out_dtype=None, batch_block=None,
                     vmem_limit_bytes=48 * 1024 * 1024):
    B, N, C = x.shape
    assert C == in_dim, f"Input dim {C} should equal layer in_dim {in_dim}"
    assert out_dim % num_heads == 0
    hd = out_dim // num_heads
    head_dim_in = in_dim // num_heads
    scale = qk_scale if qk_scale is not None else head_dim_in ** (-0.5)
    out_dtype = x.dtype if out_dtype is None else out_dtype

    # Fold the softmax scale into the Q columns of W_qkv (free when the caller jits).
    w_qkv_eff = jnp.concatenate([w_qkv[:, :out_dim] * scale, w_qkv[:, out_dim:]], axis=1)

    # bf16 matmul operands everywhere; accumulation / softmax stats stay f32 in-kernel.
    x_c = x.astype(compute_dtype)
    w_qkv_c = w_qkv_eff.astype(compute_dtype)
    # Head-major proj weight: per-head block is a free leading-axis index in-kernel.
    w_proj_c = w_proj.reshape(num_heads, hd, out_dim).astype(compute_dtype)
    b_proj_2d = b_proj.reshape(1, out_dim).astype(jnp.float32)

    if batch_block is None:
        batch_block = _pick_batch_block(B, N, C, out_dim, vmem_limit_bytes)
    assert B % batch_block == 0
    grid_b = B // batch_block

    kernel = functools.partial(
        _attention_kernel,
        num_heads=num_heads, out_dim=out_dim, use_skip=use_skip,
        compute_dtype=compute_dtype)

    def build(weight_buffer_count):
        wkw = ({} if weight_buffer_count is None
               else dict(pipeline_mode=pl.Buffered(weight_buffer_count)))
        return pl.pallas_call(
            kernel,
            out_shape=jax.ShapeDtypeStruct((B, N, out_dim), out_dtype),
            grid_spec=pltpu.PrefetchScalarGridSpec(
                num_scalar_prefetch=0,
                grid=(grid_b,),
                in_specs=[
                    pl.BlockSpec((batch_block, N, C), lambda b: (b, 0, 0)),
                    pl.BlockSpec((C, 3 * out_dim), lambda b: (0, 0), **wkw),
                    pl.BlockSpec((num_heads, hd, out_dim), lambda b: (0, 0, 0), **wkw),
                    pl.BlockSpec((1, out_dim), lambda b: (0, 0), **wkw),
                ],
                out_specs=pl.BlockSpec((batch_block, N, out_dim), lambda b: (b, 0, 0)),
            ),
            compiler_params=pltpu.CompilerParams(
                dimension_semantics=("parallel",),
                vmem_limit_bytes=vmem_limit_bytes),
        )

    try:
        # Grid-invariant weights: single-buffer them (fetched once, index never changes
        # across grid steps) -- halves their VMEM footprint vs default double buffering.
        return build(1)(x_c, w_qkv_c, w_proj_c, b_proj_2d)
    except Exception:
        # TODO(synk): this jax version rejects pl.Buffered(1) on weight specs; fall back
        # to default double buffering (correctness unchanged, only VMEM footprint).
        return build(None)(x_c, w_qkv_c, w_proj_c, b_proj_2d)


def attention_reference(x, w_qkv, w_proj, b_proj, *, num_heads, in_dim, out_dim,
                        qk_scale=None, use_skip=False):
    """Plain-JAX f32 mirror of the PyTorch forward for verification."""
    B, N, C = x.shape
    head_dim_in = in_dim // num_heads
    scale = qk_scale if qk_scale is not None else head_dim_in ** (-0.5)
    hd = out_dim // num_heads

    qkv = x @ w_qkv                                             # (B, N, 3*out_dim)
    qkv = qkv.reshape(B, N, 3, num_heads, hd).transpose(2, 0, 3, 1, 4)
    q, k, v = qkv[0], qkv[1], qkv[2]                            # (B, H, N, hd)
    attn = (q * scale) @ jnp.swapaxes(k, -2, -1)                # (B, H, N, N)
    attn = jax.nn.softmax(attn, axis=-1)
    out = (attn @ v).transpose(0, 2, 1, 3).reshape(B, N, out_dim)
    out = out @ w_proj + b_proj
    if use_skip:
        out = out + v.transpose(0, 2, 1, 3).reshape(B, N, out_dim)
    return out


if __name__ == "__main__":
    # Small shapes consistent with the module: B=2, N=8 tokens, in_dim=32, 8 heads.
    B, N, in_dim = 2, 8, 32
    num_heads = 8
    out_dim = in_dim  # default: out_dim = in_dim

    key = jax.random.PRNGKey(0)
    kx, kw1, kw2, kb = jax.random.split(key, 4)

    x = jax.random.normal(kx, (B, N, in_dim), dtype=jnp.float32)
    # qkv: Linear(in_dim, out_dim*3, bias=False)
    w_qkv = 0.02 * jax.random.normal(kw1, (in_dim, 3 * out_dim), dtype=jnp.float32)
    # proj: Linear(out_dim, out_dim) with bias
    w_proj = 0.02 * jax.random.normal(kw2, (out_dim, out_dim), dtype=jnp.float32)
    b_proj = 0.02 * jax.random.normal(kb, (out_dim,), dtype=jnp.float32)

    for use_skip in (False, True):
        out = attention_pallas(x, w_qkv, w_proj, b_proj,
                               num_heads=num_heads, in_dim=in_dim, out_dim=out_dim,
                               use_skip=use_skip)
        out = jax.block_until_ready(out)
        ref = attention_reference(x, w_qkv, w_proj, b_proj,
                                  num_heads=num_heads, in_dim=in_dim, out_dim=out_dim,
                                  use_skip=use_skip)
        assert out.shape == (B, N, out_dim)
        # bf16 matmul operands + approx reciprocal => relaxed-but-tight tolerance
        assert jnp.allclose(out, ref, atol=5e-3, rtol=5e-3), \
            f"mismatch vs reference (use_skip={use_skip})"

    print("KERNEL_OK")
</pallas_src>

<mosaic_0001>
module attributes {stable_mosaic.version = 11 : i64} {
  func.func @_attention_kernel(%arg0: i32, %arg1: memref<1x8x32xbf16, #tpu.memory_space<vmem>>, %arg2: memref<32x96xbf16, #tpu.memory_space<vmem>>, %arg3: memref<8x4x32xbf16, #tpu.memory_space<vmem>>, %arg4: memref<1x32xf32, #tpu.memory_space<vmem>>, %arg5: memref<1x8x32xf32, #tpu.memory_space<vmem>>) attributes {dimension_semantics = [#tpu.dimension_semantics<parallel>], iteration_bounds = array<i64: 2>, scalar_prefetch = 0 : i64, scratch_operands = 0 : i64, tpu.core_type = #tpu.core_type<tc>, window_params = [{transform_indices = @transform_0, window_bounds = array<i64: 1, 8, 32>}, {pipeline_mode = #tpu.pipeline_mode<synchronous>, transform_indices = @transform_1, window_bounds = array<i64: 32, 96>}, {pipeline_mode = #tpu.pipeline_mode<synchronous>, transform_indices = @transform_2, window_bounds = array<i64: 8, 4, 32>}, {pipeline_mode = #tpu.pipeline_mode<synchronous>, transform_indices = @transform_3, window_bounds = array<i64: 1, 32>}, {transform_indices = @transform_4, window_bounds = array<i64: 1, 8, 32>}]} {
    %c0 = arith.constant 0 : index
    %c0_0 = arith.constant 0 : index
    %c0_1 = arith.constant 0 : index
    %0 = vector.load %arg1[%c0, %c0_0, %c0_1] : memref<1x8x32xbf16, #tpu.memory_space<vmem>>, vector<1x8x32xbf16>
    %1 = vector.shape_cast %0 : vector<1x8x32xbf16> to vector<8x32xbf16>
    %c0_2 = arith.constant 0 : index
    %c0_3 = arith.constant 0 : index
    %2 = vector.load %arg2[%c0_2, %c0_3] : memref<32x96xbf16, #tpu.memory_space<vmem>>, vector<32x96xbf16>
    %cst = arith.constant dense<0.000000e+00> : vector<8x96xf32>
    %3 = tpu.matmul %1, %2, %cst {dimension_numbers = #tpu.dot_dimension_numbers<[1], [0], [0], [1], [0, 0, 1, 1], [], []>} : vector<8x32xbf16>, vector<32x96xbf16>, vector<8x96xf32> -> vector<8x96xf32>
    %4 = arith.truncf %3 : vector<8x96xf32> to vector<8x96xbf16>
    %5 = vector.shape_cast %4 : vector<8x96xbf16> to vector<1x8x96xbf16>
    %6 = vector.extract_strided_slice %5 {offsets = [0, 0, 0], sizes = [1, 8, 32], strides = [1, 1, 1]} : vector<1x8x96xbf16> to vector<1x8x32xbf16>
    %7 = vector.extract_strided_slice %5 {offsets = [0, 0, 32], sizes = [1, 8, 32], strides = [1, 1, 1]} : vector<1x8x96xbf16> to vector<1x8x32xbf16>
    %8 = vector.extract_strided_slice %5 {offsets = [0, 0, 64], sizes = [1, 8, 32], strides = [1, 1, 1]} : vector<1x8x96xbf16> to vector<1x8x32xbf16>
    %9 = vector.extract_strided_slice %6 {offsets = [0, 0, 0], sizes = [1, 8, 4], strides = [1, 1, 1]} : vector<1x8x32xbf16> to vector<1x8x4xbf16>
    %10 = vector.extract_strided_slice %7 {offsets = [0, 0, 0], sizes = [1, 8, 4], strides = [1, 1, 1]} : vector<1x8x32xbf16> to vector<1x8x4xbf16>
    "tpu.trace_start"() <{level = 10 : i32, message = "bqd,bkd->bqk"}> : () -> ()
    %cst_4 = arith.constant dense<0.000000e+00> : vector<1x8x8xf32>
    %11 = tpu.matmul %9, %10, %cst_4 {dimension_numbers = #tpu.dot_dimension_numbers<[2], [2], [1], [1], [0, 0, 0, 1, 1, 1], [0], [0]>} : vector<1x8x4xbf16>, vector<1x8x4xbf16>, vector<1x8x8xf32> -> vector<1x8x8xf32>
    "tpu.trace_stop"() : () -> ()
    %cst_5 = arith.constant dense<0xFF800000> : vector<1x8xf32>
    %12 = vector.multi_reduction <maximumf>, %11, %cst_5 [2] : vector<1x8x8xf32> to vector<1x8xf32>
    %13 = vector.shape_cast %12 : vector<1x8xf32> to vector<1x8x1xf32>
    %14 = vector.broadcast %13 : vector<1x8x1xf32> to vector<1x8x8xf32>
    %15 = arith.subf %11, %14 : vector<1x8x8xf32>
    %16 = math.exp %15 : vector<1x8x8xf32>
    %cst_6 = arith.constant dense<0.000000e+00> : vector<1x8xf32>
    %17 = vector.multi_reduction <add>, %16, %cst_6 [2] : vector<1x8x8xf32> to vector<1x8xf32>
    %18 = vector.shape_cast %17 : vector<1x8xf32> to vector<1x8x1xf32>
    %19 = tpu.reciprocal %18 {approx = true} : vector<1x8x1xf32> -> vector<1x8x1xf32>
    %20 = vector.broadcast %19 : vector<1x8x1xf32> to vector<1x8x8xf32>
    %21 = arith.mulf %16, %20 : vector<1x8x8xf32>
    %22 = arith.truncf %21 : vector<1x8x8xf32> to vector<1x8x8xbf16>
    %23 = vector.extract_strided_slice %8 {offsets = [0, 0, 0], sizes = [1, 8, 4], strides = [1, 1, 1]} : vector<1x8x32xbf16> to vector<1x8x4xbf16>
    "tpu.trace_start"() <{level = 10 : i32, message = "bqk,bkd->bqd"}> : () -> ()
    %cst_7 = arith.constant dense<0.000000e+00> : vector<1x8x4xf32>
    %24 = tpu.matmul %22, %23, %cst_7 {dimension_numbers = #tpu.dot_dimension_numbers<[2], [1], [1], [2], [0, 0, 0, 1, 1, 2], [0], [0]>} : vector<1x8x8xbf16>, vector<1x8x4xbf16>, vector<1x8x4xf32> -> vector<1x8x4xf32>
    "tpu.trace_stop"() : () -> ()
    %25 = arith.truncf %24 : vector<1x8x4xf32> to vector<1x8x4xbf16>
    %26 = vector.shape_cast %25 : vector<1x8x4xbf16> to vector<8x4xbf16>
    %c0_8 = arith.constant 0 : index
    %c0_9 = arith.constant 0 : index
    %c0_10 = arith.constant 0 : index
    %27 = vector.load %arg3[%c0_8, %c0_9, %c0_10] : memref<8x4x32xbf16, #tpu.memory_space<vmem>>, vector<1x4x32xbf16>
    %28 = vector.shape_cast %27 : vector<1x4x32xbf16> to vector<4x32xbf16>
    %cst_11 = arith.constant dense<0.000000e+00> : vector<8x32xf32>
    %29 = tpu.matmul %26, %28, %cst_11 {dimension_numbers = #tpu.dot_dimension_numbers<[1], [0], [0], [1], [0, 0, 1, 1], [], []>} : vector<8x4xbf16>, vector<4x32xbf16>, vector<8x32xf32> -> vector<8x32xf32>
    %30 = vector.extract_strided_slice %6 {offsets = [0, 0, 4], sizes = [1, 8, 4], strides = [1, 1, 1]} : vector<1x8x32xbf16> to vector<1x8x4xbf16>
    %31 = vector.extract_strided_slice %7 {offsets = [0, 0, 4], sizes = [1, 8, 4], strides = [1, 1, 1]} : vector<1x8x32xbf16> to vector<1x8x4xbf16>
    "tpu.trace_start"() <{level = 10 : i32, message = "bqd,bkd->bqk"}> : () -> ()
    %cst_12 = arith.constant dense<0.000000e+00> : vector<1x8x8xf32>
    %32 = tpu.matmul %30, %31, %cst_12 {dimension_numbers = #tpu.dot_dimension_numbers<[2], [2], [1], [1], [0, 0, 0, 1, 1, 1], [0], [0]>} : vector<1x8x4xbf16>, vector<1x8x4xbf16>, vector<1x8x8xf32> -> vector<1x8x8xf32>
    "tpu.trace_stop"() : () -> ()
    %cst_13 = arith.constant dense<0xFF800000> : vector<1x8xf32>
    %33 = vector.multi_reduction <maximumf>, %32, %cst_13 [2] : vector<1x8x8xf32> to vector<1x8xf32>
    %34 = vector.shape_cast %33 : vector<1x8xf32> to vector<1x8x1xf32>
    %35 = vector.broadcast %34 : vector<1x8x1xf32> to vector<1x8x8xf32>
    %36 = arith.subf %32, %35 : vector<1x8x8xf32>
    %37 = math.exp %36 : vector<1x8x8xf32>
    %cst_14 = arith.constant dense<0.000000e+00> : vector<1x8xf32>
    %38 = vector.multi_reduction <add>, %37, %cst_14 [2] : vector<1x8x8xf32> to vector<1x8xf32>
    %39 = vector.shape_cast %38 : vector<1x8xf32> to vector<1x8x1xf32>
    %40 = tpu.reciprocal %39 {approx = true} : vector<1x8x1xf32> -> vector<1x8x1xf32>
    %41 = vector.broadcast %40 : vector<1x8x1xf32> to vector<1x8x8xf32>
    %42 = arith.mulf %37, %41 : vector<1x8x8xf32>
    %43 = arith.truncf %42 : vector<1x8x8xf32> to vector<1x8x8xbf16>
    %44 = vector.extract_strided_slice %8 {offsets = [0, 0, 4], sizes = [1, 8, 4], strides = [1, 1, 1]} : vector<1x8x32xbf16> to vector<1x8x4xbf16>
    "tpu.trace_start"() <{level = 10 : i32, message = "bqk,bkd->bqd"}> : () -> ()
    %cst_15 = arith.constant dense<0.000000e+00> : vector<1x8x4xf32>
    %45 = tpu.matmul %43, %44, %cst_15 {dimension_numbers = #tpu.dot_dimension_numbers<[2], [1], [1], [2], [0, 0, 0, 1, 1, 2], [0], [0]>} : vector<1x8x8xbf16>, vector<1x8x4xbf16>, vector<1x8x4xf32> -> vector<1x8x4xf32>
    "tpu.trace_stop"() : () -> ()
    %46 = arith.truncf %45 : vector<1x8x4xf32> to vector<1x8x4xbf16>
    %47 = vector.shape_cast %46 : vector<1x8x4xbf16> to vector<8x4xbf16>
    %c1 = arith.constant 1 : index
    %c0_16 = arith.constant 0 : index
    %c0_17 = arith.constant 0 : index
    %48 = vector.load %arg3[%c1, %c0_16, %c0_17] : memref<8x4x32xbf16, #tpu.memory_space<vmem>>, vector<1x4x32xbf16>
    %49 = vector.shape_cast %48 : vector<1x4x32xbf16> to vector<4x32xbf16>
    %cst_18 = arith.constant dense<0.000000e+00> : vector<8x32xf32>
    %50 = tpu.matmul %47, %49, %cst_18 {dimension_numbers = #tpu.dot_dimension_numbers<[1], [0], [0], [1], [0, 0, 1, 1], [], []>} : vector<8x4xbf16>, vector<4x32xbf16>, vector<8x32xf32> -> vector<8x32xf32>
    %51 = arith.addf %29, %50 : vector<8x32xf32>
    %52 = vector.extract_strided_slice %6 {offsets = [0, 0, 8], sizes = [1, 8, 4], strides = [1, 1, 1]} : vector<1x8x32xbf16> to vector<1x8x4xbf16>
    %53 = vector.extract_strided_slice %7 {offsets = [0, 0, 8], sizes = [1, 8, 4], strides = [1, 1, 1]} : vector<1x8x32xbf16> to vector<1x8x4xbf16>
    "tpu.trace_start"() <{level = 10 : i32, message = "bqd,bkd->bqk"}> : () -> ()
    %cst_19 = arith.constant dense<0.000000e+00> : vector<1x8x8xf32>
    %54 = tpu.matmul %52, %53, %cst_19 {dimension_numbers = #tpu.dot_dimension_numbers<[2], [2], [1], [1], [0, 0, 0, 1, 1, 1], [0], [0]>} : vector<1x8x4xbf16>, vector<1x8x4xbf16>, vector<1x8x8xf32> -> vector<1x8x8xf32>
    "tpu.trace_stop"() : () -> ()
    %cst_20 = arith.constant dense<0xFF800000> : vector<1x8xf32>
    %55 = vector.multi_reduction <maximumf>, %54, %cst_20 [2] : vector<1x8x8xf32> to vector<1x8xf32>
    %56 = vector.shape_cast %55 : vector<1x8xf32> to vector<1x8x1xf32>
    %57 = vector.broadcast %56 : vector<1x8x1xf32> to vector<1x8x8xf32>
    %58 = arith.subf %54, %57 : vector<1x8x8xf32>
    %59 = math.exp %58 : vector<1x8x8xf32>
    %cst_21 = arith.constant dense<0.000000e+00> : vector<1x8xf32>
    %60 = vector.multi_reduction <add>, %59, %cst_21 [2] : vector<1x8x8xf32> to vector<1x8xf32>
    %61 = vector.shape_cast %60 : vector<1x8xf32> to vector<1x8x1xf32>
    %62 = tpu.reciprocal %61 {approx = true} : vector<1x8x1xf32> -> vector<1x8x1xf32>
    %63 = vector.broadcast %62 : vector<1x8x1xf32> to vector<1x8x8xf32>
    %64 = arith.mulf %59, %63 : vector<1x8x8xf32>
    %65 = arith.truncf %64 : vector<1x8x8xf32> to vector<1x8x8xbf16>
    %66 = vector.extract_strided_slice %8 {offsets = [0, 0, 8], sizes = [1, 8, 4], strides = [1, 1, 1]} : vector<1x8x32xbf16> to vector<1x8x4xbf16>
    "tpu.trace_start"() <{level = 10 : i32, message = "bqk,bkd->bqd"}> : () -> ()
    %cst_22 = arith.constant dense<0.000000e+00> : vector<1x8x4xf32>
    %67 = tpu.matmul %65, %66, %cst_22 {dimension_numbers = #tpu.dot_dimension_numbers<[2], [1], [1], [2], [0, 0, 0, 1, 1, 2], [0], [0]>} : vector<1x8x8xbf16>, vector<1x8x4xbf16>, vector<1x8x4xf32> -> vector<1x8x4xf32>
    "tpu.trace_stop"() : () -> ()
    %68 = arith.truncf %67 : vector<1x8x4xf32> to vector<1x8x4xbf16>
    %69 = vector.shape_cast %68 : vector<1x8x4xbf16> to vector<8x4xbf16>
    %c2 = arith.constant 2 : index
    %c0_23 = arith.constant 0 : index
    %c0_24 = arith.constant 0 : index
    %70 = vector.load %arg3[%c2, %c0_23, %c0_24] : memref<8x4x32xbf16, #tpu.memory_space<vmem>>, vector<1x4x32xbf16>
    %71 = vector.shape_cast %70 : vector<1x4x32xbf16> to vector<4x32xbf16>
    %cst_25 = arith.constant dense<0.000000e+00> : vector<8x32xf32>
    %72 = tpu.matmul %69, %71, %cst_25 {dimension_numbers = #tpu.dot_dimension_numbers<[1], [0], [0], [1], [0, 0, 1, 1], [], []>} : vector<8x4xbf16>, vector<4x32xbf16>, vector<8x32xf32> -> vector<8x32xf32>
    %73 = arith.addf %51, %72 : vector<8x32xf32>
    %74 = vector.extract_strided_slice %6 {offsets = [0, 0, 12], sizes = [1, 8, 4], strides = [1, 1, 1]} : vector<1x8x32xbf16> to vector<1x8x4xbf16>
    %75 = vector.extract_strided_slice %7 {offsets = [0, 0, 12], sizes = [1, 8, 4], strides = [1, 1, 1]} : vector<1x8x32xbf16> to vector<1x8x4xbf16>
    "tpu.trace_start"() <{level = 10 : i32, message = "bqd,bkd->bqk"}> : () -> ()
    %cst_26 = arith.constant dense<0.000000e+00> : vector<1x8x8xf32>
    %76 = tpu.matmul %74, %75, %cst_26 {dimension_numbers = #tpu.dot_dimension_numbers<[2], [2], [1], [1], [0, 0, 0, 1, 1, 1], [0], [0]>} : vector<1x8x4xbf16>, vector<1x8x4xbf16>, vector<1x8x8xf32> -> vector<1x8x8xf32>
    "tpu.trace_stop"() : () -> ()
    %cst_27 = arith.constant dense<0xFF800000> : vector<1x8xf32>
    %77 = vector.multi_reduction <maximumf>, %76, %cst_27 [2] : vector<1x8x8xf32> to vector<1x8xf32>
    %78 = vector.shape_cast %77 : vector<1x8xf32> to vector<1x8x1xf32>
    %79 = vector.broadcast %78 : vector<1x8x1xf32> to vector<1x8x8xf32>
    %80 = arith.subf %76, %79 : vector<1x8x8xf32>
    %81 = math.exp %80 : vector<1x8x8xf32>
    %cst_28 = arith.constant dense<0.000000e+00> : vector<1x8xf32>
    %82 = vector.multi_reduction <add>, %81, %cst_28 [2] : vector<1x8x8xf32> to vector<1x8xf32>
    %83 = vector.shape_cast %82 : vector<1x8xf32> to vector<1x8x1xf32>
    %84 = tpu.reciprocal %83 {approx = true} : vector<1x8x1xf32> -> vector<1x8x1xf32>
    %85 = vector.broadcast %84 : vector<1x8x1xf32> to vector<1x8x8xf32>
    %86 = arith.mulf %81, %85 : vector<1x8x8xf32>
    %87 = arith.truncf %86 : vector<1x8x8xf32> to vector<1x8x8xbf16>
    %88 = vector.extract_strided_slice %8 {offsets = [0, 0, 12], sizes = [1, 8, 4], strides = [1, 1, 1]} : vector<1x8x32xbf16> to vector<1x8x4xbf16>
    "tpu.trace_start"() <{level = 10 : i32, message = "bqk,bkd->bqd"}> : () -> ()
    %cst_29 = arith.constant dense<0.000000e+00> : vector<1x8x4xf32>
    %89 = tpu.matmul %87, %88, %cst_29 {dimension_numbers = #tpu.dot_dimension_numbers<[2], [1], [1], [2], [0, 0, 0, 1, 1, 2], [0], [0]>} : vector<1x8x8xbf16>, vector<1x8x4xbf16>, vector<1x8x4xf32> -> vector<1x8x4xf32>
    "tpu.trace_stop"() : () -> ()
    %90 = arith.truncf %89 : vector<1x8x4xf32> to vector<1x8x4xbf16>
    %91 = vector.shape_cast %90 : vector<1x8x4xbf16> to vector<8x4xbf16>
    %c3 = arith.constant 3 : index
    %c0_30 = arith.constant 0 : index
    %c0_31 = arith.constant 0 : index
    %92 = vector.load %arg3[%c3, %c0_30, %c0_31] : memref<8x4x32xbf16, #tpu.memory_space<vmem>>, vector<1x4x32xbf16>
    %93 = vector.shape_cast %92 : vector<1x4x32xbf16> to vector<4x32xbf16>
    %cst_32 = arith.constant dense<0.000000e+00> : vector<8x32xf32>
    %94 = tpu.matmul %91, %93, %cst_32 {dimension_numbers = #tpu.dot_dimension_numbers<[1], [0], [0], [1], [0, 0, 1, 1], [], []>} : vector<8x4xbf16>, vector<4x32xbf16>, vector<8x32xf32> -> vector<8x32xf32>
    %95 = arith.addf %73, %94 : vector<8x32xf32>
    %96 = vector.extract_strided_slice %6 {offsets = [0, 0, 16], sizes = [1, 8, 4], strides = [1, 1, 1]} : vector<1x8x32xbf16> to vector<1x8x4xbf16>
    %97 = vector.extract_strided_slice %7 {offsets = [0, 0, 16], sizes = [1, 8, 4], strides = [1, 1, 1]} : vector<1x8x32xbf16> to vector<1x8x4xbf16>
    "tpu.trace_start"() <{level = 10 : i32, message = "bqd,bkd->bqk"}> : () -> ()
    %cst_33 = arith.constant dense<0.000000e+00> : vector<1x8x8xf32>
    %98 = tpu.matmul %96, %97, %cst_33 {dimension_numbers = #tpu.dot_dimension_numbers<[2], [2], [1], [1], [0, 0, 0, 1, 1, 1], [0], [0]>} : vector<1x8x4xbf16>, vector<1x8x4xbf16>, vector<1x8x8xf32> -> vector<1x8x8xf32>
    "tpu.trace_stop"() : () -> ()
    %cst_34 = arith.constant dense<0xFF800000> : vector<1x8xf32>
    %99 = vector.multi_reduction <maximumf>, %98, %cst_34 [2] : vector<1x8x8xf32> to vector<1x8xf32>
    %100 = vector.shape_cast %99 : vector<1x8xf32> to vector<1x8x1xf32>
    %101 = vector.broadcast %100 : vector<1x8x1xf32> to vector<1x8x8xf32>
    %102 = arith.subf %98, %101 : vector<1x8x8xf32>
    %103 = math.exp %102 : vector<1x8x8xf32>
    %cst_35 = arith.constant dense<0.000000e+00> : vector<1x8xf32>
    %104 = vector.multi_reduction <add>, %103, %cst_35 [2] : vector<1x8x8xf32> to vector<1x8xf32>
    %105 = vector.shape_cast %104 : vector<1x8xf32> to vector<1x8x1xf32>
    %106 = tpu.reciprocal %105 {approx = true} : vector<1x8x1xf32> -> vector<1x8x1xf32>
    %107 = vector.broadcast %106 : vector<1x8x1xf32> to vector<1x8x8xf32>
    %108 = arith.mulf %103, %107 : vector<1x8x8xf32>
    %109 = arith.truncf %108 : vector<1x8x8xf32> to vector<1x8x8xbf16>
    %110 = vector.extract_strided_slice %8 {offsets = [0, 0, 16], sizes = [1, 8, 4], strides = [1, 1, 1]} : vector<1x8x32xbf16> to vector<1x8x4xbf16>
    "tpu.trace_start"() <{level = 10 : i32, message = "bqk,bkd->bqd"}> : () -> ()
    %cst_36 = arith.constant dense<0.000000e+00> : vector<1x8x4xf32>
    %111 = tpu.matmul %109, %110, %cst_36 {dimension_numbers = #tpu.dot_dimension_numbers<[2], [1], [1], [2], [0, 0, 0, 1, 1, 2], [0], [0]>} : vector<1x8x8xbf16>, vector<1x8x4xbf16>, vector<1x8x4xf32> -> vector<1x8x4xf32>
    "tpu.trace_stop"() : () -> ()
    %112 = arith.truncf %111 : vector<1x8x4xf32> to vector<1x8x4xbf16>
    %113 = vector.shape_cast %112 : vector<1x8x4xbf16> to vector<8x4xbf16>
    %c4 = arith.constant 4 : index
    %c0_37 = arith.constant 0 : index
    %c0_38 = arith.constant 0 : index
    %114 = vector.load %arg3[%c4, %c0_37, %c0_38] : memref<8x4x32xbf16, #tpu.memory_space<vmem>>, vector<1x4x32xbf16>
    %115 = vector.shape_cast %114 : vector<1x4x32xbf16> to vector<4x32xbf16>
    %cst_39 = arith.constant dense<0.000000e+00> : vector<8x32xf32>
    %116 = tpu.matmul %113, %115, %cst_39 {dimension_numbers = #tpu.dot_dimension_numbers<[1], [0], [0], [1], [0, 0, 1, 1], [], []>} : vector<8x4xbf16>, vector<4x32xbf16>, vector<8x32xf32> -> vector<8x32xf32>
    %117 = arith.addf %95, %116 : vector<8x32xf32>
    %118 = vector.extract_strided_slice %6 {offsets = [0, 0, 20], sizes = [1, 8, 4], strides = [1, 1, 1]} : vector<1x8x32xbf16> to vector<1x8x4xbf16>
    %119 = vector.extract_strided_slice %7 {offsets = [0, 0, 20], sizes = [1, 8, 4], strides = [1, 1, 1]} : vector<1x8x32xbf16> to vector<1x8x4xbf16>
    "tpu.trace_start"() <{level = 10 : i32, message = "bqd,bkd->bqk"}> : () -> ()
    %cst_40 = arith.constant dense<0.000000e+00> : vector<1x8x8xf32>
    %120 = tpu.matmul %118, %119, %cst_40 {dimension_numbers = #tpu.dot_dimension_numbers<[2], [2], [1], [1], [0, 0, 0, 1, 1, 1], [0], [0]>} : vector<1x8x4xbf16>, vector<1x8x4xbf16>, vector<1x8x8xf32> -> vector<1x8x8xf32>
    "tpu.trace_stop"() : () -> ()
    %cst_41 = arith.constant dense<0xFF800000> : vector<1x8xf32>
    %121 = vector.multi_reduction <maximumf>, %120, %cst_41 [2] : vector<1x8x8xf32> to vector<1x8xf32>
    %122 = vector.shape_cast %121 : vector<1x8xf32> to vector<1x8x1xf32>
    %123 = vector.broadcast %122 : vector<1x8x1xf32> to vector<1x8x8xf32>
    %124 = arith.subf %120, %123 : vector<1x8x8xf32>
    %125 = math.exp %124 : vector<1x8x8xf32>
    %cst_42 = arith.constant dense<0.000000e+00> : vector<1x8xf32>
    %126 = vector.multi_reduction <add>, %125, %cst_42 [2] : vector<1x8x8xf32> to vector<1x8xf32>
    %127 = vector.shape_cast %126 : vector<1x8xf32> to vector<1x8x1xf32>
    %128 = tpu.reciprocal %127 {approx = true} : vector<1x8x1xf32> -> vector<1x8x1xf32>
    %129 = vector.broadcast %128 : vector<1x8x1xf32> to vector<1x8x8xf32>
    %130 = arith.mulf %125, %129 : vector<1x8x8xf32>
    %131 = arith.truncf %130 : vector<1x8x8xf32> to vector<1x8x8xbf16>
    %132 = vector.extract_strided_slice %8 {offsets = [0, 0, 20], sizes = [1, 8, 4], strides = [1, 1, 1]} : vector<1x8x32xbf16> to vector<1x8x4xbf16>
    "tpu.trace_start"() <{level = 10 : i32, message = "bqk,bkd->bqd"}> : () -> ()
    %cst_43 = arith.constant dense<0.000000e+00> : vector<1x8x4xf32>
    %133 = tpu.matmul %131, %132, %cst_43 {dimension_numbers = #tpu.dot_dimension_numbers<[2], [1], [1], [2], [0, 0, 0, 1, 1, 2], [0], [0]>} : vector<1x8x8xbf16>, vector<1x8x4xbf16>, vector<1x8x4xf32> -> vector<1x8x4xf32>
    "tpu.trace_stop"() : () -> ()
    %134 = arith.truncf %133 : vector<1x8x4xf32> to vector<1x8x4xbf16>
    %135 = vector.shape_cast %134 : vector<1x8x4xbf16> to vector<8x4xbf16>
    %c5 = arith.constant 5 : index
    %c0_44 = arith.constant 0 : index
    %c0_45 = arith.constant 0 : index
    %136 = vector.load %arg3[%c5, %c0_44, %c0_45] : memref<8x4x32xbf16, #tpu.memory_space<vmem>>, vector<1x4x32xbf16>
    %137 = vector.shape_cast %136 : vector<1x4x32xbf16> to vector<4x32xbf16>
    %cst_46 = arith.constant dense<0.000000e+00> : vector<8x32xf32>
    %138 = tpu.matmul %135, %137, %cst_46 {dimension_numbers = #tpu.dot_dimension_numbers<[1], [0], [0], [1], [0, 0, 1, 1], [], []>} : vector<8x4xbf16>, vector<4x32xbf16>, vector<8x32xf32> -> vector<8x32xf32>
    %139 = arith.addf %117, %138 : vector<8x32xf32>
    %140 = vector.extract_strided_slice %6 {offsets = [0, 0, 24], sizes = [1, 8, 4], strides = [1, 1, 1]} : vector<1x8x32xbf16> to vector<1x8x4xbf16>
    %141 = vector.extract_strided_slice %7 {offsets = [0, 0, 24], sizes = [1, 8, 4], strides = [1, 1, 1]} : vector<1x8x32xbf16> to vector<1x8x4xbf16>
    "tpu.trace_start"() <{level = 10 : i32, message = "bqd,bkd->bqk"}> : () -> ()
    %cst_47 = arith.constant dense<0.000000e+00> : vector<1x8x8xf32>
    %142 = tpu.matmul %140, %141, %cst_47 {dimension_numbers = #tpu.dot_dimension_numbers<[2], [2], [1], [1], [0, 0, 0, 1, 1, 1], [0], [0]>} : vector<1x8x4xbf16>, vector<1x8x4xbf16>, vector<1x8x8xf32> -> vector<1x8x8xf32>
    "tpu.trace_stop"() : () -> ()
    %cst_48 = arith.constant dense<0xFF800000> : vector<1x8xf32>
    %143 = vector.multi_reduction <maximumf>, %142, %cst_48 [2] : vector<1x8x8xf32> to vector<1x8xf32>
    %144 = vector.shape_cast %143 : vector<1x8xf32> to vector<1x8x1xf32>
    %145 = vector.broadcast %144 : vector<1x8x1xf32> to vector<1x8x8xf32>
    %146 = arith.subf %142, %145 : vector<1x8x8xf32>
    %147 = math.exp %146 : vector<1x8x8xf32>
    %cst_49 = arith.constant dense<0.000000e+00> : vector<1x8xf32>
    %148 = vector.multi_reduction <add>, %147, %cst_49 [2] : vector<1x8x8xf32> to vector<1x8xf32>
    %149 = vector.shape_cast %148 : vector<1x8xf32> to vector<1x8x1xf32>
    %150 = tpu.reciprocal %149 {approx = true} : vector<1x8x1xf32> -> vector<1x8x1xf32>
    %151 = vector.broadcast %150 : vector<1x8x1xf32> to vector<1x8x8xf32>
    %152 = arith.mulf %147, %151 : vector<1x8x8xf32>
    %153 = arith.truncf %152 : vector<1x8x8xf32> to vector<1x8x8xbf16>
    %154 = vector.extract_strided_slice %8 {offsets = [0, 0, 24], sizes = [1, 8, 4], strides = [1, 1, 1]} : vector<1x8x32xbf16> to vector<1x8x4xbf16>
    "tpu.trace_start"() <{level = 10 : i32, message = "bqk,bkd->bqd"}> : () -> ()
    %cst_50 = arith.constant dense<0.000000e+00> : vector<1x8x4xf32>
    %155 = tpu.matmul %153, %154, %cst_50 {dimension_numbers = #tpu.dot_dimension_numbers<[2], [1], [1], [2], [0, 0, 0, 1, 1, 2], [0], [0]>} : vector<1x8x8xbf16>, vector<1x8x4xbf16>, vector<1x8x4xf32> -> vector<1x8x4xf32>
    "tpu.trace_stop"() : () -> ()
    %156 = arith.truncf %155 : vector<1x8x4xf32> to vector<1x8x4xbf16>
    %157 = vector.shape_cast %156 : vector<1x8x4xbf16> to vector<8x4xbf16>
    %c6 = arith.constant 6 : index
    %c0_51 = arith.constant 0 : index
    %c0_52 = arith.constant 0 : index
    %158 = vector.load %arg3[%c6, %c0_51, %c0_52] : memref<8x4x32xbf16, #tpu.memory_space<vmem>>, vector<1x4x32xbf16>
    %159 = vector.shape_cast %158 : vector<1x4x32xbf16> to vector<4x32xbf16>
    %cst_53 = arith.constant dense<0.000000e+00> : vector<8x32xf32>
    %160 = tpu.matmul %157, %159, %cst_53 {dimension_numbers = #tpu.dot_dimension_numbers<[1], [0], [0], [1], [0, 0, 1, 1], [], []>} : vector<8x4xbf16>, vector<4x32xbf16>, vector<8x32xf32> -> vector<8x32xf32>
    %161 = arith.addf %139, %160 : vector<8x32xf32>
    %162 = vector.extract_strided_slice %6 {offsets = [0, 0, 28], sizes = [1, 8, 4], strides = [1, 1, 1]} : vector<1x8x32xbf16> to vector<1x8x4xbf16>
    %163 = vector.extract_strided_slice %7 {offsets = [0, 0, 28], sizes = [1, 8, 4], strides = [1, 1, 1]} : vector<1x8x32xbf16> to vector<1x8x4xbf16>
    "tpu.trace_start"() <{level = 10 : i32, message = "bqd,bkd->bqk"}> : () -> ()
    %cst_54 = arith.constant dense<0.000000e+00> : vector<1x8x8xf32>
    %164 = tpu.matmul %162, %163, %cst_54 {dimension_numbers = #tpu.dot_dimension_numbers<[2], [2], [1], [1], [0, 0, 0, 1, 1, 1], [0], [0]>} : vector<1x8x4xbf16>, vector<1x8x4xbf16>, vector<1x8x8xf32> -> vector<1x8x8xf32>
    "tpu.trace_stop"() : () -> ()
    %cst_55 = arith.constant dense<0xFF800000> : vector<1x8xf32>
    %165 = vector.multi_reduction <maximumf>, %164, %cst_55 [2] : vector<1x8x8xf32> to vector<1x8xf32>
    %166 = vector.shape_cast %165 : vector<1x8xf32> to vector<1x8x1xf32>
    %167 = vector.broadcast %166 : vector<1x8x1xf32> to vector<1x8x8xf32>
    %168 = arith.subf %164, %167 : vector<1x8x8xf32>
    %169 = math.exp %168 : vector<1x8x8xf32>
    %cst_56 = arith.constant dense<0.000000e+00> : vector<1x8xf32>
    %170 = vector.multi_reduction <add>, %169, %cst_56 [2] : vector<1x8x8xf32> to vector<1x8xf32>
    %171 = vector.shape_cast %170 : vector<1x8xf32> to vector<1x8x1xf32>
    %172 = tpu.reciprocal %171 {approx = true} : vector<1x8x1xf32> -> vector<1x8x1xf32>
    %173 = vector.broadcast %172 : vector<1x8x1xf32> to vector<1x8x8xf32>
    %174 = arith.mulf %169, %173 : vector<1x8x8xf32>
    %175 = arith.truncf %174 : vector<1x8x8xf32> to vector<1x8x8xbf16>
    %176 = vector.extract_strided_slice %8 {offsets = [0, 0, 28], sizes = [1, 8, 4], strides = [1, 1, 1]} : vector<1x8x32xbf16> to vector<1x8x4xbf16>
    "tpu.trace_start"() <{level = 10 : i32, message = "bqk,bkd->bqd"}> : () -> ()
    %cst_57 = arith.constant dense<0.000000e+00> : vector<1x8x4xf32>
    %177 = tpu.matmul %175, %176, %cst_57 {dimension_numbers = #tpu.dot_dimension_numbers<[2], [1], [1], [2], [0, 0, 0, 1, 1, 2], [0], [0]>} : vector<1x8x8xbf16>, vector<1x8x4xbf16>, vector<1x8x4xf32> -> vector<1x8x4xf32>
    "tpu.trace_stop"() : () -> ()
    %178 = arith.truncf %177 : vector<1x8x4xf32> to vector<1x8x4xbf16>
    %179 = vector.shape_cast %178 : vector<1x8x4xbf16> to vector<8x4xbf16>
    %c7 = arith.constant 7 : index
    %c0_58 = arith.constant 0 : index
    %c0_59 = arith.constant 0 : index
    %180 = vector.load %arg3[%c7, %c0_58, %c0_59] : memref<8x4x32xbf16, #tpu.memory_space<vmem>>, vector<1x4x32xbf16>
    %181 = vector.shape_cast %180 : vector<1x4x32xbf16> to vector<4x32xbf16>
    %cst_60 = arith.constant dense<0.000000e+00> : vector<8x32xf32>
    %182 = tpu.matmul %179, %181, %cst_60 {dimension_numbers = #tpu.dot_dimension_numbers<[1], [0], [0], [1], [0, 0, 1, 1], [], []>} : vector<8x4xbf16>, vector<4x32xbf16>, vector<8x32xf32> -> vector<8x32xf32>
    %183 = arith.addf %161, %182 : vector<8x32xf32>
    %c0_61 = arith.constant 0 : index
    %c0_62 = arith.constant 0 : index
    %184 = vector.load %arg4[%c0_61, %c0_62] : memref<1x32xf32, #tpu.memory_space<vmem>>, vector<1x32xf32>
    %185 = vector.broadcast %184 : vector<1x32xf32> to vector<8x32xf32>
    %186 = arith.addf %183, %185 : vector<8x32xf32>
    %187 = vector.shape_cast %186 : vector<8x32xf32> to vector<1x8x32xf32>
    %c0_63 = arith.constant 0 : index
    %c0_64 = arith.constant 0 : index
    %c0_65 = arith.constant 0 : index
    %188 = vector.load %arg5[%c0_63, %c0_64, %c0_65] : memref<1x8x32xf32, #tpu.memory_space<vmem>>, vector<1x8x32xf32>
    tpu.vector_store %arg5[%c0_63, %c0_64, %c0_65], %187 {strides = array<i32>} : memref<1x8x32xf32, #tpu.memory_space<vmem>>, vector<1x8x32xf32>,
    return
  }
  func.func @transform_0(%arg0: i32) -> (i32, i32, i32) {
    %c0_i32 = arith.constant 0 : i32
    %c0_i32_0 = arith.constant 0 : i32
    %c0_i32_1 = arith.constant 0 : i32
    return %arg0, %c0_i32, %c0_i32_0 : i32, i32, i32
  }
  func.func @transform_1(%arg0: i32) -> (i32, i32) {
    %c0_i32 = arith.constant 0 : i32
    %c0_i32_0 = arith.constant 0 : i32
    %c0_i32_1 = arith.constant 0 : i32
    return %c0_i32, %c0_i32_0 : i32, i32
  }
  func.func @transform_2(%arg0: i32) -> (i32, i32, i32) {
    %c0_i32 = arith.constant 0 : i32
    %c0_i32_0 = arith.constant 0 : i32
    %c0_i32_1 = arith.constant 0 : i32
    %c0_i32_2 = arith.constant 0 : i32
    return %c0_i32, %c0_i32_0, %c0_i32_1 : i32, i32, i32
  }
  func.func @transform_3(%arg0: i32) -> (i32, i32) {
    %c0_i32 = arith.constant 0 : i32
    %c0_i32_0 = arith.constant 0 : i32
    %c0_i32_1 = arith.constant 0 : i32
    return %c0_i32, %c0_i32_0 : i32, i32
  }
  func.func @transform_4(%arg0: i32) -> (i32, i32, i32) {
    %c0_i32 = arith.constant 0 : i32
    %c0_i32_0 = arith.constant 0 : i32
    %c0_i32_1 = arith.constant 0 : i32
    return %arg0, %c0_i32, %c0_i32_0 : i32, i32, i32
  }
}

module attributes {stable_mosaic.version = 11 : i64} {
  func.func @_attention_kernel(%arg0: i32, %arg1: memref<1x8x32xbf16, #tpu.memory_space<vmem>>, %arg2: memref<32x96xbf16, #tpu.memory_space<vmem>>, %arg3: memref<8x4x32xbf16, #tpu.memory_space<vmem>>, %arg4: memref<1x32xf32, #tpu.memory_space<vmem>>, %arg5: memref<1x8x32xf32, #tpu.memory_space<vmem>>) attributes {dimension_semantics = [#tpu.dimension_semantics<parallel>], iteration_bounds = array<i64: 2>, scalar_prefetch = 0 : i64, scratch_operands = 0 : i64, tpu.core_type = #tpu.core_type<tc>, window_params = [{transform_indices = @transform_0, window_bounds = array<i64: 1, 8, 32>}, {pipeline_mode = #tpu.pipeline_mode<synchronous>, transform_indices = @transform_1, window_bounds = array<i64: 32, 96>}, {pipeline_mode = #tpu.pipeline_mode<synchronous>, transform_indices = @transform_2, window_bounds = array<i64: 8, 4, 32>}, {pipeline_mode = #tpu.pipeline_mode<synchronous>, transform_indices = @transform_3, window_bounds = array<i64: 1, 32>}, {transform_indices = @transform_4, window_bounds = array<i64: 1, 8, 32>}]} {
    %c0 = arith.constant 0 : index
    %c0_0 = arith.constant 0 : index
    %c0_1 = arith.constant 0 : index
    %0 = vector.load %arg1[%c0, %c0_0, %c0_1] : memref<1x8x32xbf16, #tpu.memory_space<vmem>>, vector<1x8x32xbf16>
    %1 = vector.shape_cast %0 : vector<1x8x32xbf16> to vector<8x32xbf16>
    %c0_2 = arith.constant 0 : index
    %c0_3 = arith.constant 0 : index
    %2 = vector.load %arg2[%c0_2, %c0_3] : memref<32x96xbf16, #tpu.memory_space<vmem>>, vector<32x96xbf16>
    %cst = arith.constant dense<0.000000e+00> : vector<8x96xf32>
    %3 = tpu.matmul %1, %2, %cst {dimension_numbers = #tpu.dot_dimension_numbers<[1], [0], [0], [1], [0, 0, 1, 1], [], []>} : vector<8x32xbf16>, vector<32x96xbf16>, vector<8x96xf32> -> vector<8x96xf32>
    %4 = arith.truncf %3 : vector<8x96xf32> to vector<8x96xbf16>
    %5 = vector.shape_cast %4 : vector<8x96xbf16> to vector<1x8x96xbf16>
    %6 = vector.extract_strided_slice %5 {offsets = [0, 0, 0], sizes = [1, 8, 32], strides = [1, 1, 1]} : vector<1x8x96xbf16> to vector<1x8x32xbf16>
    %7 = vector.extract_strided_slice %5 {offsets = [0, 0, 32], sizes = [1, 8, 32], strides = [1, 1, 1]} : vector<1x8x96xbf16> to vector<1x8x32xbf16>
    %8 = vector.extract_strided_slice %5 {offsets = [0, 0, 64], sizes = [1, 8, 32], strides = [1, 1, 1]} : vector<1x8x96xbf16> to vector<1x8x32xbf16>
    %9 = vector.extract_strided_slice %6 {offsets = [0, 0, 0], sizes = [1, 8, 4], strides = [1, 1, 1]} : vector<1x8x32xbf16> to vector<1x8x4xbf16>
    %10 = vector.extract_strided_slice %7 {offsets = [0, 0, 0], sizes = [1, 8, 4], strides = [1, 1, 1]} : vector<1x8x32xbf16> to vector<1x8x4xbf16>
    "tpu.trace_start"() <{level = 10 : i32, message = "bqd,bkd->bqk"}> : () -> ()
    %cst_4 = arith.constant dense<0.000000e+00> : vector<1x8x8xf32>
    %11 = tpu.matmul %9, %10, %cst_4 {dimension_numbers = #tpu.dot_dimension_numbers<[2], [2], [1], [1], [0, 0, 0, 1, 1, 1], [0], [0]>} : vector<1x8x4xbf16>, vector<1x8x4xbf16>, vector<1x8x8xf32> -> vector<1x8x8xf32>
    "tpu.trace_stop"() : () -> ()
    %cst_5 = arith.constant dense<0xFF800000> : vector<1x8xf32>
    %12 = vector.multi_reduction <maximumf>, %11, %cst_5 [2] : vector<1x8x8xf32> to vector<1x8xf32>
    %13 = vector.shape_cast %12 : vector<1x8xf32> to vector<1x8x1xf32>
    %14 = vector.broadcast %13 : vector<1x8x1xf32> to vector<1x8x8xf32>
    %15 = arith.subf %11, %14 : vector<1x8x8xf32>
    %16 = math.exp %15 : vector<1x8x8xf32>
    %cst_6 = arith.constant dense<0.000000e+00> : vector<1x8xf32>
    %17 = vector.multi_reduction <add>, %16, %cst_6 [2] : vector<1x8x8xf32> to vector<1x8xf32>
    %18 = vector.shape_cast %17 : vector<1x8xf32> to vector<1x8x1xf32>
    %19 = tpu.reciprocal %18 {approx = true} : vector<1x8x1xf32> -> vector<1x8x1xf32>
    %20 = vector.broadcast %19 : vector<1x8x1xf32> to vector<1x8x8xf32>
    %21 = arith.mulf %16, %20 : vector<1x8x8xf32>
    %22 = arith.truncf %21 : vector<1x8x8xf32> to vector<1x8x8xbf16>
    %23 = vector.extract_strided_slice %8 {offsets = [0, 0, 0], sizes = [1, 8, 4], strides = [1, 1, 1]} : vector<1x8x32xbf16> to vector<1x8x4xbf16>
    "tpu.trace_start"() <{level = 10 : i32, message = "bqk,bkd->bqd"}> : () -> ()
    %cst_7 = arith.constant dense<0.000000e+00> : vector<1x8x4xf32>
    %24 = tpu.matmul %22, %23, %cst_7 {dimension_numbers = #tpu.dot_dimension_numbers<[2], [1], [1], [2], [0, 0, 0, 1, 1, 2], [0], [0]>} : vector<1x8x8xbf16>, vector<1x8x4xbf16>, vector<1x8x4xf32> -> vector<1x8x4xf32>
    "tpu.trace_stop"() : () -> ()
    %25 = arith.truncf %24 : vector<1x8x4xf32> to vector<1x8x4xbf16>
    %26 = vector.shape_cast %25 : vector<1x8x4xbf16> to vector<8x4xbf16>
    %c0_8 = arith.constant 0 : index
    %c0_9 = arith.constant 0 : index
    %c0_10 = arith.constant 0 : index
    %27 = vector.load %arg3[%c0_8, %c0_9, %c0_10] : memref<8x4x32xbf16, #tpu.memory_space<vmem>>, vector<1x4x32xbf16>
    %28 = vector.shape_cast %27 : vector<1x4x32xbf16> to vector<4x32xbf16>
    %cst_11 = arith.constant dense<0.000000e+00> : vector<8x32xf32>
    %29 = tpu.matmul %26, %28, %cst_11 {dimension_numbers = #tpu.dot_dimension_numbers<[1], [0], [0], [1], [0, 0, 1, 1], [], []>} : vector<8x4xbf16>, vector<4x32xbf16>, vector<8x32xf32> -> vector<8x32xf32>
    %30 = vector.extract_strided_slice %6 {offsets = [0, 0, 4], sizes = [1, 8, 4], strides = [1, 1, 1]} : vector<1x8x32xbf16> to vector<1x8x4xbf16>
    %31 = vector.extract_strided_slice %7 {offsets = [0, 0, 4], sizes = [1, 8, 4], strides = [1, 1, 1]} : vector<1x8x32xbf16> to vector<1x8x4xbf16>
    "tpu.trace_start"() <{level = 10 : i32, message = "bqd,bkd->bqk"}> : () -> ()
    %cst_12 = arith.constant dense<0.000000e+00> : vector<1x8x8xf32>
    %32 = tpu.matmul %30, %31, %cst_12 {dimension_numbers = #tpu.dot_dimension_numbers<[2], [2], [1], [1], [0, 0, 0, 1, 1, 1], [0], [0]>} : vector<1x8x4xbf16>, vector<1x8x4xbf16>, vector<1x8x8xf32> -> vector<1x8x8xf32>
    "tpu.trace_stop"() : () -> ()
    %cst_13 = arith.constant dense<0xFF800000> : vector<1x8xf32>
    %33 = vector.multi_reduction <maximumf>, %32, %cst_13 [2] : vector<1x8x8xf32> to vector<1x8xf32>
    %34 = vector.shape_cast %33 : vector<1x8xf32> to vector<1x8x1xf32>
    %35 = vector.broadcast %34 : vector<1x8x1xf32> to vector<1x8x8xf32>
    %36 = arith.subf %32, %35 : vector<1x8x8xf32>
    %37 = math.exp %36 : vector<1x8x8xf32>
    %cst_14 = arith.constant dense<0.000000e+00> : vector<1x8xf32>
    %38 = vector.multi_reduction <add>, %37, %cst_14 [2] : vector<1x8x8xf32> to vector<1x8xf32>
    %39 = vector.shape_cast %38 : vector<1x8xf32> to vector<1x8x1xf32>
    %40 = tpu.reciprocal %39 {approx = true} : vector<1x8x1xf32> -> vector<1x8x1xf32>
    %41 = vector.broadcast %40 : vector<1x8x1xf32> to vector<1x8x8xf32>
    %42 = arith.mulf %37, %41 : vector<1x8x8xf32>
    %43 = arith.truncf %42 : vector<1x8x8xf32> to vector<1x8x8xbf16>
    %44 = vector.extract_strided_slice %8 {offsets = [0, 0, 4], sizes = [1, 8, 4], strides = [1, 1, 1]} : vector<1x8x32xbf16> to vector<1x8x4xbf16>
    "tpu.trace_start"() <{level = 10 : i32, message = "bqk,bkd->bqd"}> : () -> ()
    %cst_15 = arith.constant dense<0.000000e+00> : vector<1x8x4xf32>
    %45 = tpu.matmul %43, %44, %cst_15 {dimension_numbers = #tpu.dot_dimension_numbers<[2], [1], [1], [2], [0, 0, 0, 1, 1, 2], [0], [0]>} : vector<1x8x8xbf16>, vector<1x8x4xbf16>, vector<1x8x4xf32> -> vector<1x8x4xf32>
    "tpu.trace_stop"() : () -> ()
    %46 = arith.truncf %45 : vector<1x8x4xf32> to vector<1x8x4xbf16>
    %47 = vector.shape_cast %46 : vector<1x8x4xbf16> to vector<8x4xbf16>
    %c1 = arith.constant 1 : index
    %c0_16 = arith.constant 0 : index
    %c0_17 = arith.constant 0 : index
    %48 = vector.load %arg3[%c1, %c0_16, %c0_17] : memref<8x4x32xbf16, #tpu.memory_space<vmem>>, vector<1x4x32xbf16>
    %49 = vector.shape_cast %48 : vector<1x4x32xbf16> to vector<4x32xbf16>
    %cst_18 = arith.constant dense<0.000000e+00> : vector<8x32xf32>
    %50 = tpu.matmul %47, %49, %cst_18 {dimension_numbers = #tpu.dot_dimension_numbers<[1], [0], [0], [1], [0, 0, 1, 1], [], []>} : vector<8x4xbf16>, vector<4x32xbf16>, vector<8x32xf32> -> vector<8x32xf32>
    %51 = arith.addf %29, %50 : vector<8x32xf32>
    %52 = vector.extract_strided_slice %6 {offsets = [0, 0, 8], sizes = [1, 8, 4], strides = [1, 1, 1]} : vector<1x8x32xbf16> to vector<1x8x4xbf16>
    %53 = vector.extract_strided_slice %7 {offsets = [0, 0, 8], sizes = [1, 8, 4], strides = [1, 1, 1]} : vector<1x8x32xbf16> to vector<1x8x4xbf16>
    "tpu.trace_start"() <{level = 10 : i32, message = "bqd,bkd->bqk"}> : () -> ()
    %cst_19 = arith.constant dense<0.000000e+00> : vector<1x8x8xf32>
    %54 = tpu.matmul %52, %53, %cst_19 {dimension_numbers = #tpu.dot_dimension_numbers<[2], [2], [1], [1], [0, 0, 0, 1, 1, 1], [0], [0]>} : vector<1x8x4xbf16>, vector<1x8x4xbf16>, vector<1x8x8xf32> -> vector<1x8x8xf32>
    "tpu.trace_stop"() : () -> ()
    %cst_20 = arith.constant dense<0xFF800000> : vector<1x8xf32>
    %55 = vector.multi_reduction <maximumf>, %54, %cst_20 [2] : vector<1x8x8xf32> to vector<1x8xf32>
    %56 = vector.shape_cast %55 : vector<1x8xf32> to vector<1x8x1xf32>
    %57 = vector.broadcast %56 : vector<1x8x1xf32> to vector<1x8x8xf32>
    %58 = arith.subf %54, %57 : vector<1x8x8xf32>
    %59 = math.exp %58 : vector<1x8x8xf32>
    %cst_21 = arith.constant dense<0.000000e+00> : vector<1x8xf32>
    %60 = vector.multi_reduction <add>, %59, %cst_21 [2] : vector<1x8x8xf32> to vector<1x8xf32>
    %61 = vector.shape_cast %60 : vector<1x8xf32> to vector<1x8x1xf32>
    %62 = tpu.reciprocal %61 {approx = true} : vector<1x8x1xf32> -> vector<1x8x1xf32>
    %63 = vector.broadcast %62 : vector<1x8x1xf32> to vector<1x8x8xf32>
    %64 = arith.mulf %59, %63 : vector<1x8x8xf32>
    %65 = arith.truncf %64 : vector<1x8x8xf32> to vector<1x8x8xbf16>
    %66 = vector.extract_strided_slice %8 {offsets = [0, 0, 8], sizes = [1, 8, 4], strides = [1, 1, 1]} : vector<1x8x32xbf16> to vector<1x8x4xbf16>
    "tpu.trace_start"() <{level = 10 : i32, message = "bqk,bkd->bqd"}> : () -> ()
    %cst_22 = arith.constant dense<0.000000e+00> : vector<1x8x4xf32>
    %67 = tpu.matmul %65, %66, %cst_22 {dimension_numbers = #tpu.dot_dimension_numbers<[2], [1], [1], [2], [0, 0, 0, 1, 1, 2], [0], [0]>} : vector<1x8x8xbf16>, vector<1x8x4xbf16>, vector<1x8x4xf32> -> vector<1x8x4xf32>
    "tpu.trace_stop"() : () -> ()
    %68 = arith.truncf %67 : vector<1x8x4xf32> to vector<1x8x4xbf16>
    %69 = vector.shape_cast %68 : vector<1x8x4xbf16> to vector<8x4xbf16>
    %c2 = arith.constant 2 : index
    %c0_23 = arith.constant 0 : index
    %c0_24 = arith.constant 0 : index
    %70 = vector.load %arg3[%c2, %c0_23, %c0_24] : memref<8x4x32xbf16, #tpu.memory_space<vmem>>, vector<1x4x32xbf16>
    %71 = vector.shape_cast %70 : vector<1x4x32xbf16> to vector<4x32xbf16>
    %cst_25 = arith.constant dense<0.000000e+00> : vector<8x32xf32>
    %72 = tpu.matmul %69, %71, %cst_25 {dimension_numbers = #tpu.dot_dimension_numbers<[1], [0], [0], [1], [0, 0, 1, 1], [], []>} : vector<8x4xbf16>, vector<4x32xbf16>, vector<8x32xf32> -> vector<8x32xf32>
    %73 = arith.addf %51, %72 : vector<8x32xf32>
    %74 = vector.extract_strided_slice %6 {offsets = [0, 0, 12], sizes = [1, 8, 4], strides = [1, 1, 1]} : vector<1x8x32xbf16> to vector<1x8x4xbf16>
    %75 = vector.extract_strided_slice %7 {offsets = [0, 0, 12], sizes = [1, 8, 4], strides = [1, 1, 1]} : vector<1x8x32xbf16> to vector<1x8x4xbf16>
    "tpu.trace_start"() <{level = 10 : i32, message = "bqd,bkd->bqk"}> : () -> ()
    %cst_26 = arith.constant dense<0.000000e+00> : vector<1x8x8xf32>
    %76 = tpu.matmul %74, %75, %cst_26 {dimension_numbers = #tpu.dot_dimension_numbers<[2], [2], [1], [1], [0, 0, 0, 1, 1, 1], [0], [0]>} : vector<1x8x4xbf16>, vector<1x8x4xbf16>, vector<1x8x8xf32> -> vector<1x8x8xf32>
    "tpu.trace_stop"() : () -> ()
    %cst_27 = arith.constant dense<0xFF800000> : vector<1x8xf32>
    %77 = vector.multi_reduction <maximumf>, %76, %cst_27 [2] : vector<1x8x8xf32> to vector<1x8xf32>
    %78 = vector.shape_cast %77 : vector<1x8xf32> to vector<1x8x1xf32>
    %79 = vector.broadcast %78 : vector<1x8x1xf32> to vector<1x8x8xf32>
    %80 = arith.subf %76, %79 : vector<1x8x8xf32>
    %81 = math.exp %80 : vector<1x8x8xf32>
    %cst_28 = arith.constant dense<0.000000e+00> : vector<1x8xf32>
    %82 = vector.multi_reduction <add>, %81, %cst_28 [2] : vector<1x8x8xf32> to vector<1x8xf32>
    %83 = vector.shape_cast %82 : vector<1x8xf32> to vector<1x8x1xf32>
    %84 = tpu.reciprocal %83 {approx = true} : vector<1x8x1xf32> -> vector<1x8x1xf32>
    %85 = vector.broadcast %84 : vector<1x8x1xf32> to vector<1x8x8xf32>
    %86 = arith.mulf %81, %85 : vector<1x8x8xf32>
    %87 = arith.truncf %86 : vector<1x8x8xf32> to vector<1x8x8xbf16>
    %88 = vector.extract_strided_slice %8 {offsets = [0, 0, 12], sizes = [1, 8, 4], strides = [1, 1, 1]} : vector<1x8x32xbf16> to vector<1x8x4xbf16>
    "tpu.trace_start"() <{level = 10 : i32, message = "bqk,bkd->bqd"}> : () -> ()
    %cst_29 = arith.constant dense<0.000000e+00> : vector<1x8x4xf32>
    %89 = tpu.matmul %87, %88, %cst_29 {dimension_numbers = #tpu.dot_dimension_numbers<[2], [1], [1], [2], [0, 0, 0, 1, 1, 2], [0], [0]>} : vector<1x8x8xbf16>, vector<1x8x4xbf16>, vector<1x8x4xf32> -> vector<1x8x4xf32>
    "tpu.trace_stop"() : () -> ()
    %90 = arith.truncf %89 : vector<1x8x4xf32> to vector<1x8x4xbf16>
    %91 = vector.shape_cast %90 : vector<1x8x4xbf16> to vector<8x4xbf16>
    %c3 = arith.constant 3 : index
    %c0_30 = arith.constant 0 : index
    %c0_31 = arith.constant 0 : index
    %92 = vector.load %arg3[%c3, %c0_30, %c0_31] : memref<8x4x32xbf16, #tpu.memory_space<vmem>>, vector<1x4x32xbf16>
    %93 = vector.shape_cast %92 : vector<1x4x32xbf16> to vector<4x32xbf16>
    %cst_32 = arith.constant dense<0.000000e+00> : vector<8x32xf32>
    %94 = tpu.matmul %91, %93, %cst_32 {dimension_numbers = #tpu.dot_dimension_numbers<[1], [0], [0], [1], [0, 0, 1, 1], [], []>} : vector<8x4xbf16>, vector<4x32xbf16>, vector<8x32xf32> -> vector<8x32xf32>
    %95 = arith.addf %73, %94 : vector<8x32xf32>
    %96 = vector.extract_strided_slice %6 {offsets = [0, 0, 16], sizes = [1, 8, 4], strides = [1, 1, 1]} : vector<1x8x32xbf16> to vector<1x8x4xbf16>
    %97 = vector.extract_strided_slice %7 {offsets = [0, 0, 16], sizes = [1, 8, 4], strides = [1, 1, 1]} : vector<1x8x32xbf16> to vector<1x8x4xbf16>
    "tpu.trace_start"() <{level = 10 : i32, message = "bqd,bkd->bqk"}> : () -> ()
    %cst_33 = arith.constant dense<0.000000e+00> : vector<1x8x8xf32>
    %98 = tpu.matmul %96, %97, %cst_33 {dimension_numbers = #tpu.dot_dimension_numbers<[2], [2], [1], [1], [0, 0, 0, 1, 1, 1], [0], [0]>} : vector<1x8x4xbf16>, vector<1x8x4xbf16>, vector<1x8x8xf32> -> vector<1x8x8xf32>
    "tpu.trace_stop"() : () -> ()
    %cst_34 = arith.constant dense<0xFF800000> : vector<1x8xf32>
    %99 = vector.multi_reduction <maximumf>, %98, %cst_34 [2] : vector<1x8x8xf32> to vector<1x8xf32>
    %100 = vector.shape_cast %99 : vector<1x8xf32> to vector<1x8x1xf32>
    %101 = vector.broadcast %100 : vector<1x8x1xf32> to vector<1x8x8xf32>
    %102 = arith.subf %98, %101 : vector<1x8x8xf32>
    %103 = math.exp %102 : vector<1x8x8xf32>
    %cst_35 = arith.constant dense<0.000000e+00> : vector<1x8xf32>
    %104 = vector.multi_reduction <add>, %103, %cst_35 [2] : vector<1x8x8xf32> to vector<1x8xf32>
    %105 = vector.shape_cast %104 : vector<1x8xf32> to vector<1x8x1xf32>
    %106 = tpu.reciprocal %105 {approx = true} : vector<1x8x1xf32> -> vector<1x8x1xf32>
    %107 = vector.broadcast %106 : vector<1x8x1xf32> to vector<1x8x8xf32>
    %108 = arith.mulf %103, %107 : vector<1x8x8xf32>
    %109 = arith.truncf %108 : vector<1x8x8xf32> to vector<1x8x8xbf16>
    %110 = vector.extract_strided_slice %8 {offsets = [0, 0, 16], sizes = [1, 8, 4], strides = [1, 1, 1]} : vector<1x8x32xbf16> to vector<1x8x4xbf16>
    "tpu.trace_start"() <{level = 10 : i32, message = "bqk,bkd->bqd"}> : () -> ()
    %cst_36 = arith.constant dense<0.000000e+00> : vector<1x8x4xf32>
    %111 = tpu.matmul %109, %110, %cst_36 {dimension_numbers = #tpu.dot_dimension_numbers<[2], [1], [1], [2], [0, 0, 0, 1, 1, 2], [0], [0]>} : vector<1x8x8xbf16>, vector<1x8x4xbf16>, vector<1x8x4xf32> -> vector<1x8x4xf32>
    "tpu.trace_stop"() : () -> ()
    %112 = arith.truncf %111 : vector<1x8x4xf32> to vector<1x8x4xbf16>
    %113 = vector.shape_cast %112 : vector<1x8x4xbf16> to vector<8x4xbf16>
    %c4 = arith.constant 4 : index
    %c0_37 = arith.constant 0 : index
    %c0_38 = arith.constant 0 : index
    %114 = vector.load %arg3[%c4, %c0_37, %c0_38] : memref<8x4x32xbf16, #tpu.memory_space<vmem>>, vector<1x4x32xbf16>
    %115 = vector.shape_cast %114 : vector<1x4x32xbf16> to vector<4x32xbf16>
    %cst_39 = arith.constant dense<0.000000e+00> : vector<8x32xf32>
    %116 = tpu.matmul %113, %115, %cst_39 {dimension_numbers = #tpu.dot_dimension_numbers<[1], [0], [0], [1], [0, 0, 1, 1], [], []>} : vector<8x4xbf16>, vector<4x32xbf16>, vector<8x32xf32> -> vector<8x32xf32>
    %117 = arith.addf %95, %116 : vector<8x32xf32>
    %118 = vector.extract_strided_slice %6 {offsets = [0, 0, 20], sizes = [1, 8, 4], strides = [1, 1, 1]} : vector<1x8x32xbf16> to vector<1x8x4xbf16>
    %119 = vector.extract_strided_slice %7 {offsets = [0, 0, 20], sizes = [1, 8, 4], strides = [1, 1, 1]} : vector<1x8x32xbf16> to vector<1x8x4xbf16>
    "tpu.trace_start"() <{level = 10 : i32, message = "bqd,bkd->bqk"}> : () -> ()
    %cst_40 = arith.constant dense<0.000000e+00> : vector<1x8x8xf32>
    %120 = tpu.matmul %118, %119, %cst_40 {dimension_numbers = #tpu.dot_dimension_numbers<[2], [2], [1], [1], [0, 0, 0, 1, 1, 1], [0], [0]>} : vector<1x8x4xbf16>, vector<1x8x4xbf16>, vector<1x8x8xf32> -> vector<1x8x8xf32>
    "tpu.trace_stop"() : () -> ()
    %cst_41 = arith.constant dense<0xFF800000> : vector<1x8xf32>
    %121 = vector.multi_reduction <maximumf>, %120, %cst_41 [2] : vector<1x8x8xf32> to vector<1x8xf32>
    %122 = vector.shape_cast %121 : vector<1x8xf32> to vector<1x8x1xf32>
    %123 = vector.broadcast %122 : vector<1x8x1xf32> to vector<1x8x8xf32>
    %124 = arith.subf %120, %123 : vector<1x8x8xf32>
    %125 = math.exp %124 : vector<1x8x8xf32>
    %cst_42 = arith.constant dense<0.000000e+00> : vector<1x8xf32>
    %126 = vector.multi_reduction <add>, %125, %cst_42 [2] : vector<1x8x8xf32> to vector<1x8xf32>
    %127 = vector.shape_cast %126 : vector<1x8xf32> to vector<1x8x1xf32>
    %128 = tpu.reciprocal %127 {approx = true} : vector<1x8x1xf32> -> vector<1x8x1xf32>
    %129 = vector.broadcast %128 : vector<1x8x1xf32> to vector<1x8x8xf32>
    %130 = arith.mulf %125, %129 : vector<1x8x8xf32>
    %131 = arith.truncf %130 : vector<1x8x8xf32> to vector<1x8x8xbf16>
    %132 = vector.extract_strided_slice %8 {offsets = [0, 0, 20], sizes = [1, 8, 4], strides = [1, 1, 1]} : vector<1x8x32xbf16> to vector<1x8x4xbf16>
    "tpu.trace_start"() <{level = 10 : i32, message = "bqk,bkd->bqd"}> : () -> ()
    %cst_43 = arith.constant dense<0.000000e+00> : vector<1x8x4xf32>
    %133 = tpu.matmul %131, %132, %cst_43 {dimension_numbers = #tpu.dot_dimension_numbers<[2], [1], [1], [2], [0, 0, 0, 1, 1, 2], [0], [0]>} : vector<1x8x8xbf16>, vector<1x8x4xbf16>, vector<1x8x4xf32> -> vector<1x8x4xf32>
    "tpu.trace_stop"() : () -> ()
    %134 = arith.truncf %133 : vector<1x8x4xf32> to vector<1x8x4xbf16>
    %135 = vector.shape_cast %134 : vector<1x8x4xbf16> to vector<8x4xbf16>
    %c5 = arith.constant 5 : index
    %c0_44 = arith.constant 0 : index
    %c0_45 = arith.constant 0 : index
    %136 = vector.load %arg3[%c5, %c0_44, %c0_45] : memref<8x4x32xbf16, #tpu.memory_space<vmem>>, vector<1x4x32xbf16>
    %137 = vector.shape_cast %136 : vector<1x4x32xbf16> to vector<4x32xbf16>
    %cst_46 = arith.constant dense<0.000000e+00> : vector<8x32xf32>
    %138 = tpu.matmul %135, %137, %cst_46 {dimension_numbers = #tpu.dot_dimension_numbers<[1], [0], [0], [1], [0, 0, 1, 1], [], []>} : vector<8x4xbf16>, vector<4x32xbf16>, vector<8x32xf32> -> vector<8x32xf32>
    %139 = arith.addf %117, %138 : vector<8x32xf32>
    %140 = vector.extract_strided_slice %6 {offsets = [0, 0, 24], sizes = [1, 8, 4], strides = [1, 1, 1]} : vector<1x8x32xbf16> to vector<1x8x4xbf16>
    %141 = vector.extract_strided_slice %7 {offsets = [0, 0, 24], sizes = [1, 8, 4], strides = [1, 1, 1]} : vector<1x8x32xbf16> to vector<1x8x4xbf16>
    "tpu.trace_start"() <{level = 10 : i32, message = "bqd,bkd->bqk"}> : () -> ()
    %cst_47 = arith.constant dense<0.000000e+00> : vector<1x8x8xf32>
    %142 = tpu.matmul %140, %141, %cst_47 {dimension_numbers = #tpu.dot_dimension_numbers<[2], [2], [1], [1], [0, 0, 0, 1, 1, 1], [0], [0]>} : vector<1x8x4xbf16>, vector<1x8x4xbf16>, vector<1x8x8xf32> -> vector<1x8x8xf32>
    "tpu.trace_stop"() : () -> ()
    %cst_48 = arith.constant dense<0xFF800000> : vector<1x8xf32>
    %143 = vector.multi_reduction <maximumf>, %142, %cst_48 [2] : vector<1x8x8xf32> to vector<1x8xf32>
    %144 = vector.shape_cast %143 : vector<1x8xf32> to vector<1x8x1xf32>
    %145 = vector.broadcast %144 : vector<1x8x1xf32> to vector<1x8x8xf32>
    %146 = arith.subf %142, %145 : vector<1x8x8xf32>
    %147 = math.exp %146 : vector<1x8x8xf32>
    %cst_49 = arith.constant dense<0.000000e+00> : vector<1x8xf32>
    %148 = vector.multi_reduction <add>, %147, %cst_49 [2] : vector<1x8x8xf32> to vector<1x8xf32>
    %149 = vector.shape_cast %148 : vector<1x8xf32> to vector<1x8x1xf32>
    %150 = tpu.reciprocal %149 {approx = true} : vector<1x8x1xf32> -> vector<1x8x1xf32>
    %151 = vector.broadcast %150 : vector<1x8x1xf32> to vector<1x8x8xf32>
    %152 = arith.mulf %147, %151 : vector<1x8x8xf32>
    %153 = arith.truncf %152 : vector<1x8x8xf32> to vector<1x8x8xbf16>
    %154 = vector.extract_strided_slice %8 {offsets = [0, 0, 24], sizes = [1, 8, 4], strides = [1, 1, 1]} : vector<1x8x32xbf16> to vector<1x8x4xbf16>
    "tpu.trace_start"() <{level = 10 : i32, message = "bqk,bkd->bqd"}> : () -> ()
    %cst_50 = arith.constant dense<0.000000e+00> : vector<1x8x4xf32>
    %155 = tpu.matmul %153, %154, %cst_50 {dimension_numbers = #tpu.dot_dimension_numbers<[2], [1], [1], [2], [0, 0, 0, 1, 1, 2], [0], [0]>} : vector<1x8x8xbf16>, vector<1x8x4xbf16>, vector<1x8x4xf32> -> vector<1x8x4xf32>
    "tpu.trace_stop"() : () -> ()
    %156 = arith.truncf %155 : vector<1x8x4xf32> to vector<1x8x4xbf16>
    %157 = vector.shape_cast %156 : vector<1x8x4xbf16> to vector<8x4xbf16>
    %c6 = arith.constant 6 : index
    %c0_51 = arith.constant 0 : index
    %c0_52 = arith.constant 0 : index
    %158 = vector.load %arg3[%c6, %c0_51, %c0_52] : memref<8x4x32xbf16, #tpu.memory_space<vmem>>, vector<1x4x32xbf16>
    %159 = vector.shape_cast %158 : vector<1x4x32xbf16> to vector<4x32xbf16>
    %cst_53 = arith.constant dense<0.000000e+00> : vector<8x32xf32>
    %160 = tpu.matmul %157, %159, %cst_53 {dimension_numbers = #tpu.dot_dimension_numbers<[1], [0], [0], [1], [0, 0, 1, 1], [], []>} : vector<8x4xbf16>, vector<4x32xbf16>, vector<8x32xf32> -> vector<8x32xf32>
    %161 = arith.addf %139, %160 : vector<8x32xf32>
    %162 = vector.extract_strided_slice %6 {offsets = [0, 0, 28], sizes = [1, 8, 4], strides = [1, 1, 1]} : vector<1x8x32xbf16> to vector<1x8x4xbf16>
    %163 = vector.extract_strided_slice %7 {offsets = [0, 0, 28], sizes = [1, 8, 4], strides = [1, 1, 1]} : vector<1x8x32xbf16> to vector<1x8x4xbf16>
    "tpu.trace_start"() <{level = 10 : i32, message = "bqd,bkd->bqk"}> : () -> ()
    %cst_54 = arith.constant dense<0.000000e+00> : vector<1x8x8xf32>
    %164 = tpu.matmul %162, %163, %cst_54 {dimension_numbers = #tpu.dot_dimension_numbers<[2], [2], [1], [1], [0, 0, 0, 1, 1, 1], [0], [0]>} : vector<1x8x4xbf16>, vector<1x8x4xbf16>, vector<1x8x8xf32> -> vector<1x8x8xf32>
    "tpu.trace_stop"() : () -> ()
    %cst_55 = arith.constant dense<0xFF800000> : vector<1x8xf32>
    %165 = vector.multi_reduction <maximumf>, %164, %cst_55 [2] : vector<1x8x8xf32> to vector<1x8xf32>
    %166 = vector.shape_cast %165 : vector<1x8xf32> to vector<1x8x1xf32>
    %167 = vector.broadcast %166 : vector<1x8x1xf32> to vector<1x8x8xf32>
    %168 = arith.subf %164, %167 : vector<1x8x8xf32>
    %169 = math.exp %168 : vector<1x8x8xf32>
    %cst_56 = arith.constant dense<0.000000e+00> : vector<1x8xf32>
    %170 = vector.multi_reduction <add>, %169, %cst_56 [2] : vector<1x8x8xf32> to vector<1x8xf32>
    %171 = vector.shape_cast %170 : vector<1x8xf32> to vector<1x8x1xf32>
    %172 = tpu.reciprocal %171 {approx = true} : vector<1x8x1xf32> -> vector<1x8x1xf32>
    %173 = vector.broadcast %172 : vector<1x8x1xf32> to vector<1x8x8xf32>
    %174 = arith.mulf %169, %173 : vector<1x8x8xf32>
    %175 = arith.truncf %174 : vector<1x8x8xf32> to vector<1x8x8xbf16>
    %176 = vector.extract_strided_slice %8 {offsets = [0, 0, 28], sizes = [1, 8, 4], strides = [1, 1, 1]} : vector<1x8x32xbf16> to vector<1x8x4xbf16>
    "tpu.trace_start"() <{level = 10 : i32, message = "bqk,bkd->bqd"}> : () -> ()
    %cst_57 = arith.constant dense<0.000000e+00> : vector<1x8x4xf32>
    %177 = tpu.matmul %175, %176, %cst_57 {dimension_numbers = #tpu.dot_dimension_numbers<[2], [1], [1], [2], [0, 0, 0, 1, 1, 2], [0], [0]>} : vector<1x8x8xbf16>, vector<1x8x4xbf16>, vector<1x8x4xf32> -> vector<1x8x4xf32>
    "tpu.trace_stop"() : () -> ()
    %178 = arith.truncf %177 : vector<1x8x4xf32> to vector<1x8x4xbf16>
    %179 = vector.shape_cast %178 : vector<1x8x4xbf16> to vector<8x4xbf16>
    %c7 = arith.constant 7 : index
    %c0_58 = arith.constant 0 : index
    %c0_59 = arith.constant 0 : index
    %180 = vector.load %arg3[%c7, %c0_58, %c0_59] : memref<8x4x32xbf16, #tpu.memory_space<vmem>>, vector<1x4x32xbf16>
    %181 = vector.shape_cast %180 : vector<1x4x32xbf16> to vector<4x32xbf16>
    %cst_60 = arith.constant dense<0.000000e+00> : vector<8x32xf32>
    %182 = tpu.matmul %179, %181, %cst_60 {dimension_numbers = #tpu.dot_dimension_numbers<[1], [0], [0], [1], [0, 0, 1, 1], [], []>} : vector<8x4xbf16>, vector<4x32xbf16>, vector<8x32xf32> -> vector<8x32xf32>
    %183 = arith.addf %161, %182 : vector<8x32xf32>
    %c0_61 = arith.constant 0 : index
    %c0_62 = arith.constant 0 : index
    %184 = vector.load %arg4[%c0_61, %c0_62] : memref<1x32xf32, #tpu.memory_space<vmem>>, vector<1x32xf32>
    %185 = vector.broadcast %184 : vector<1x32xf32> to vector<8x32xf32>
    %186 = arith.addf %183, %185 : vector<8x32xf32>
    %187 = vector.shape_cast %186 : vector<8x32xf32> to vector<1x8x32xf32>
    %c0_63 = arith.constant 0 : index
    %c0_64 = arith.constant 0 : index
    %c0_65 = arith.constant 0 : index
    %188 = vector.load %arg5[%c0_63, %c0_64, %c0_65] : memref<1x8x32xf32, #tpu.memory_space<vmem>>, vector<1x8x32xf32>
    tpu.vector_store %arg5[%c0_63, %c0_64, %c0_65], %187 {strides = array<i32>} : memref<1x8x32xf32, #tpu.memory_space<vmem>>, vector<1x8x32xf32>,
    return
  }
  func.func @transform_0(%arg0: i32) -> (i32, i32, i32) {
    %c0_i32 = arith.constant 0 : i32
    %c0_i32_0 = arith.constant 0 : i32
    %c0_i32_1 = arith.constant 0 : i32
    return %arg0, %c0_i32, %c0_i32_0 : i32, i32, i32
  }
  func.func @transform_1(%arg0: i32) -> (i32, i32) {
    %c0_i32 = arith.constant 0 : i32
    %c0_i32_0 = arith.constant 0 : i32
    %c0_i32_1 = arith.constant 0 : i32
    return %c0_i32, %c0_i32_0 : i32, i32
  }
  func.func @transform_2(%arg0: i32) -> (i32, i32, i32) {
    %c0_i32 = arith.constant 0 : i32
    %c0_i32_0 = arith.constant 0 : i32
    %c0_i32_1 = arith.constant 0 : i32
    %c0_i32_2 = arith.constant 0 : i32
    return %c0_i32, %c0_i32_0, %c0_i32_1 : i32, i32, i32
  }
  func.func @transform_3(%arg0: i32) -> (i32, i32) {
    %c0_i32 = arith.constant 0 : i32
    %c0_i32_0 = arith.constant 0 : i32
    %c0_i32_1 = arith.constant 0 : i32
    return %c0_i32, %c0_i32_0 : i32, i32
  }
  func.func @transform_4(%arg0: i32) -> (i32, i32, i32) {
    %c0_i32 = arith.constant 0 : i32
    %c0_i32_0 = arith.constant 0 : i32
    %c0_i32_1 = arith.constant 0 : i32
    return %arg0, %c0_i32, %c0_i32_0 : i32, i32, i32
  }
}

</mosaic_0001>

<bundles_post_ra>
// kernel: tpu_custom_call.1
= control target key start
LH: loop header
LB: loop body
LE: loop exit
PB: predicated region body
PF: predicated region fallthrough
CT: control target
= control target key end

     0   :  { %9 = vsyncpa [#allocation3], 0  ;;  %s2634_s0 = inlined_call_operand.hbm [shape: bf16[2,8,32], index: 0, kind: input, shape index: {}]   ;;  %s2635_s1 = inlined_call_operand.hbm [shape: bf16[32,96], index: 1, kind: input, shape index: {}]   ;;  %s2636_s2 = inlined_call_operand.hbm [shape: bf16[8,4,32], index: 2, kind: input, shape index: {}]   ;;  %s2637_s3 = inlined_call_operand.vmem [shape: f32[1,32], index: 3, kind: input, shape index: {}]   ;;  %s2638_s4 = inlined_call_operand.hbm [shape: f32[2,8,32], index: 4, kind: output, shape index: {}]  }
   0x1   :  { %11 = vsyncpa [#allocation3 + $0x1], 0 }
   0x2   :  { %12 = vsyncpa [#allocation6], 0 }
   0x3   :  { %13 = vsyncpa [#allocation4], 0 }
   0x4   :  { %15 = vsyncpa [#allocation4 + $0x1], 0  ;;  %s2282_s15 = smov 0   ;;  %s2284_s16 = smov 0  }
   0x5   :  { %s2286_s17 = smov 0   ;;  %s2288_s18 = smov 0  }
   0x6 LB: > { %s2303_s19 = sadd.s32 4294967295, %s2222_s18   ;;  %s1697_s20 = sadd.s32 4294967294, %s2222_s18   ;;  %s2222_s18 = sphi %s2288_s18, %s2660_s18   ;;  %s2218_s17 = sphi %s2286_s17, %s2659_s17   ;;  %s2214_s16 = sphi %s2284_s16, %s2658_s16   ;;  %s2210_s15 = sphi %s2282_s15, %s2657_s15  }
   0x7   : > { %p41_p0 = scmp.ne.s32.totalorder %s2214_s16, %s2210_s15  ;;  %p2639_p1 = scmp.eq.s32.totalorder %s2303_s19, 0 }
   0x8   : > { %p134_p3 = scmp.eq.s32.totalorder %s1697_s20, 1  ;;  %p1698_p5 = scmp.ge.s32.totalorder %s2222_s18, 1 }
   0x9   : > { %p2312_p4 = por %p2639_p1, %p41_p0  ;;  %p141_p7 = scmp.lt.s32.totalorder %s2222_s18, 3 }
   0xa   : > { %p2317_p6 = por %p134_p3, %p41_p0  ;;  %s2224_s24 = smov [#allocation5]  }
   0xb   : > { %s2643_s21 = scalar_select %p2312_p4, 1, 0 }
   0xc   : > { %s2644_s22 = scalar_select %p2317_p6, 1, 0 }
   0xd   : > { %p2322_p8 = pnand %p1698_p5, %p141_p7  ;;  %s153_s25 = sshll.u32 %s2224_s24, 4  ;;  %s154_s25 = int_to_ptr.vmem [resolvable:$true] %s153_s25 }
   0xe   : > { %s2225_s27 = smov [#allocation7]   ;;  %s2085_s29 = scalar_lea.vmem %s154_s25, 256 }
   0xf   : > { %s2645_s23 = scalar_select %p2322_p8, 1, 0 }
  0x10   : > { %p1956_p9 = pneg %p2322_p8  ;;  %s166_s28 = sshll.u32 %s2225_s27, 4  ;;  %s167_s28 = int_to_ptr.vmem [resolvable:$true] %s166_s28 }
  0x11   : > { %p2086_p13 = scmp.ne.s32.totalorder %s154_s25, %s2085_s29  ;;  %p2093_p5 = scmp.lt.s32.totalorder %s154_s25, %s154_s25 }
  0x12   : > { %p2331_p11 = pnand %p1956_p9, %p2639_p1  ;;  %p2094_p7 = scmp.lt.s32.totalorder %s2085_s29, %s2085_s29 }
  0x14   : > { %p2076_p12 = pneg %p2331_p11  ;;  %p2095_p10 = por %p2094_p7, %p2093_p5 }
  0x16   : > { %p2088_p0 = pnand %p2086_p13, %p2076_p12 }
  0x18   : > { %p2089_p3 = pneg %p2088_p0 }
  0x1a   : > { %p2096_p9 = pnand %p2095_p10, %p2089_p3 }
  0x1c   : > { %2099 = shalt.err (!%p2096_p9)
}
  0x1d   : > { %s2226_s30 = smov 64   ;;  %s2227_s5 = smov 4  }
  0x1e   : > { %1959 = dma.hbm_to_vmem [thread:$0]  (!%p2331_p11), %s2635_s1, 256, %s154_s25, [#allocation6], %s2226_s30, %s2226_s30, %s2227_s5  }
  0x1f   : > { %s2111_s8 = scalar_lea.vmem %s167_s28, 256  ;;  %p2119_p2 = scmp.lt.s32.totalorder %s167_s28, %s167_s28 }
  0x20   : > { %p2112_p1 = scmp.ne.s32.totalorder %s167_s28, %s2111_s8  ;;  %p2120_p6 = scmp.lt.s32.totalorder %s2111_s8, %s2111_s8 }
  0x22   : > { %p2114_p13 = pnand %p2112_p1, %p2076_p12  ;;  %p2121_p5 = por %p2120_p6, %p2119_p2 }
  0x24   : > { %p2115_p0 = pneg %p2114_p13 }
  0x26   : > { %p2122_p10 = pnand %p2121_p5, %p2115_p0 }
  0x28   : > { %2125 = shalt.err (!%p2122_p10)
}
  0x29   : > { %s2228_s9 = smov 32   ;;  %s2229_s10 = smov 2  }
  0x2a   : > { %1962 = dma.hbm_to_vmem [thread:$0]  (!%p2331_p11), %s2636_s2, 256, %s167_s28, [#allocation6], %s2228_s9, %s2228_s9, %s2229_s10  }
  0x2b   : > { %s2354_s13 = sadd.s32 1, %s2222_s18   ;;  %s28_s20 = sadd.s32 1, %s2218_s17 }
  0x2c   : > { %s25_s14 = ssub.s32 %s2222_s18, %s2354_s13  ;;  %p35_p2 = scmp.ne.s32.totalorder %s2218_s17, %s2214_s16 }
  0x2d   : > { %p26_p1 = scmp.eq.s32.totalorder %s25_s14, 0  ;;  %p36_p6 = scmp.eq.s32.totalorder %s2222_s18, 0 }
  0x2e   : > { %p2647_p3 = scmp.eq.s32.totalorder %s2303_s19, 1  ;;  %p1973_p9 = scmp.lt.s32.totalorder %s2222_s18, 2 }
  0x2f   : > { %s2363_s24 = scalar_select %p26_p1, %s2218_s17, %s28_s20  }
  0x30   : > { %p37_p12 = por %p36_p6, %p35_p2  ;;  %p2367_p7 = por %p2647_p3, %p35_p2 }
  0x31   : > { %s183_s26 = sand.u32 1, %s2218_s17   ;;  %s1703_s28 = sshll.u32 %s2222_s18, 6 }
  0x32   : > { %s2648_s25 = scalar_select %p2367_p7, 1, 0 }
  0x33   : > { %s1702_s27 = sshll.u32 %s183_s26, 2  ;;  %s2377_s5 = scalar_lea.hbm %s2634_s0, %s1703_s28 }
  0x34   : > { %s187_s6 = scalar_lea.vmem [#allocation2], %s1702_s27  ;;  %p2379_p11 = pnand %p1973_p9, %p37_p12 }
  0x35   : > { %s194_s7 = sshll.u32 %s187_s6, 4  ;;  %s184_s9 = scalar_lea.sflag [#allocation3], %s183_s26  ;;  %s195_s7 = int_to_ptr.vmem [resolvable:$true] %s194_s7 }
  0x36   : > { %s2126_s10 = scalar_lea.hbm %s2377_s5, 64  ;;  %p2128_p0 = pneg %p2379_p11 }
  0x37   : > { %p2127_p13 = scmp.ne.s32.totalorder %s2377_s5, %s2126_s10  ;;  %s2131_s14 = scalar_lea.hbm %s2634_s0, 128 }
  0x38   : > { %p2132_p1 = scmp.lt.s32.totalorder %s2377_s5, %s2634_s0  ;;  %p2133_p2 = scmp.lt.s32.totalorder %s2131_s14, %s2126_s10 }
  0x39   : > { %p2129_p5 = pnand %p2128_p0, %p2127_p13 }
  0x3a   : > { %p2134_p6 = por %p2133_p2, %p2132_p1 }
  0x3b   : > { %p2130_p10 = pneg %p2129_p5 }
  0x3d   : > { %p2135_p12 = pnand %p2134_p6, %p2130_p10 }
  0x3f   : > { %2138 = shalt.err (!%p2135_p12)
}
  0x40   : > { %s2139_s28 = scalar_lea.vmem %s195_s7, 64  ;;  %s2230_s26 = smov [#allocation2]  }
  0x41   : > { %p2140_p3 = scmp.ne.s32.totalorder %s195_s7, %s2139_s28  ;;  %s2144_s29 = sshll.u32 %s2230_s26, 4  ;;  %s2145_s29 = int_to_ptr.vmem [resolvable:$false] %s2144_s29 }
  0x42   : > { %s2146_s30 = scalar_lea.vmem %s2145_s29, 128  ;;  %p2147_p13 = scmp.lt.s32.totalorder %s195_s7, %s2145_s29 }
  0x43   : > { %p2142_p9 = pnand %p2140_p3, %p2128_p0  ;;  %p2148_p5 = scmp.lt.s32.totalorder %s2146_s30, %s2139_s28 }
  0x45   : > { %p2143_p7 = pneg %p2142_p9  ;;  %p2149_p4 = por %p2148_p5, %p2147_p13 }
  0x47   : > { %p2150_p8 = pnand %p2149_p4, %p2143_p7 }
  0x49   : > { %2153 = shalt.err (!%p2150_p8)
}
  0x4a   : > { %1966 = dma.hbm_to_vmem [thread:$0]  (!%p2379_p11), %s2377_s5, 64, %s195_s7, %s184_s9  }
  0x4b   : > { %p2650_p10 = scmp.ne.s32.totalorder %s2645_s23, 0 }
  0x4c   : > { %s2400_s6 = sand.u32 (!%p2650_p10), 1, %s2214_s16   ;;  %p2651_p0 = scmp.ne.s32.totalorder (!%p2650_p10), %s2643_s21, 0 }
  0x4d   : > { %203 = sbr.rel (%p2650_p10) target bundleno = 4620 (0x120c), region = 36  ;;  %s1705_s10 = sshll.u32 (!%p2650_p10), %s2400_s6, 2 }
  0x4e   : > { %s206_s11 = scalar_lea.sflag (!%p2650_p10), [#allocation3], %s2400_s6  ;;  %s209_s12 = scalar_lea.vmem (!%p2650_p10), [#allocation2], %s1705_s10 }
  0x52   : > { %2197 = dma.done.wait (%p2651_p0), %s206_s11, 64  }
  0x53   : > { %2199 = vsyncadd (%p2651_p0), %s206_s11, 4294967232  ;;  %p2652_p4 = scmp.eq.s32.totalorder %s2303_s19, 0 }
  0x55   : > { %2201 = dma.done.wait (%p2652_p4), [#allocation6], 512   ;;  %p2653_p8 = pmov %p2652_p4 }
  0x56   : > { %v2231_v0 = vmov 0.0   ;;  %vm2232_vm0 = vmmov 0   ;;  %v2040_v1 = vld [vmem:[#allocation5 + $0x8] sm:$0xff]   ;;  %v2041_v2 = vld [vmem:[#allocation5] sm:$0xff]   ;;  %v243_v3 = vld [vmem:[%s209_s12] sm:$0xf] }
  0x57   : > { %2203 = vsyncadd (%p2653_p8), [#allocation6], 4294966784  ;;  %1792 = vmatprep.subr.bf16.mxu0 %v2231_v0  ;;  %1796 = vmatprep.mubr.msk.bf16.mxu0 %vm2232_vm0, %v2231_v0  ;;  %vm260_vm1 = vcmask 261120   ;;  %s2233_s21 = smov 124   ;;  %s2234_s23 = smov 96   ;;  %vm308_vm2 = vcmask 31744  }
  0x58   : > { %1800 = vmatprep.subr.bf16.mxu1 %v2231_v0  ;;  %1802 = vmatprep.mubr.msk.bf16.mxu1 %vm2232_vm0, %v2231_v0  ;;  %s2235_s5 = smov 92   ;;  %vm355_vm3 = vcmask 64512   ;;  %s2236_s7 = smov 64   ;;  %vm373_vm4 = vcmask 1043456   ;;  %v418_v46 = vld [vmem:[#allocation7] sm:$0x3] }
  0x59   : > { %1793 = vmatpush3.bf16.msra.mxu0 %v2040_v1  ;;  %s2237_s8 = smov 60   ;;  %s2238_s9 = smov 120   ;;  %vm535_vm5 = vcmask 1041408   ;;  %v531_v48 = vld [vmem:[#allocation7 + $0x2] sm:$0x3] }
  0x5a   : > { %1794 = vmatprep.subr.bf16.mxu0 %v2231_v0  ;;  %s2239_s14 = smov 88   ;;  %v583_v47 = vsel %vm535_vm5, %v418_v46, 0  ;;  %v537_v49 = vsel %vm535_vm5, %v531_v48, 0  ;;  %s2240_s20 = smov 84  }
  0x5b   : > { %s2241_s27 = smov 116   ;;  %s2242_s28 = smov 56  }
  0x5c   : > { %s2243_s26 = smov 52   ;;  %s2244_s29 = smov 112  }
  0x5d   : > { %1795 = vmatpush3.bf16.msra.mxu0 %v2041_v2  ;;  %s2245_s30 = smov 80   ;;  %s2246_s10 = smov 76  }
  0x5e   : > { %1806 = vmatprep.subr.bf16.mxu0 %v2231_v0  ;;  %s2247_s11 = smov 108   ;;  %s2248_s12 = smov 48  }
  0x5f   : > { %p2654_p11 = scmp.ne.s32.totalorder %s2648_s25, 0 }
  0x60   : > { %1797 = vmatmul.mubr.msk.bf16.vlgmr.msra.gmra.mxu0 %vm260_vm1, %v243_v3 }
  0x61   : > { %1808 = vmatprep.mubr.msk.bf16.mxu0 %vm2232_vm0, %v2231_v0 }
 0x120   : > { %v298_v4 = vpop.f32.mrf.mxu0 }
 0x121   : > { %v2423_v5 = vpack.c.bf16 %v298_v4, %v298_v4 }
 0x122   : > { %v1798_v6 = vpop.f32.mrf.mxu0 }
 0x123   : > { %419 = vrot.lane.b32.xlu1 %v2423_v5, %s2233_s21  ;;  %306 = vrot.lane.b32.xlu0 %v2423_v5, %s2234_s23  ;;  %s2249_s21 = smov 44   ;;  %s2250_s23 = smov 104  }
 0x124   : > { %v301_v7 = vpop.f32.mrf.mxu0 }
 0x126   : > { %v1799_v8 = vpop.f32.mrf.mxu0 }
 0x127   : > { %421 = vrot.lane.b32.xlu0 %v2423_v5, %s2235_s5  ;;  %s2251_s5 = smov 72  }
 0x195   : > { %v307_v9 = vpop.permute.xlu0 %306  ;;  %v420_v13 = vpop.permute.xlu1 %419 }
 0x196   : > { %v313_v10 = vsel %vm308_vm2, %v307_v9, 0 }
 0x197   : > { %1801 = vmatpush3.bf16.xpose.msra.mxu1 %v313_v10 }
 0x198   : > { %1812 = vmatprep.subr.bf16.mxu1 %v2231_v0 }
 0x199   : > { %v422_v11 = vpop.permute.xlu0 %421 }
 0x19a   : > { %v427_v12 = vsel %vm308_vm2, %v422_v11, 0 }
 0x19e   : > { %1803 = vmatmul.mubr.msk.bf16.vlgmr.msra.gmra.mxu1 %vm308_vm2, %v2423_v5 }
 0x19f   : > { %1813 = vmatpush3.bf16.xpose.msra.mxu1 %v427_v12  ;;  %1814 = vmatprep.mubr.msk.bf16.mxu1 %vm2232_vm0, %v2231_v0 }
 0x1a0   : > { %1824 = vmatprep.subr.bf16.mxu1 %v2231_v0 }
 0x1a6   : > { %1815 = vmatmul.mubr.msk.bf16.vlgmr.msra.gmra.mxu1 %vm308_vm2, %v420_v13 }
 0x1a7   : > { %1826 = vmatprep.mubr.msk.bf16.mxu1 %vm2232_vm0, %v2231_v0  ;;  %1825 = vmatpush3.bf16.msra.mxu1 %v537_v49 }
 0x1a8   : > { %1836 = vmatprep.subr.bf16.mxu1 %v2231_v0 }
 0x25e   : > { %v349_v14 = vpop.f32.mrf.mxu1 }
 0x25f   : > { %v356_v15 = vsel %vm355_vm3, %v349_v14, -inf }
 0x260   : > { %357 = vmax.xlane.f32.xlu1 %v356_v15  ;;  %v1804_v16 = vpop.f32.mrf.mxu1 }
 0x262   : > { %v352_v17 = vpop.f32.mrf.mxu1 }
 0x264   : > { %v1805_v18 = vpop.f32.mrf.mxu1 }
 0x266   : > { %v463_v19 = vpop.f32.mrf.mxu1 }
 0x267   : > { %v469_v20 = vsel %vm355_vm3, %v463_v19, -inf }
 0x268   : > { %470 = vmax.xlane.f32.xlu0 %v469_v20  ;;  %v1816_v21 = vpop.f32.mrf.mxu1 }
 0x26a   : > { %v466_v22 = vpop.f32.mrf.mxu1 }
 0x26c   : > { %v1817_v23 = vpop.f32.mrf.mxu1 }
 0x2e9   : > { %v358_v24 = vpop.xlane.xlu1 %357 }
 0x2ea   : > { %v359_v25 = vsub.f32 %v349_v14, %v358_v24 }
 0x2ec   : > { %v360_v26 = vmul.f32 1.442695, %v359_v25 }
 0x2ee   : > { %2042 = vpow2.f32 %v360_v26 }
 0x2f1   : > { %v471_v27 = vpop.xlane.xlu0 %470 }
 0x2f2   : > { %v472_v28 = vsub.f32 %v463_v19, %v471_v27 }
 0x2f4   : > { %v473_v29 = vmul.f32 1.442695, %v472_v28 }
 0x2f6   : > { %2044 = vpow2.f32 %v473_v29  ;;  %v737_v29 = vld [vmem:[#allocation7 + $0x4] sm:$0x3] }
 0x2fb   : > { %v2043_v30 = vpop.eup %2042 }
 0x2fc   : > { %v362_v31 = vsel %vm355_vm3, %v2043_v30, 0.0 }
 0x2fd   : > { %363 = vadd.xlane.f32.xlu0 %v362_v31 }
 0x303   : > { %v2045_v32 = vpop.eup %2044 }
 0x304   : > { %v475_v33 = vsel %vm355_vm3, %v2045_v32, 0.0 }
 0x305   : > { %476 = vadd.xlane.f32.xlu1 %v475_v33 }
 0x313   : > { %368 = vrot.lane.b32.xlu0 %v2423_v5, %s2236_s7  ;;  %s2252_s7 = smov 68  }
 0x316   : > { %481 = vrot.lane.b32.xlu1 %v2423_v5, %s2237_s8  ;;  %s2253_s8 = smov 100  }
 0x317   : > { %625 = vrot.lane.b32.xlu0 %v2423_v5, %s2238_s9  ;;  %s2254_s9 = smov 40  }
 0x31a   : > { %627 = vrot.lane.b32.xlu1 %v2423_v5, %s2239_s14  ;;  %s2255_s14 = smov 36  }
 0x386   : > { %v364_v34 = vpop.xlane.xlu0 %363 }
 0x387   : > { %2046 = vrcp.f32 %v364_v34 }
 0x38a   : > { %v369_v35 = vpop.permute.xlu0 %368 }
 0x38b   : > { %v375_v36 = vsel %vm373_vm4, %v369_v35, 0 }
 0x38c   : > { %1807 = vmatpush3.bf16.msra.mxu0 %v375_v36 }
 0x38d   : > { %1818 = vmatprep.subr.bf16.mxu0 %v2231_v0 }
 0x38e   : > { %v477_v37 = vpop.xlane.xlu1 %476  ;;  %v626_v62 = vpop.permute.xlu0 %625 }
 0x38f   : > { %2048 = vrcp.f32 %v477_v37 }
 0x392   : > { %v482_v40 = vpop.permute.xlu1 %481 }
 0x393   : > { %v487_v42 = vsel %vm373_vm4, %v482_v40, 0 }
 0x394   : > { %v2047_v38 = vpop.eup %2046 }
 0x395   : > { %v366_v39 = vmul.f32 %v2047_v38, %v2043_v30  ;;  %v742_v30 = vsel %vm535_vm5, %v737_v29, 0  ;;  %v1057_v29 = vld [vmem:[#allocation7 + $0x8] sm:$0x3] }
 0x396   : > { %v628_v55 = vpop.permute.xlu1 %627 }
 0x397   : > { %v367_v41 = vpack.c.bf16 %v366_v39, %v366_v39  ;;  %v633_v59 = vsel %vm308_vm2, %v628_v55, 0 }
 0x399   : > { %1809 = vmatmul.mubr.msk.bf16.vlgmr.msra.gmra.mxu0 %vm355_vm3, %v367_v41 }
 0x39a   : > { %1819 = vmatpush3.bf16.msra.mxu0 %v487_v42  ;;  %1820 = vmatprep.mubr.msk.bf16.mxu0 %vm2232_vm0, %v2231_v0 }
 0x39b   : > { %1830 = vmatprep.subr.bf16.mxu0 %v2231_v0 }
 0x39c   : > { %v2049_v43 = vpop.eup %2048 }
 0x39d   : > { %v479_v44 = vmul.f32 %v2049_v43, %v2045_v32 }
 0x39f   : > { %v480_v45 = vpack.c.bf16 %v479_v44, %v479_v44 }
 0x3a1   : > { %1821 = vmatmul.mubr.msk.bf16.vlgmr.msra.gmra.mxu0 %vm355_vm3, %v480_v45 }
 0x3a2   : > { %1832 = vmatprep.mubr.msk.bf16.mxu0 %vm2232_vm0, %v2231_v0  ;;  %1831 = vmatpush3.bf16.msra.mxu0 %v583_v47 }
 0x3a3   : > { %1842 = vmatprep.subr.bf16.mxu0 %v2231_v0 }
 0x459   : > { %v411_v50 = vpop.f32.mrf.mxu0 }
 0x45a   : > { %v417_v51 = vpack.c.bf16 %v411_v50, %v411_v50 }
 0x45b   : > { %v1810_v52 = vpop.f32.mrf.mxu0 }
 0x45c   : > { %1833 = vmatmul.mubr.msk.bf16.vlgmr.msra.gmra.mxu0 %vm308_vm2, %v417_v51 }
 0x45d   : > { %v414_v53 = vpop.f32.mrf.mxu0  ;;  %1844 = vmatprep.mubr.msk.bf16.mxu0 %vm2232_vm0, %v2231_v0 }
 0x45f   : > { %v1811_v54 = vpop.f32.mrf.mxu0 }
 0x461   : > { %v523_v56 = vpop.f32.mrf.mxu0 }
 0x462   : > { %v529_v57 = vpack.c.bf16 %v523_v56, %v523_v56 }
 0x463   : > { %v1822_v58 = vpop.f32.mrf.mxu0 }
 0x464   : > { %1827 = vmatmul.mubr.msk.bf16.vlgmr.msra.gmra.mxu1 %vm308_vm2, %v529_v57 }
 0x465   : > { %1837 = vmatpush3.bf16.xpose.msra.mxu1 %v633_v59  ;;  %v526_v60 = vpop.f32.mrf.mxu0  ;;  %1838 = vmatprep.mubr.msk.bf16.mxu1 %vm2232_vm0, %v2231_v0 }
 0x466   : > { %1848 = vmatprep.subr.bf16.mxu1 %v2231_v0  ;;  %v897_v60 = vld [vmem:[#allocation7 + $0x6] sm:$0x3] }
 0x467   : > { %v1823_v61 = vpop.f32.mrf.mxu0 }
 0x468   : > { %v902_v61 = vsel %vm535_vm5, %v897_v60, 0  ;;  %v1217_v60 = vld [vmem:[#allocation7 + $0xa] sm:$0x3] }
 0x46c   : > { %1839 = vmatmul.mubr.msk.bf16.vlgmr.msra.gmra.mxu1 %vm308_vm2, %v626_v62 }
 0x46d   : > { %1850 = vmatprep.mubr.msk.bf16.mxu1 %vm2232_vm0, %v2231_v0  ;;  %1849 = vmatpush3.bf16.msra.mxu1 %v742_v30  ;;  %v1062_v30 = vsel %vm535_vm5, %v1057_v29, 0  ;;  %v1377_v29 = vld [vmem:[#allocation7 + $0xc] sm:$0x3] }
 0x46e   : > { %1860 = vmatprep.subr.bf16.mxu1 %v2231_v0 }
 0x51c   : > { %v619_v63 = vpop.f32.mrf.mxu0 }
 0x51e   : > { %v1834_v1 = vpop.f32.mrf.mxu0 }
 0x520   : > { %v622_v2 = vpop.f32.mrf.mxu0 }
 0x522   : > { %v1835_v3 = vpop.f32.mrf.mxu0 }
 0x524   : > { %v573_v4 = vpop.f32.mrf.mxu1 }
 0x525   : > { %v2472_v6 = vadd.f32 %v619_v63, %v573_v4 }
 0x526   : > { %v1828_v7 = vpop.f32.mrf.mxu1 }
 0x528   : > { %v576_v8 = vpop.f32.mrf.mxu1 }
 0x52a   : > { %v1829_v9 = vpop.f32.mrf.mxu1 }
 0x52c   : > { %v669_v10 = vpop.f32.mrf.mxu1 }
 0x52d   : > { %v675_v11 = vsel %vm355_vm3, %v669_v10, -inf }
 0x52e   : > { %676 = vmax.xlane.f32.xlu1 %v675_v11  ;;  %v1840_v12 = vpop.f32.mrf.mxu1 }
 0x530   : > { %v672_v13 = vpop.f32.mrf.mxu1 }
 0x532   : > { %v1841_v14 = vpop.f32.mrf.mxu1 }
 0x53f   : > { %787 = vrot.lane.b32.xlu1 %v2423_v5, %s2240_s20  ;;  %s1708_s20 = sshll.u32 %s2400_s6, 3 }
 0x543   : > { %785 = vrot.lane.b32.xlu1 %v2423_v5, %s2241_s27 }
 0x5b7   : > { %v677_v15 = vpop.xlane.xlu1 %676 }
 0x5b8   : > { %v678_v16 = vsub.f32 %v669_v10, %v677_v15 }
 0x5ba   : > { %v679_v17 = vmul.f32 1.442695, %v678_v16 }
 0x5bb   : > { %v788_v25 = vpop.permute.xlu1 %787 }
 0x5bc   : > { %2050 = vpow2.f32 %v679_v17  ;;  %v793_v27 = vsel %vm308_vm2, %v788_v25, 0 }
 0x5bf   : > { %v786_v28 = vpop.permute.xlu1 %785 }
 0x5c9   : > { %v2051_v18 = vpop.eup %2050 }
 0x5ca   : > { %v681_v19 = vsel %vm355_vm3, %v2051_v18, 0.0 }
 0x5cb   : > { %682 = vadd.xlane.f32.xlu0 %v681_v19 }
 0x5e1   : > { %687 = vrot.lane.b32.xlu0 %v2423_v5, %s2242_s28 }
 0x654   : > { %v683_v20 = vpop.xlane.xlu0 %682 }
 0x655   : > { %2052 = vrcp.f32 %v683_v20 }
 0x658   : > { %v688_v21 = vpop.permute.xlu0 %687 }
 0x659   : > { %v693_v22 = vsel %vm373_vm4, %v688_v21, 0 }
 0x65a   : > { %1843 = vmatpush3.bf16.msra.mxu0 %v693_v22 }
 0x65b   : > { %1854 = vmatprep.subr.bf16.mxu0 %v2231_v0 }
 0x662   : > { %v2053_v23 = vpop.eup %2052 }
 0x663   : > { %v685_v24 = vmul.f32 %v2053_v23, %v2051_v18 }
 0x665   : > { %v686_v26 = vpack.c.bf16 %v685_v24, %v685_v24 }
 0x667   : > { %1845 = vmatmul.mubr.msk.bf16.vlgmr.msra.gmra.mxu0 %vm355_vm3, %v686_v26 }
 0x668   : > { %1855 = vmatpush3.bf16.xpose.msra.mxu0 %v793_v27  ;;  %1856 = vmatprep.mubr.msk.bf16.mxu0 %vm2232_vm0, %v2231_v0 }
 0x669   : > { %1866 = vmatprep.subr.bf16.mxu0 %v2231_v0 }
 0x66f   : > { %1857 = vmatmul.mubr.msk.bf16.vlgmr.msra.gmra.mxu0 %vm308_vm2, %v786_v28 }
 0x670   : > { %1868 = vmatprep.mubr.msk.bf16.mxu0 %vm2232_vm0, %v2231_v0  ;;  %1867 = vmatpush3.bf16.msra.mxu0 %v902_v61  ;;  %v1222_v61 = vsel %vm535_vm5, %v1217_v60, 0 }
 0x671   : > { %1878 = vmatprep.subr.bf16.mxu0 %v2231_v0 }
 0x727   : > { %v729_v31 = vpop.f32.mrf.mxu0 }
 0x728   : > { %v735_v32 = vpack.c.bf16 %v729_v31, %v729_v31 }
 0x729   : > { %v1846_v33 = vpop.f32.mrf.mxu0 }
 0x72a   : > { %1851 = vmatmul.mubr.msk.bf16.vlgmr.msra.gmra.mxu1 %vm308_vm2, %v735_v32 }
 0x72b   : > { %v732_v34 = vpop.f32.mrf.mxu0  ;;  %1862 = vmatprep.mubr.msk.bf16.mxu1 %vm2232_vm0, %v2231_v0 }
 0x72d   : > { %v1847_v35 = vpop.f32.mrf.mxu0 }
 0x72f   : > { %v829_v36 = vpop.f32.mrf.mxu0 }
 0x730   : > { %v835_v37 = vsel %vm355_vm3, %v829_v36, -inf }
 0x731   : > { %836 = vmax.xlane.f32.xlu0 %v835_v37  ;;  %v1858_v38 = vpop.f32.mrf.mxu0 }
 0x733   : > { %v832_v39 = vpop.f32.mrf.mxu0 }
 0x735   : > { %v1859_v40 = vpop.f32.mrf.mxu0 }
 0x747   : > { %847 = vrot.lane.b32.xlu0 %v2423_v5, %s2243_s26  ;;  %s1738_s26 = sshll.u32 %s2303_s19, 7  ;;  %s1595_s19 = scalar_lea.sflag [#allocation4], %s2400_s6 }
 0x74b   : > { %945 = vrot.lane.b32.xlu0 %v2423_v5, %s2244_s29  ;;  %s241_s29 = scalar_lea.vmem [#allocation8], %s1708_s20 }
 0x7ba   : > { %v837_v41 = vpop.xlane.xlu0 %836 }
 0x7bb   : > { %v838_v42 = vsub.f32 %v829_v36, %v837_v41 }
 0x7bd   : > { %v839_v43 = vmul.f32 1.442695, %v838_v42 }
 0x7be   : > { %v848_v44 = vpop.permute.xlu0 %847 }
 0x7bf   : > { %2054 = vpow2.f32 %v839_v43  ;;  %v853_v45 = vsel %vm373_vm4, %v848_v44, 0 }
 0x7c0   : > { %1861 = vmatpush3.bf16.msra.mxu1 %v853_v45 }
 0x7c1   : > { %1872 = vmatprep.subr.bf16.mxu1 %v2231_v0 }
 0x7c2   : > { %v946_v59 = vpop.permute.xlu0 %945 }
 0x7cc   : > { %v2055_v46 = vpop.eup %2054 }
 0x7cd   : > { %v841_v47 = vsel %vm355_vm3, %v2055_v46, 0.0 }
 0x7ce   : > { %842 = vadd.xlane.f32.xlu1 %v841_v47 }
 0x7df   : > { %947 = vrot.lane.b32.xlu1 %v2423_v5, %s2245_s30  ;;  %s1608_s30 = sshll.u32 %s241_s29, 4  ;;  %s2592_s30 = int_to_ptr.vmem [resolvable:$true] %s1608_s30 }
 0x7ea   : > { %v778_v48 = vpop.f32.mrf.mxu1 }
 0x7eb   : > { %v784_v49 = vadd.f32 %v778_v48, %v2472_v6 }
 0x7ec   : > { %v1852_v50 = vpop.f32.mrf.mxu1 }
 0x7ee   : > { %v781_v51 = vpop.f32.mrf.mxu1 }
 0x7f0   : > { %v1853_v52 = vpop.f32.mrf.mxu1 }
 0x857   : > { %v843_v53 = vpop.xlane.xlu1 %842 }
 0x858   : > { %2056 = vrcp.f32 %v843_v53 }
 0x85b   : > { %v948_v56 = vpop.permute.xlu1 %947 }
 0x85c   : > { %v953_v58 = vsel %vm308_vm2, %v948_v56, 0 }
 0x865   : > { %v2057_v54 = vpop.eup %2056 }
 0x866   : > { %v845_v55 = vmul.f32 %v2057_v54, %v2055_v46 }
 0x868   : > { %v846_v57 = vpack.c.bf16 %v845_v55, %v845_v55 }
 0x86a   : > { %1863 = vmatmul.mubr.msk.bf16.vlgmr.msra.gmra.mxu1 %vm355_vm3, %v846_v57 }
 0x86b   : > { %1873 = vmatpush3.bf16.xpose.msra.mxu1 %v953_v58  ;;  %1874 = vmatprep.mubr.msk.bf16.mxu1 %vm2232_vm0, %v2231_v0 }
 0x86c   : > { %1884 = vmatprep.subr.bf16.mxu1 %v2231_v0 }
 0x872   : > { %1875 = vmatmul.mubr.msk.bf16.vlgmr.msra.gmra.mxu1 %vm308_vm2, %v946_v59 }
 0x873   : > { %1886 = vmatprep.mubr.msk.bf16.mxu1 %vm2232_vm0, %v2231_v0  ;;  %1885 = vmatpush3.bf16.msra.mxu1 %v1062_v30  ;;  %v1382_v30 = vsel %vm535_vm5, %v1377_v29, 0 }
 0x874   : > { %1896 = vmatprep.subr.bf16.mxu1 %v2231_v0 }
 0x92a   : > { %v889_v62 = vpop.f32.mrf.mxu1 }
 0x92b   : > { %v895_v63 = vpack.c.bf16 %v889_v62, %v889_v62 }
 0x92c   : > { %v1864_v1 = vpop.f32.mrf.mxu1 }
 0x92d   : > { %1869 = vmatmul.mubr.msk.bf16.vlgmr.msra.gmra.mxu0 %vm308_vm2, %v895_v63 }
 0x92e   : > { %v892_v2 = vpop.f32.mrf.mxu1  ;;  %1880 = vmatprep.mubr.msk.bf16.mxu0 %vm2232_vm0, %v2231_v0 }
 0x930   : > { %v1865_v3 = vpop.f32.mrf.mxu1 }
 0x932   : > { %v989_v4 = vpop.f32.mrf.mxu1 }
 0x933   : > { %v995_v6 = vsel %vm355_vm3, %v989_v4, -inf }
 0x934   : > { %996 = vmax.xlane.f32.xlu1 %v995_v6  ;;  %v1876_v7 = vpop.f32.mrf.mxu1 }
 0x936   : > { %v992_v8 = vpop.f32.mrf.mxu1 }
 0x938   : > { %v1877_v9 = vpop.f32.mrf.mxu1 }
 0x945   : > { %1107 = vrot.lane.b32.xlu1 %v2423_v5, %s2246_s10 }
 0x949   : > { %1105 = vrot.lane.b32.xlu1 %v2423_v5, %s2247_s11 }
 0x9bd   : > { %v997_v10 = vpop.xlane.xlu1 %996 }
 0x9be   : > { %v998_v11 = vsub.f32 %v989_v4, %v997_v10 }
 0x9c0   : > { %v999_v12 = vmul.f32 1.442695, %v998_v11 }
 0x9c1   : > { %v1108_v25 = vpop.permute.xlu1 %1107 }
 0x9c2   : > { %2058 = vpow2.f32 %v999_v12  ;;  %v1113_v27 = vsel %vm308_vm2, %v1108_v25, 0 }
 0x9c5   : > { %v1106_v28 = vpop.permute.xlu1 %1105 }
 0x9cf   : > { %v2059_v13 = vpop.eup %2058 }
 0x9d0   : > { %v1001_v14 = vsel %vm355_vm3, %v2059_v13, 0.0 }
 0x9d1   : > { %1002 = vadd.xlane.f32.xlu0 %v1001_v14 }
 0x9e7   : > { %1007 = vrot.lane.b32.xlu0 %v2423_v5, %s2248_s12  ;;  %s2590_s12 = scalar_lea.hbm %s2638_s4, %s1738_s26 }
 0x9ed   : > { %v938_v15 = vpop.f32.mrf.mxu0 }
 0x9ee   : > { %v944_v16 = vadd.f32 %v938_v15, %v784_v49 }
 0x9ef   : > { %v1870_v17 = vpop.f32.mrf.mxu0 }
 0x9f1   : > { %v941_v18 = vpop.f32.mrf.mxu0 }
 0x9f3   : > { %v1871_v19 = vpop.f32.mrf.mxu0 }
 0xa5a   : > { %v1003_v20 = vpop.xlane.xlu0 %1002 }
 0xa5b   : > { %2060 = vrcp.f32 %v1003_v20 }
 0xa5e   : > { %v1008_v21 = vpop.permute.xlu0 %1007 }
 0xa5f   : > { %v1013_v22 = vsel %vm373_vm4, %v1008_v21, 0 }
 0xa60   : > { %1879 = vmatpush3.bf16.msra.mxu0 %v1013_v22 }
 0xa61   : > { %1890 = vmatprep.subr.bf16.mxu0 %v2231_v0 }
 0xa68   : > { %v2061_v23 = vpop.eup %2060 }
 0xa69   : > { %v1005_v24 = vmul.f32 %v2061_v23, %v2059_v13 }
 0xa6b   : > { %v1006_v26 = vpack.c.bf16 %v1005_v24, %v1005_v24 }
 0xa6d   : > { %1881 = vmatmul.mubr.msk.bf16.vlgmr.msra.gmra.mxu0 %vm355_vm3, %v1006_v26 }
 0xa6e   : > { %1891 = vmatpush3.bf16.xpose.msra.mxu0 %v1113_v27  ;;  %1892 = vmatprep.mubr.msk.bf16.mxu0 %vm2232_vm0, %v2231_v0 }
 0xa6f   : > { %1902 = vmatprep.subr.bf16.mxu0 %v2231_v0 }
 0xa75   : > { %1893 = vmatmul.mubr.msk.bf16.vlgmr.msra.gmra.mxu0 %vm308_vm2, %v1106_v28 }
 0xa76   : > { %1904 = vmatprep.mubr.msk.bf16.mxu0 %vm2232_vm0, %v2231_v0  ;;  %1903 = vmatpush3.bf16.msra.mxu0 %v1222_v61 }
 0xa77   : > { %1914 = vmatprep.subr.bf16.mxu0 %v2231_v0 }
 0xb2d   : > { %v1049_v31 = vpop.f32.mrf.mxu0 }
 0xb2e   : > { %v1055_v32 = vpack.c.bf16 %v1049_v31, %v1049_v31 }
 0xb2f   : > { %v1882_v33 = vpop.f32.mrf.mxu0 }
 0xb30   : > { %1887 = vmatmul.mubr.msk.bf16.vlgmr.msra.gmra.mxu1 %vm308_vm2, %v1055_v32 }
 0xb31   : > { %v1052_v34 = vpop.f32.mrf.mxu0  ;;  %1898 = vmatprep.mubr.msk.bf16.mxu1 %vm2232_vm0, %v2231_v0 }
 0xb33   : > { %v1883_v35 = vpop.f32.mrf.mxu0 }
 0xb35   : > { %v1149_v36 = vpop.f32.mrf.mxu0 }
 0xb36   : > { %v1155_v37 = vsel %vm355_vm3, %v1149_v36, -inf }
 0xb37   : > { %1156 = vmax.xlane.f32.xlu0 %v1155_v37  ;;  %v1894_v38 = vpop.f32.mrf.mxu0 }
 0xb39   : > { %v1152_v39 = vpop.f32.mrf.mxu0 }
 0xb3b   : > { %v1895_v40 = vpop.f32.mrf.mxu0 }
 0xb4d   : > { %1167 = vrot.lane.b32.xlu0 %v2423_v5, %s2249_s21  ;;  %s2154_s21 = scalar_lea.vmem %s2592_s30, 128 }
 0xb4e   : > { %p2155_p7 = scmp.ne.s32.totalorder %s2592_s30, %s2154_s21 }
 0xb50   : > { %p2156_p1 = pnand %p2155_p7, %p2654_p11 }
 0xb51   : > { %1265 = vrot.lane.b32.xlu0 %v2423_v5, %s2250_s23  ;;  %s2256_s23 = smov [#allocation8]  }
 0xb52   : > { %p2157_p2 = pneg %p2156_p1 }
 0xbc0   : > { %v1157_v41 = vpop.xlane.xlu0 %1156 }
 0xbc1   : > { %v1158_v42 = vsub.f32 %v1149_v36, %v1157_v41 }
 0xbc3   : > { %v1159_v43 = vmul.f32 1.442695, %v1158_v42 }
 0xbc4   : > { %v1168_v44 = vpop.permute.xlu0 %1167 }
 0xbc5   : > { %2062 = vpow2.f32 %v1159_v43  ;;  %v1173_v45 = vsel %vm373_vm4, %v1168_v44, 0 }
 0xbc6   : > { %1897 = vmatpush3.bf16.msra.mxu1 %v1173_v45 }
 0xbc7   : > { %1908 = vmatprep.subr.bf16.mxu1 %v2231_v0 }
 0xbc8   : > { %v1266_v59 = vpop.permute.xlu0 %1265 }
 0xbd2   : > { %v2063_v46 = vpop.eup %2062 }
 0xbd3   : > { %v1161_v47 = vsel %vm355_vm3, %v2063_v46, 0.0 }
 0xbd4   : > { %1162 = vadd.xlane.f32.xlu1 %v1161_v47 }
 0xbe5   : > { %1267 = vrot.lane.b32.xlu1 %v2423_v5, %s2251_s5  ;;  %s2158_s5 = sshll.u32 %s2256_s23, 4  ;;  %s2159_s5 = int_to_ptr.vmem [resolvable:$false] %s2158_s5 }
 0xbe6   : > { %p2161_p6 = scmp.lt.s32.totalorder %s2592_s30, %s2159_s5 }
 0xbf0   : > { %v1098_v48 = vpop.f32.mrf.mxu1 }
 0xbf1   : > { %v1104_v49 = vadd.f32 %v1098_v48, %v944_v16  ;;  %v1537_v48 = vld [vmem:[#allocation7 + $0xe] sm:$0x3] }
 0xbf2   : > { %v1888_v50 = vpop.f32.mrf.mxu1 }
 0xbf3   : > { %v1542_v50 = vsel %vm535_vm5, %v1537_v48, 0 }
 0xbf4   : > { %v1101_v51 = vpop.f32.mrf.mxu1 }
 0xbf6   : > { %v1889_v52 = vpop.f32.mrf.mxu1 }
 0xc5d   : > { %v1163_v53 = vpop.xlane.xlu1 %1162 }
 0xc5e   : > { %2064 = vrcp.f32 %v1163_v53 }
 0xc61   : > { %v1268_v56 = vpop.permute.xlu1 %1267 }
 0xc62   : > { %v1273_v58 = vsel %vm308_vm2, %v1268_v56, 0 }
 0xc6b   : > { %v2065_v54 = vpop.eup %2064 }
 0xc6c   : > { %v1165_v55 = vmul.f32 %v2065_v54, %v2063_v46 }
 0xc6e   : > { %v1166_v57 = vpack.c.bf16 %v1165_v55, %v1165_v55 }
 0xc70   : > { %1899 = vmatmul.mubr.msk.bf16.vlgmr.msra.gmra.mxu1 %vm355_vm3, %v1166_v57 }
 0xc71   : > { %1909 = vmatpush3.bf16.xpose.msra.mxu1 %v1273_v58  ;;  %1910 = vmatprep.mubr.msk.bf16.mxu1 %vm2232_vm0, %v2231_v0 }
 0xc72   : > { %1920 = vmatprep.subr.bf16.mxu1 %v2231_v0 }
 0xc78   : > { %1911 = vmatmul.mubr.msk.bf16.vlgmr.msra.gmra.mxu1 %vm308_vm2, %v1266_v59 }
 0xc79   : > { %1922 = vmatprep.mubr.msk.bf16.mxu1 %vm2232_vm0, %v2231_v0  ;;  %1921 = vmatpush3.bf16.msra.mxu1 %v1382_v30 }
 0xc7a   : > { %1932 = vmatprep.subr.bf16.mxu1 %v2231_v0 }
 0xd30   : > { %v1209_v62 = vpop.f32.mrf.mxu1 }
 0xd31   : > { %v1215_v63 = vpack.c.bf16 %v1209_v62, %v1209_v62 }
 0xd32   : > { %v1900_v1 = vpop.f32.mrf.mxu1 }
 0xd33   : > { %1905 = vmatmul.mubr.msk.bf16.vlgmr.msra.gmra.mxu0 %vm308_vm2, %v1215_v63  ;;  %v1736_v63 = vld [vmem:[%s2637_s3] ss:$0 sm:$0xff] }
 0xd34   : > { %v1212_v2 = vpop.f32.mrf.mxu1  ;;  %1916 = vmatprep.mubr.msk.bf16.mxu0 %vm2232_vm0, %v2231_v0 }
 0xd36   : > { %v1901_v3 = vpop.f32.mrf.mxu1 }
 0xd38   : > { %v1309_v4 = vpop.f32.mrf.mxu1 }
 0xd39   : > { %v1315_v6 = vsel %vm355_vm3, %v1309_v4, -inf }
 0xd3a   : > { %1316 = vmax.xlane.f32.xlu1 %v1315_v6  ;;  %v1912_v7 = vpop.f32.mrf.mxu1 }
 0xd3c   : > { %v1312_v8 = vpop.f32.mrf.mxu1 }
 0xd3e   : > { %v1913_v9 = vpop.f32.mrf.mxu1 }
 0xd4b   : > { %1427 = vrot.lane.b32.xlu1 %v2423_v5, %s2252_s7  ;;  %s2160_s7 = scalar_lea.vmem %s2159_s5, 256 }
 0xd4c   : > { %p2162_p12 = scmp.lt.s32.totalorder %s2160_s7, %s2154_s21 }
 0xd4e   : > { %p2163_p3 = por %p2162_p12, %p2161_p6 }
 0xd4f   : > { %1425 = vrot.lane.b32.xlu1 %v2423_v5, %s2253_s8 }
 0xd50   : > { %p2164_p9 = pnand %p2163_p3, %p2157_p2 }
 0xdc3   : > { %v1317_v10 = vpop.xlane.xlu1 %1316 }
 0xdc4   : > { %v1318_v11 = vsub.f32 %v1309_v4, %v1317_v10 }
 0xdc6   : > { %v1319_v12 = vmul.f32 1.442695, %v1318_v11 }
 0xdc7   : > { %v1428_v25 = vpop.permute.xlu1 %1427 }
 0xdc8   : > { %2066 = vpow2.f32 %v1319_v12  ;;  %v1433_v27 = vsel %vm308_vm2, %v1428_v25, 0 }
 0xdcb   : > { %v1426_v28 = vpop.permute.xlu1 %1425 }
 0xdd5   : > { %v2067_v13 = vpop.eup %2066 }
 0xdd6   : > { %v1321_v14 = vsel %vm355_vm3, %v2067_v13, 0.0 }
 0xdd7   : > { %1322 = vadd.xlane.f32.xlu0 %v1321_v14 }
 0xded   : > { %1327 = vrot.lane.b32.xlu0 %v2423_v5, %s2254_s9 }
 0xdf3   : > { %v1258_v15 = vpop.f32.mrf.mxu0 }
 0xdf4   : > { %v1264_v16 = vadd.f32 %v1258_v15, %v1104_v49 }
 0xdf5   : > { %v1906_v17 = vpop.f32.mrf.mxu0 }
 0xdf7   : > { %v1261_v18 = vpop.f32.mrf.mxu0 }
 0xdf9   : > { %v1907_v19 = vpop.f32.mrf.mxu0 }
 0xe60   : > { %v1323_v20 = vpop.xlane.xlu0 %1322 }
 0xe61   : > { %2068 = vrcp.f32 %v1323_v20 }
 0xe64   : > { %v1328_v21 = vpop.permute.xlu0 %1327 }
 0xe65   : > { %v1333_v22 = vsel %vm373_vm4, %v1328_v21, 0 }
 0xe66   : > { %1915 = vmatpush3.bf16.msra.mxu0 %v1333_v22 }
 0xe67   : > { %1926 = vmatprep.subr.bf16.mxu0 %v2231_v0 }
 0xe6e   : > { %v2069_v23 = vpop.eup %2068 }
 0xe6f   : > { %v1325_v24 = vmul.f32 %v2069_v23, %v2067_v13 }
 0xe71   : > { %v1326_v26 = vpack.c.bf16 %v1325_v24, %v1325_v24 }
 0xe73   : > { %1917 = vmatmul.mubr.msk.bf16.vlgmr.msra.gmra.mxu0 %vm355_vm3, %v1326_v26 }
 0xe74   : > { %1927 = vmatpush3.bf16.xpose.msra.mxu0 %v1433_v27  ;;  %1928 = vmatprep.mubr.msk.bf16.mxu0 %vm2232_vm0, %v2231_v0 }
 0xe75   : > { %1938 = vmatprep.subr.bf16.mxu0 %v2231_v0 }
 0xe7b   : > { %1929 = vmatmul.mubr.msk.bf16.vlgmr.msra.gmra.mxu0 %vm308_vm2, %v1426_v28 }
 0xe7c   : > { %1940 = vmatprep.mubr.msk.bf16.mxu0 %vm2232_vm0, %v2231_v0  ;;  %1939 = vmatpush3.bf16.msra.mxu0 %v1542_v50 }
 0xf33   : > { %v1369_v31 = vpop.f32.mrf.mxu0 }
 0xf34   : > { %v1375_v32 = vpack.c.bf16 %v1369_v31, %v1369_v31 }
 0xf35   : > { %v1918_v33 = vpop.f32.mrf.mxu0 }
 0xf36   : > { %1923 = vmatmul.mubr.msk.bf16.vlgmr.msra.gmra.mxu1 %vm308_vm2, %v1375_v32 }
 0xf37   : > { %v1372_v34 = vpop.f32.mrf.mxu0  ;;  %1934 = vmatprep.mubr.msk.bf16.mxu1 %vm2232_vm0, %v2231_v0 }
 0xf39   : > { %v1919_v35 = vpop.f32.mrf.mxu0 }
 0xf3b   : > { %v1469_v36 = vpop.f32.mrf.mxu0 }
 0xf3c   : > { %v1475_v37 = vsel %vm355_vm3, %v1469_v36, -inf }
 0xf3d   : > { %1476 = vmax.xlane.f32.xlu0 %v1475_v37  ;;  %v1930_v38 = vpop.f32.mrf.mxu0 }
 0xf3f   : > { %v1472_v39 = vpop.f32.mrf.mxu0 }
 0xf41   : > { %v1931_v40 = vpop.f32.mrf.mxu0 }
 0xf53   : > { %1487 = vrot.lane.b32.xlu0 %v2423_v5, %s2255_s14 }
 0xfc6   : > { %v1477_v41 = vpop.xlane.xlu0 %1476 }
 0xfc7   : > { %v1478_v42 = vsub.f32 %v1469_v36, %v1477_v41 }
 0xfc9   : > { %v1479_v43 = vmul.f32 1.442695, %v1478_v42 }
 0xfca   : > { %v1488_v44 = vpop.permute.xlu0 %1487 }
 0xfcb   : > { %2070 = vpow2.f32 %v1479_v43  ;;  %v1493_v45 = vsel %vm373_vm4, %v1488_v44, 0 }
 0xfcc   : > { %1933 = vmatpush3.bf16.msra.mxu1 %v1493_v45 }
 0xfd8   : > { %v2071_v0 = vpop.eup %2070 }
 0xfd9   : > { %v1481_v46 = vsel %vm355_vm3, %v2071_v0, 0.0 }
 0xfda   : > { %1482 = vadd.xlane.f32.xlu1 %v1481_v46 }
 0xff6   : > { %v1418_v47 = vpop.f32.mrf.mxu1 }
 0xff7   : > { %v1424_v49 = vadd.f32 %v1418_v47, %v1264_v16 }
 0xff8   : > { %v1924_v51 = vpop.f32.mrf.mxu1 }
 0xffa   : > { %v1421_v5 = vpop.f32.mrf.mxu1 }
 0xffc   : > { %v1925_v52 = vpop.f32.mrf.mxu1 }
0x1063   : > { %v1483_v53 = vpop.xlane.xlu1 %1482 }
0x1064   : > { %2072 = vrcp.f32 %v1483_v53 }
0x1071   : > { %v2073_v54 = vpop.eup %2072 }
0x1072   : > { %v1485_v55 = vmul.f32 %v2073_v54, %v2071_v0 }
0x1074   : > { %v1486_v56 = vpack.c.bf16 %v1485_v55, %v1485_v55 }
0x1076   : > { %1935 = vmatmul.mubr.msk.bf16.vlgmr.msra.gmra.mxu1 %vm355_vm3, %v1486_v56 }
0x1136   : > { %v1529_v57 = vpop.f32.mrf.mxu1 }
0x1137   : > { %v1535_v58 = vpack.c.bf16 %v1529_v57, %v1529_v57 }
0x1138   : > { %v1936_v59 = vpop.f32.mrf.mxu1 }
0x1139   : > { %1941 = vmatmul.mubr.msk.bf16.vlgmr.msra.gmra.mxu0 %vm308_vm2, %v1535_v58 }
0x113a   : > { %v1532_v60 = vpop.f32.mrf.mxu1 }
0x113c   : > { %v1937_v61 = vpop.f32.mrf.mxu1 }
0x11f9   : > { %v1578_v62 = vpop.f32.mrf.mxu0 }
0x11fa   : > { %v1584_v1 = vadd.f32 %v1578_v62, %v1424_v49 }
0x11fb   : > { %v1942_v2 = vpop.f32.mrf.mxu0 }
0x11fc   : > { %v1592_v3 = vadd.f32 %v1736_v63, %v1584_v1 }
0x11fd   : > { %v1581_v4 = vpop.f32.mrf.mxu0 }
0x11fe   : > { %1593 = vst.msk [vmem:[%s241_s29] sm:$0xff] %vm260_vm1, %v1592_v3 }
0x11ff   : > { %v1943_v6 = vpop.f32.mrf.mxu0 }
0x1200   : > { %2167 = shalt.err (!%p2164_p9)
}
0x1201   : > { %s2168_s8 = scalar_lea.hbm %s2590_s12, 128  ;;  %s2172_s14 = scalar_lea.hbm %s2638_s4, 256 }
0x1202   : > { %p2169_p13 = scmp.ne.s32.totalorder %s2590_s12, %s2168_s8  ;;  %p2173_p0 = scmp.lt.s32.totalorder %s2590_s12, %s2638_s4 }
0x1203   : > { %p2174_p4 = scmp.lt.s32.totalorder %s2172_s14, %s2168_s8 }
0x1204   : > { %p2170_p5 = pnand %p2169_p13, %p2654_p11 }
0x1205   : > { %p2175_p8 = por %p2174_p4, %p2173_p0 }
0x1206   : > { %p2171_p10 = pneg %p2170_p5 }
0x1208   : > { %p2176_p7 = pnand %p2175_p8, %p2171_p10 }
0x120a   : > { %2179 = shalt.err (!%p2176_p7)
}
0x120b   : > { %1954 = dma.vmem_to_hbm [thread:$0]  (%p2654_p11), %s2592_s30, 128, %s2590_s12, %s1595_s19  }
0x120c PF: > { %s1620_s28 = sand.u32 1, %s2210_s15   ;;  %p2655_p1 = scmp.ne.s32.totalorder %s2644_s22, 0 }
0x120d   : > { %p2656_p2 = scmp.ge.s32.totalorder %s2222_s18, 2  ;;  %s1621_s26 = scalar_lea.sflag [#allocation4], %s1620_s28 }
0x120f   : > { %p1968_p6 = pnand %p2656_p2, %p2655_p1 }
0x1211   : > { %p1969_p12 = pneg %p1968_p6 }
0x1213   : > { %2205 = dma.done.wait (%p1969_p12), %s1621_s26, 128  }
0x1214   : > { %2207 = vsyncadd (%p1969_p12), %s1621_s26, 4294967168  ;;  %p18_p3 = scmp.ge.s32.totalorder %s2354_s13, 4   ;;  %s2657_s15 = smov %s2214_s16 }
0x1215   : > { %s2658_s16 = smov %s2218_s17  ;;  %s2659_s17 = smov %s2363_s24 }
0x1216   : > { %s2660_s18 = smov %s2354_s13  ;;  %20 = sbr.rel (!%p18_p3) target bundleno = 6 (0x6), region = 96 }
0x121b   :  { %1626 = vsyncpa [#allocation3], 1 }
0x121c   :  { %1628 = vsyncpa [#allocation3 + $0x1], 1 }
0x121d   :  { %1629 = vsyncpa [#allocation6], 1 }
0x121e   :  { %1630 = vsyncpa [#allocation4], 1 }
0x121f   :  { %1632 = vsyncpa [#allocation4 + $0x1], 1 }

// kernel: tpu_custom_call.1
= control target key start
LH: loop header
LB: loop body
LE: loop exit
PB: predicated region body
PF: predicated region fallthrough
CT: control target
= control target key end

     0   :  { %9 = vsyncpa [#allocation3], 0  ;;  %s2634_s0 = inlined_call_operand.hbm [shape: bf16[2,8,32], index: 0, kind: input, shape index: {}]   ;;  %s2635_s1 = inlined_call_operand.hbm [shape: bf16[32,96], index: 1, kind: input, shape index: {}]   ;;  %s2636_s2 = inlined_call_operand.hbm [shape: bf16[8,4,32], index: 2, kind: input, shape index: {}]   ;;  %s2637_s3 = inlined_call_operand.vmem [shape: f32[1,32], index: 3, kind: input, shape index: {}]   ;;  %s2638_s4 = inlined_call_operand.hbm [shape: f32[2,8,32], index: 4, kind: output, shape index: {}]  }
   0x1   :  { %11 = vsyncpa [#allocation3 + $0x1], 0 }
   0x2   :  { %12 = vsyncpa [#allocation6], 0 }
   0x3   :  { %13 = vsyncpa [#allocation4], 0 }
   0x4   :  { %15 = vsyncpa [#allocation4 + $0x1], 0  ;;  %s2282_s15 = smov 0   ;;  %s2284_s16 = smov 0  }
   0x5   :  { %s2286_s17 = smov 0   ;;  %s2288_s18 = smov 0  }
   0x6 LB: > { %s2303_s19 = sadd.s32 4294967295, %s2222_s18   ;;  %s1697_s20 = sadd.s32 4294967294, %s2222_s18   ;;  %s2222_s18 = sphi %s2288_s18, %s2660_s18   ;;  %s2218_s17 = sphi %s2286_s17, %s2659_s17   ;;  %s2214_s16 = sphi %s2284_s16, %s2658_s16   ;;  %s2210_s15 = sphi %s2282_s15, %s2657_s15  }
   0x7   : > { %p41_p0 = scmp.ne.s32.totalorder %s2214_s16, %s2210_s15  ;;  %p2639_p1 = scmp.eq.s32.totalorder %s2303_s19, 0 }
   0x8   : > { %p134_p3 = scmp.eq.s32.totalorder %s1697_s20, 1  ;;  %p1698_p5 = scmp.ge.s32.totalorder %s2222_s18, 1 }
   0x9   : > { %p2312_p4 = por %p2639_p1, %p41_p0  ;;  %p141_p7 = scmp.lt.s32.totalorder %s2222_s18, 3 }
   0xa   : > { %p2317_p6 = por %p134_p3, %p41_p0  ;;  %s2224_s24 = smov [#allocation5]  }
   0xb   : > { %s2643_s21 = scalar_select %p2312_p4, 1, 0 }
   0xc   : > { %s2644_s22 = scalar_select %p2317_p6, 1, 0 }
   0xd   : > { %p2322_p8 = pnand %p1698_p5, %p141_p7  ;;  %s153_s25 = sshll.u32 %s2224_s24, 4  ;;  %s154_s25 = int_to_ptr.vmem [resolvable:$true] %s153_s25 }
   0xe   : > { %s2225_s27 = smov [#allocation7]   ;;  %s2085_s29 = scalar_lea.vmem %s154_s25, 256 }
   0xf   : > { %s2645_s23 = scalar_select %p2322_p8, 1, 0 }
  0x10   : > { %p1956_p9 = pneg %p2322_p8  ;;  %s166_s28 = sshll.u32 %s2225_s27, 4  ;;  %s167_s28 = int_to_ptr.vmem [resolvable:$true] %s166_s28 }
  0x11   : > { %p2086_p13 = scmp.ne.s32.totalorder %s154_s25, %s2085_s29  ;;  %p2093_p5 = scmp.lt.s32.totalorder %s154_s25, %s154_s25 }
  0x12   : > { %p2331_p11 = pnand %p1956_p9, %p2639_p1  ;;  %p2094_p7 = scmp.lt.s32.totalorder %s2085_s29, %s2085_s29 }
  0x14   : > { %p2076_p12 = pneg %p2331_p11  ;;  %p2095_p10 = por %p2094_p7, %p2093_p5 }
  0x16   : > { %p2088_p0 = pnand %p2086_p13, %p2076_p12 }
  0x18   : > { %p2089_p3 = pneg %p2088_p0 }
  0x1a   : > { %p2096_p9 = pnand %p2095_p10, %p2089_p3 }
  0x1c   : > { %2099 = shalt.err (!%p2096_p9)
}
  0x1d   : > { %s2226_s30 = smov 64   ;;  %s2227_s5 = smov 4  }
  0x1e   : > { %1959 = dma.hbm_to_vmem [thread:$0]  (!%p2331_p11), %s2635_s1, 256, %s154_s25, [#allocation6], %s2226_s30, %s2226_s30, %s2227_s5  }
  0x1f   : > { %s2111_s8 = scalar_lea.vmem %s167_s28, 256  ;;  %p2119_p2 = scmp.lt.s32.totalorder %s167_s28, %s167_s28 }
  0x20   : > { %p2112_p1 = scmp.ne.s32.totalorder %s167_s28, %s2111_s8  ;;  %p2120_p6 = scmp.lt.s32.totalorder %s2111_s8, %s2111_s8 }
  0x22   : > { %p2114_p13 = pnand %p2112_p1, %p2076_p12  ;;  %p2121_p5 = por %p2120_p6, %p2119_p2 }
  0x24   : > { %p2115_p0 = pneg %p2114_p13 }
  0x26   : > { %p2122_p10 = pnand %p2121_p5, %p2115_p0 }
  0x28   : > { %2125 = shalt.err (!%p2122_p10)
}
  0x29   : > { %s2228_s9 = smov 32   ;;  %s2229_s10 = smov 2  }
  0x2a   : > { %1962 = dma.hbm_to_vmem [thread:$0]  (!%p2331_p11), %s2636_s2, 256, %s167_s28, [#allocation6], %s2228_s9, %s2228_s9, %s2229_s10  }
  0x2b   : > { %s2354_s13 = sadd.s32 1, %s2222_s18   ;;  %s28_s20 = sadd.s32 1, %s2218_s17 }
  0x2c   : > { %s25_s14 = ssub.s32 %s2222_s18, %s2354_s13  ;;  %p35_p2 = scmp.ne.s32.totalorder %s2218_s17, %s2214_s16 }
  0x2d   : > { %p26_p1 = scmp.eq.s32.totalorder %s25_s14, 0  ;;  %p36_p6 = scmp.eq.s32.totalorder %s2222_s18, 0 }
  0x2e   : > { %p2647_p3 = scmp.eq.s32.totalorder %s2303_s19, 1  ;;  %p1973_p9 = scmp.lt.s32.totalorder %s2222_s18, 2 }
  0x2f   : > { %s2363_s24 = scalar_select %p26_p1, %s2218_s17, %s28_s20  }
  0x30   : > { %p37_p12 = por %p36_p6, %p35_p2  ;;  %p2367_p7 = por %p2647_p3, %p35_p2 }
  0x31   : > { %s183_s26 = sand.u32 1, %s2218_s17   ;;  %s1703_s28 = sshll.u32 %s2222_s18, 6 }
  0x32   : > { %s2648_s25 = scalar_select %p2367_p7, 1, 0 }
  0x33   : > { %s1702_s27 = sshll.u32 %s183_s26, 2  ;;  %s2377_s5 = scalar_lea.hbm %s2634_s0, %s1703_s28 }
  0x34   : > { %s187_s6 = scalar_lea.vmem [#allocation2], %s1702_s27  ;;  %p2379_p11 = pnand %p1973_p9, %p37_p12 }
  0x35   : > { %s194_s7 = sshll.u32 %s187_s6, 4  ;;  %s184_s9 = scalar_lea.sflag [#allocation3], %s183_s26  ;;  %s195_s7 = int_to_ptr.vmem [resolvable:$true] %s194_s7 }
  0x36   : > { %s2126_s10 = scalar_lea.hbm %s2377_s5, 64  ;;  %p2128_p0 = pneg %p2379_p11 }
  0x37   : > { %p2127_p13 = scmp.ne.s32.totalorder %s2377_s5, %s2126_s10  ;;  %s2131_s14 = scalar_lea.hbm %s2634_s0, 128 }
  0x38   : > { %p2132_p1 = scmp.lt.s32.totalorder %s2377_s5, %s2634_s0  ;;  %p2133_p2 = scmp.lt.s32.totalorder %s2131_s14, %s2126_s10 }
  0x39   : > { %p2129_p5 = pnand %p2128_p0, %p2127_p13 }
  0x3a   : > { %p2134_p6 = por %p2133_p2, %p2132_p1 }
  0x3b   : > { %p2130_p10 = pneg %p2129_p5 }
  0x3d   : > { %p2135_p12 = pnand %p2134_p6, %p2130_p10 }
  0x3f   : > { %2138 = shalt.err (!%p2135_p12)
}
  0x40   : > { %s2139_s28 = scalar_lea.vmem %s195_s7, 64  ;;  %s2230_s26 = smov [#allocation2]  }
  0x41   : > { %p2140_p3 = scmp.ne.s32.totalorder %s195_s7, %s2139_s28  ;;  %s2144_s29 = sshll.u32 %s2230_s26, 4  ;;  %s2145_s29 = int_to_ptr.vmem [resolvable:$false] %s2144_s29 }
  0x42   : > { %s2146_s30 = scalar_lea.vmem %s2145_s29, 128  ;;  %p2147_p13 = scmp.lt.s32.totalorder %s195_s7, %s2145_s29 }
  0x43   : > { %p2142_p9 = pnand %p2140_p3, %p2128_p0  ;;  %p2148_p5 = scmp.lt.s32.totalorder %s2146_s30, %s2139_s28 }
  0x45   : > { %p2143_p7 = pneg %p2142_p9  ;;  %p2149_p4 = por %p2148_p5, %p2147_p13 }
  0x47   : > { %p2150_p8 = pnand %p2149_p4, %p2143_p7 }
  0x49   : > { %2153 = shalt.err (!%p2150_p8)
}
  0x4a   : > { %1966 = dma.hbm_to_vmem [thread:$0]  (!%p2379_p11), %s2377_s5, 64, %s195_s7, %s184_s9  }
  0x4b   : > { %p2650_p10 = scmp.ne.s32.totalorder %s2645_s23, 0 }
  0x4c   : > { %s2400_s6 = sand.u32 (!%p2650_p10), 1, %s2214_s16   ;;  %p2651_p0 = scmp.ne.s32.totalorder (!%p2650_p10), %s2643_s21, 0 }
  0x4d   : > { %203 = sbr.rel (%p2650_p10) target bundleno = 4620 (0x120c), region = 36  ;;  %s1705_s10 = sshll.u32 (!%p2650_p10), %s2400_s6, 2 }
  0x4e   : > { %s206_s11 = scalar_lea.sflag (!%p2650_p10), [#allocation3], %s2400_s6  ;;  %s209_s12 = scalar_lea.vmem (!%p2650_p10), [#allocation2], %s1705_s10 }
  0x52   : > { %2197 = dma.done.wait (%p2651_p0), %s206_s11, 64  }
  0x53   : > { %2199 = vsyncadd (%p2651_p0), %s206_s11, 4294967232  ;;  %p2652_p4 = scmp.eq.s32.totalorder %s2303_s19, 0 }
  0x55   : > { %2201 = dma.done.wait (%p2652_p4), [#allocation6], 512   ;;  %p2653_p8 = pmov %p2652_p4 }
  0x56   : > { %v2231_v0 = vmov 0.0   ;;  %vm2232_vm0 = vmmov 0   ;;  %v2040_v1 = vld [vmem:[#allocation5 + $0x8] sm:$0xff]   ;;  %v2041_v2 = vld [vmem:[#allocation5] sm:$0xff]   ;;  %v243_v3 = vld [vmem:[%s209_s12] sm:$0xf] }
  0x57   : > { %2203 = vsyncadd (%p2653_p8), [#allocation6], 4294966784  ;;  %1792 = vmatprep.subr.bf16.mxu0 %v2231_v0  ;;  %1796 = vmatprep.mubr.msk.bf16.mxu0 %vm2232_vm0, %v2231_v0  ;;  %vm260_vm1 = vcmask 261120   ;;  %s2233_s21 = smov 124   ;;  %s2234_s23 = smov 96   ;;  %vm308_vm2 = vcmask 31744  }
  0x58   : > { %1800 = vmatprep.subr.bf16.mxu1 %v2231_v0  ;;  %1802 = vmatprep.mubr.msk.bf16.mxu1 %vm2232_vm0, %v2231_v0  ;;  %s2235_s5 = smov 92   ;;  %vm355_vm3 = vcmask 64512   ;;  %s2236_s7 = smov 64   ;;  %vm373_vm4 = vcmask 1043456   ;;  %v418_v46 = vld [vmem:[#allocation7] sm:$0x3] }
  0x59   : > { %1793 = vmatpush3.bf16.msra.mxu0 %v2040_v1  ;;  %s2237_s8 = smov 60   ;;  %s2238_s9 = smov 120   ;;  %vm535_vm5 = vcmask 1041408   ;;  %v531_v48 = vld [vmem:[#allocation7 + $0x2] sm:$0x3] }
  0x5a   : > { %1794 = vmatprep.subr.bf16.mxu0 %v2231_v0  ;;  %s2239_s14 = smov 88   ;;  %v583_v47 = vsel %vm535_vm5, %v418_v46, 0  ;;  %v537_v49 = vsel %vm535_vm5, %v531_v48, 0  ;;  %s2240_s20 = smov 84  }
  0x5b   : > { %s2241_s27 = smov 116   ;;  %s2242_s28 = smov 56  }
  0x5c   : > { %s2243_s26 = smov 52   ;;  %s2244_s29 = smov 112  }
  0x5d   : > { %1795 = vmatpush3.bf16.msra.mxu0 %v2041_v2  ;;  %s2245_s30 = smov 80   ;;  %s2246_s10 = smov 76  }
  0x5e   : > { %1806 = vmatprep.subr.bf16.mxu0 %v2231_v0  ;;  %s2247_s11 = smov 108   ;;  %s2248_s12 = smov 48  }
  0x5f   : > { %p2654_p11 = scmp.ne.s32.totalorder %s2648_s25, 0 }
  0x60   : > { %1797 = vmatmul.mubr.msk.bf16.vlgmr.msra.gmra.mxu0 %vm260_vm1, %v243_v3 }
  0x61   : > { %1808 = vmatprep.mubr.msk.bf16.mxu0 %vm2232_vm0, %v2231_v0 }
 0x120   : > { %v298_v4 = vpop.f32.mrf.mxu0 }
 0x121   : > { %v2423_v5 = vpack.c.bf16 %v298_v4, %v298_v4 }
 0x122   : > { %v1798_v6 = vpop.f32.mrf.mxu0 }
 0x123   : > { %419 = vrot.lane.b32.xlu1 %v2423_v5, %s2233_s21  ;;  %306 = vrot.lane.b32.xlu0 %v2423_v5, %s2234_s23  ;;  %s2249_s21 = smov 44   ;;  %s2250_s23 = smov 104  }
 0x124   : > { %v301_v7 = vpop.f32.mrf.mxu0 }
 0x126   : > { %v1799_v8 = vpop.f32.mrf.mxu0 }
 0x127   : > { %421 = vrot.lane.b32.xlu0 %v2423_v5, %s2235_s5  ;;  %s2251_s5 = smov 72  }
 0x195   : > { %v307_v9 = vpop.permute.xlu0 %306  ;;  %v420_v13 = vpop.permute.xlu1 %419 }
 0x196   : > { %v313_v10 = vsel %vm308_vm2, %v307_v9, 0 }
 0x197   : > { %1801 = vmatpush3.bf16.xpose.msra.mxu1 %v313_v10 }
 0x198   : > { %1812 = vmatprep.subr.bf16.mxu1 %v2231_v0 }
 0x199   : > { %v422_v11 = vpop.permute.xlu0 %421 }
 0x19a   : > { %v427_v12 = vsel %vm308_vm2, %v422_v11, 0 }
 0x19e   : > { %1803 = vmatmul.mubr.msk.bf16.vlgmr.msra.gmra.mxu1 %vm308_vm2, %v2423_v5 }
 0x19f   : > { %1813 = vmatpush3.bf16.xpose.msra.mxu1 %v427_v12  ;;  %1814 = vmatprep.mubr.msk.bf16.mxu1 %vm2232_vm0, %v2231_v0 }
 0x1a0   : > { %1824 = vmatprep.subr.bf16.mxu1 %v2231_v0 }
 0x1a6   : > { %1815 = vmatmul.mubr.msk.bf16.vlgmr.msra.gmra.mxu1 %vm308_vm2, %v420_v13 }
 0x1a7   : > { %1826 = vmatprep.mubr.msk.bf16.mxu1 %vm2232_vm0, %v2231_v0  ;;  %1825 = vmatpush3.bf16.msra.mxu1 %v537_v49 }
 0x1a8   : > { %1836 = vmatprep.subr.bf16.mxu1 %v2231_v0 }
 0x25e   : > { %v349_v14 = vpop.f32.mrf.mxu1 }
 0x25f   : > { %v356_v15 = vsel %vm355_vm3, %v349_v14, -inf }
 0x260   : > { %357 = vmax.xlane.f32.xlu1 %v356_v15  ;;  %v1804_v16 = vpop.f32.mrf.mxu1 }
 0x262   : > { %v352_v17 = vpop.f32.mrf.mxu1 }
 0x264   : > { %v1805_v18 = vpop.f32.mrf.mxu1 }
 0x266   : > { %v463_v19 = vpop.f32.mrf.mxu1 }
 0x267   : > { %v469_v20 = vsel %vm355_vm3, %v463_v19, -inf }
 0x268   : > { %470 = vmax.xlane.f32.xlu0 %v469_v20  ;;  %v1816_v21 = vpop.f32.mrf.mxu1 }
 0x26a   : > { %v466_v22 = vpop.f32.mrf.mxu1 }
 0x26c   : > { %v1817_v23 = vpop.f32.mrf.mxu1 }
 0x2e9   : > { %v358_v24 = vpop.xlane.xlu1 %357 }
 0x2ea   : > { %v359_v25 = vsub.f32 %v349_v14, %v358_v24 }
 0x2ec   : > { %v360_v26 = vmul.f32 1.442695, %v359_v25 }
 0x2ee   : > { %2042 = vpow2.f32 %v360_v26 }
 0x2f1   : > { %v471_v27 = vpop.xlane.xlu0 %470 }
 0x2f2   : > { %v472_v28 = vsub.f32 %v463_v19, %v471_v27 }
 0x2f4   : > { %v473_v29 = vmul.f32 1.442695, %v472_v28 }
 0x2f6   : > { %2044 = vpow2.f32 %v473_v29  ;;  %v737_v29 = vld [vmem:[#allocation7 + $0x4] sm:$0x3] }
 0x2fb   : > { %v2043_v30 = vpop.eup %2042 }
 0x2fc   : > { %v362_v31 = vsel %vm355_vm3, %v2043_v30, 0.0 }
 0x2fd   : > { %363 = vadd.xlane.f32.xlu0 %v362_v31 }
 0x303   : > { %v2045_v32 = vpop.eup %2044 }
 0x304   : > { %v475_v33 = vsel %vm355_vm3, %v2045_v32, 0.0 }
 0x305   : > { %476 = vadd.xlane.f32.xlu1 %v475_v33 }
 0x313   : > { %368 = vrot.lane.b32.xlu0 %v2423_v5, %s2236_s7  ;;  %s2252_s7 = smov 68  }
 0x316   : > { %481 = vrot.lane.b32.xlu1 %v2423_v5, %s2237_s8  ;;  %s2253_s8 = smov 100  }
 0x317   : > { %625 = vrot.lane.b32.xlu0 %v2423_v5, %s2238_s9  ;;  %s2254_s9 = smov 40  }
 0x31a   : > { %627 = vrot.lane.b32.xlu1 %v2423_v5, %s2239_s14  ;;  %s2255_s14 = smov 36  }
 0x386   : > { %v364_v34 = vpop.xlane.xlu0 %363 }
 0x387   : > { %2046 = vrcp.f32 %v364_v34 }
 0x38a   : > { %v369_v35 = vpop.permute.xlu0 %368 }
 0x38b   : > { %v375_v36 = vsel %vm373_vm4, %v369_v35, 0 }
 0x38c   : > { %1807 = vmatpush3.bf16.msra.mxu0 %v375_v36 }
 0x38d   : > { %1818 = vmatprep.subr.bf16.mxu0 %v2231_v0 }
 0x38e   : > { %v477_v37 = vpop.xlane.xlu1 %476  ;;  %v626_v62 = vpop.permute.xlu0 %625 }
 0x38f   : > { %2048 = vrcp.f32 %v477_v37 }
 0x392   : > { %v482_v40 = vpop.permute.xlu1 %481 }
 0x393   : > { %v487_v42 = vsel %vm373_vm4, %v482_v40, 0 }
 0x394   : > { %v2047_v38 = vpop.eup %2046 }
 0x395   : > { %v366_v39 = vmul.f32 %v2047_v38, %v2043_v30  ;;  %v742_v30 = vsel %vm535_vm5, %v737_v29, 0  ;;  %v1057_v29 = vld [vmem:[#allocation7 + $0x8] sm:$0x3] }
 0x396   : > { %v628_v55 = vpop.permute.xlu1 %627 }
 0x397   : > { %v367_v41 = vpack.c.bf16 %v366_v39, %v366_v39  ;;  %v633_v59 = vsel %vm308_vm2, %v628_v55, 0 }
 0x399   : > { %1809 = vmatmul.mubr.msk.bf16.vlgmr.msra.gmra.mxu0 %vm355_vm3, %v367_v41 }
 0x39a   : > { %1819 = vmatpush3.bf16.msra.mxu0 %v487_v42  ;;  %1820 = vmatprep.mubr.msk.bf16.mxu0 %vm2232_vm0, %v2231_v0 }
 0x39b   : > { %1830 = vmatprep.subr.bf16.mxu0 %v2231_v0 }
 0x39c   : > { %v2049_v43 = vpop.eup %2048 }
 0x39d   : > { %v479_v44 = vmul.f32 %v2049_v43, %v2045_v32 }
 0x39f   : > { %v480_v45 = vpack.c.bf16 %v479_v44, %v479_v44 }
 0x3a1   : > { %1821 = vmatmul.mubr.msk.bf16.vlgmr.msra.gmra.mxu0 %vm355_vm3, %v480_v45 }
 0x3a2   : > { %1832 = vmatprep.mubr.msk.bf16.mxu0 %vm2232_vm0, %v2231_v0  ;;  %1831 = vmatpush3.bf16.msra.mxu0 %v583_v47 }
 0x3a3   : > { %1842 = vmatprep.subr.bf16.mxu0 %v2231_v0 }
 0x459   : > { %v411_v50 = vpop.f32.mrf.mxu0 }
 0x45a   : > { %v417_v51 = vpack.c.bf16 %v411_v50, %v411_v50 }
 0x45b   : > { %v1810_v52 = vpop.f32.mrf.mxu0 }
 0x45c   : > { %1833 = vmatmul.mubr.msk.bf16.vlgmr.msra.gmra.mxu0 %vm308_vm2, %v417_v51 }
 0x45d   : > { %v414_v53 = vpop.f32.mrf.mxu0  ;;  %1844 = vmatprep.mubr.msk.bf16.mxu0 %vm2232_vm0, %v2231_v0 }
 0x45f   : > { %v1811_v54 = vpop.f32.mrf.mxu0 }
 0x461   : > { %v523_v56 = vpop.f32.mrf.mxu0 }
 0x462   : > { %v529_v57 = vpack.c.bf16 %v523_v56, %v523_v56 }
 0x463   : > { %v1822_v58 = vpop.f32.mrf.mxu0 }
 0x464   : > { %1827 = vmatmul.mubr.msk.bf16.vlgmr.msra.gmra.mxu1 %vm308_vm2, %v529_v57 }
 0x465   : > { %1837 = vmatpush3.bf16.xpose.msra.mxu1 %v633_v59  ;;  %v526_v60 = vpop.f32.mrf.mxu0  ;;  %1838 = vmatprep.mubr.msk.bf16.mxu1 %vm2232_vm0, %v2231_v0 }
 0x466   : > { %1848 = vmatprep.subr.bf16.mxu1 %v2231_v0  ;;  %v897_v60 = vld [vmem:[#allocation7 + $0x6] sm:$0x3] }
 0x467   : > { %v1823_v61 = vpop.f32.mrf.mxu0 }
 0x468   : > { %v902_v61 = vsel %vm535_vm5, %v897_v60, 0  ;;  %v1217_v60 = vld [vmem:[#allocation7 + $0xa] sm:$0x3] }
 0x46c   : > { %1839 = vmatmul.mubr.msk.bf16.vlgmr.msra.gmra.mxu1 %vm308_vm2, %v626_v62 }
 0x46d   : > { %1850 = vmatprep.mubr.msk.bf16.mxu1 %vm2232_vm0, %v2231_v0  ;;  %1849 = vmatpush3.bf16.msra.mxu1 %v742_v30  ;;  %v1062_v30 = vsel %vm535_vm5, %v1057_v29, 0  ;;  %v1377_v29 = vld [vmem:[#allocation7 + $0xc] sm:$0x3] }
 0x46e   : > { %1860 = vmatprep.subr.bf16.mxu1 %v2231_v0 }
 0x51c   : > { %v619_v63 = vpop.f32.mrf.mxu0 }
 0x51e   : > { %v1834_v1 = vpop.f32.mrf.mxu0 }
 0x520   : > { %v622_v2 = vpop.f32.mrf.mxu0 }
 0x522   : > { %v1835_v3 = vpop.f32.mrf.mxu0 }
 0x524   : > { %v573_v4 = vpop.f32.mrf.mxu1 }
 0x525   : > { %v2472_v6 = vadd.f32 %v619_v63, %v573_v4 }
 0x526   : > { %v1828_v7 = vpop.f32.mrf.mxu1 }
 0x528   : > { %v576_v8 = vpop.f32.mrf.mxu1 }
 0x52a   : > { %v1829_v9 = vpop.f32.mrf.mxu1 }
 0x52c   : > { %v669_v10 = vpop.f32.mrf.mxu1 }
 0x52d   : > { %v675_v11 = vsel %vm355_vm3, %v669_v10, -inf }
 0x52e   : > { %676 = vmax.xlane.f32.xlu1 %v675_v11  ;;  %v1840_v12 = vpop.f32.mrf.mxu1 }
 0x530   : > { %v672_v13 = vpop.f32.mrf.mxu1 }
 0x532   : > { %v1841_v14 = vpop.f32.mrf.mxu1 }
 0x53f   : > { %787 = vrot.lane.b32.xlu1 %v2423_v5, %s2240_s20  ;;  %s1708_s20 = sshll.u32 %s2400_s6, 3 }
 0x543   : > { %785 = vrot.lane.b32.xlu1 %v2423_v5, %s2241_s27 }
 0x5b7   : > { %v677_v15 = vpop.xlane.xlu1 %676 }
 0x5b8   : > { %v678_v16 = vsub.f32 %v669_v10, %v677_v15 }
 0x5ba   : > { %v679_v17 = vmul.f32 1.442695, %v678_v16 }
 0x5bb   : > { %v788_v25 = vpop.permute.xlu1 %787 }
 0x5bc   : > { %2050 = vpow2.f32 %v679_v17  ;;  %v793_v27 = vsel %vm308_vm2, %v788_v25, 0 }
 0x5bf   : > { %v786_v28 = vpop.permute.xlu1 %785 }
 0x5c9   : > { %v2051_v18 = vpop.eup %2050 }
 0x5ca   : > { %v681_v19 = vsel %vm355_vm3, %v2051_v18, 0.0 }
 0x5cb   : > { %682 = vadd.xlane.f32.xlu0 %v681_v19 }
 0x5e1   : > { %687 = vrot.lane.b32.xlu0 %v2423_v5, %s2242_s28 }
 0x654   : > { %v683_v20 = vpop.xlane.xlu0 %682 }
 0x655   : > { %2052 = vrcp.f32 %v683_v20 }
 0x658   : > { %v688_v21 = vpop.permute.xlu0 %687 }
 0x659   : > { %v693_v22 = vsel %vm373_vm4, %v688_v21, 0 }
 0x65a   : > { %1843 = vmatpush3.bf16.msra.mxu0 %v693_v22 }
 0x65b   : > { %1854 = vmatprep.subr.bf16.mxu0 %v2231_v0 }
 0x662   : > { %v2053_v23 = vpop.eup %2052 }
 0x663   : > { %v685_v24 = vmul.f32 %v2053_v23, %v2051_v18 }
 0x665   : > { %v686_v26 = vpack.c.bf16 %v685_v24, %v685_v24 }
 0x667   : > { %1845 = vmatmul.mubr.msk.bf16.vlgmr.msra.gmra.mxu0 %vm355_vm3, %v686_v26 }
 0x668   : > { %1855 = vmatpush3.bf16.xpose.msra.mxu0 %v793_v27  ;;  %1856 = vmatprep.mubr.msk.bf16.mxu0 %vm2232_vm0, %v2231_v0 }
 0x669   : > { %1866 = vmatprep.subr.bf16.mxu0 %v2231_v0 }
 0x66f   : > { %1857 = vmatmul.mubr.msk.bf16.vlgmr.msra.gmra.mxu0 %vm308_vm2, %v786_v28 }
 0x670   : > { %1868 = vmatprep.mubr.msk.bf16.mxu0 %vm2232_vm0, %v2231_v0  ;;  %1867 = vmatpush3.bf16.msra.mxu0 %v902_v61  ;;  %v1222_v61 = vsel %vm535_vm5, %v1217_v60, 0 }
 0x671   : > { %1878 = vmatprep.subr.bf16.mxu0 %v2231_v0 }
 0x727   : > { %v729_v31 = vpop.f32.mrf.mxu0 }
 0x728   : > { %v735_v32 = vpack.c.bf16 %v729_v31, %v729_v31 }
 0x729   : > { %v1846_v33 = vpop.f32.mrf.mxu0 }
 0x72a   : > { %1851 = vmatmul.mubr.msk.bf16.vlgmr.msra.gmra.mxu1 %vm308_vm2, %v735_v32 }
 0x72b   : > { %v732_v34 = vpop.f32.mrf.mxu0  ;;  %1862 = vmatprep.mubr.msk.bf16.mxu1 %vm2232_vm0, %v2231_v0 }
 0x72d   : > { %v1847_v35 = vpop.f32.mrf.mxu0 }
 0x72f   : > { %v829_v36 = vpop.f32.mrf.mxu0 }
 0x730   : > { %v835_v37 = vsel %vm355_vm3, %v829_v36, -inf }
 0x731   : > { %836 = vmax.xlane.f32.xlu0 %v835_v37  ;;  %v1858_v38 = vpop.f32.mrf.mxu0 }
 0x733   : > { %v832_v39 = vpop.f32.mrf.mxu0 }
 0x735   : > { %v1859_v40 = vpop.f32.mrf.mxu0 }
 0x747   : > { %847 = vrot.lane.b32.xlu0 %v2423_v5, %s2243_s26  ;;  %s1738_s26 = sshll.u32 %s2303_s19, 7  ;;  %s1595_s19 = scalar_lea.sflag [#allocation4], %s2400_s6 }
 0x74b   : > { %945 = vrot.lane.b32.xlu0 %v2423_v5, %s2244_s29  ;;  %s241_s29 = scalar_lea.vmem [#allocation8], %s1708_s20 }
 0x7ba   : > { %v837_v41 = vpop.xlane.xlu0 %836 }
 0x7bb   : > { %v838_v42 = vsub.f32 %v829_v36, %v837_v41 }
 0x7bd   : > { %v839_v43 = vmul.f32 1.442695, %v838_v42 }
 0x7be   : > { %v848_v44 = vpop.permute.xlu0 %847 }
 0x7bf   : > { %2054 = vpow2.f32 %v839_v43  ;;  %v853_v45 = vsel %vm373_vm4, %v848_v44, 0 }
 0x7c0   : > { %1861 = vmatpush3.bf16.msra.mxu1 %v853_v45 }
 0x7c1   : > { %1872 = vmatprep.subr.bf16.mxu1 %v2231_v0 }
 0x7c2   : > { %v946_v59 = vpop.permute.xlu0 %945 }
 0x7cc   : > { %v2055_v46 = vpop.eup %2054 }
 0x7cd   : > { %v841_v47 = vsel %vm355_vm3, %v2055_v46, 0.0 }
 0x7ce   : > { %842 = vadd.xlane.f32.xlu1 %v841_v47 }
 0x7df   : > { %947 = vrot.lane.b32.xlu1 %v2423_v5, %s2245_s30  ;;  %s1608_s30 = sshll.u32 %s241_s29, 4  ;;  %s2592_s30 = int_to_ptr.vmem [resolvable:$true] %s1608_s30 }
 0x7ea   : > { %v778_v48 = vpop.f32.mrf.mxu1 }
 0x7eb   : > { %v784_v49 = vadd.f32 %v778_v48, %v2472_v6 }
 0x7ec   : > { %v1852_v50 = vpop.f32.mrf.mxu1 }
 0x7ee   : > { %v781_v51 = vpop.f32.mrf.mxu1 }
 0x7f0   : > { %v1853_v52 = vpop.f32.mrf.mxu1 }
 0x857   : > { %v843_v53 = vpop.xlane.xlu1 %842 }
 0x858   : > { %2056 = vrcp.f32 %v843_v53 }
 0x85b   : > { %v948_v56 = vpop.permute.xlu1 %947 }
 0x85c   : > { %v953_v58 = vsel %vm308_vm2, %v948_v56, 0 }
 0x865   : > { %v2057_v54 = vpop.eup %2056 }
 0x866   : > { %v845_v55 = vmul.f32 %v2057_v54, %v2055_v46 }
 0x868   : > { %v846_v57 = vpack.c.bf16 %v845_v55, %v845_v55 }
 0x86a   : > { %1863 = vmatmul.mubr.msk.bf16.vlgmr.msra.gmra.mxu1 %vm355_vm3, %v846_v57 }
 0x86b   : > { %1873 = vmatpush3.bf16.xpose.msra.mxu1 %v953_v58  ;;  %1874 = vmatprep.mubr.msk.bf16.mxu1 %vm2232_vm0, %v2231_v0 }
 0x86c   : > { %1884 = vmatprep.subr.bf16.mxu1 %v2231_v0 }
 0x872   : > { %1875 = vmatmul.mubr.msk.bf16.vlgmr.msra.gmra.mxu1 %vm308_vm2, %v946_v59 }
 0x873   : > { %1886 = vmatprep.mubr.msk.bf16.mxu1 %vm2232_vm0, %v2231_v0  ;;  %1885 = vmatpush3.bf16.msra.mxu1 %v1062_v30  ;;  %v1382_v30 = vsel %vm535_vm5, %v1377_v29, 0 }
 0x874   : > { %1896 = vmatprep.subr.bf16.mxu1 %v2231_v0 }
 0x92a   : > { %v889_v62 = vpop.f32.mrf.mxu1 }
 0x92b   : > { %v895_v63 = vpack.c.bf16 %v889_v62, %v889_v62 }
 0x92c   : > { %v1864_v1 = vpop.f32.mrf.mxu1 }
 0x92d   : > { %1869 = vmatmul.mubr.msk.bf16.vlgmr.msra.gmra.mxu0 %vm308_vm2, %v895_v63 }
 0x92e   : > { %v892_v2 = vpop.f32.mrf.mxu1  ;;  %1880 = vmatprep.mubr.msk.bf16.mxu0 %vm2232_vm0, %v2231_v0 }
 0x930   : > { %v1865_v3 = vpop.f32.mrf.mxu1 }
 0x932   : > { %v989_v4 = vpop.f32.mrf.mxu1 }
 0x933   : > { %v995_v6 = vsel %vm355_vm3, %v989_v4, -inf }
 0x934   : > { %996 = vmax.xlane.f32.xlu1 %v995_v6  ;;  %v1876_v7 = vpop.f32.mrf.mxu1 }
 0x936   : > { %v992_v8 = vpop.f32.mrf.mxu1 }
 0x938   : > { %v1877_v9 = vpop.f32.mrf.mxu1 }
 0x945   : > { %1107 = vrot.lane.b32.xlu1 %v2423_v5, %s2246_s10 }
 0x949   : > { %1105 = vrot.lane.b32.xlu1 %v2423_v5, %s2247_s11 }
 0x9bd   : > { %v997_v10 = vpop.xlane.xlu1 %996 }
 0x9be   : > { %v998_v11 = vsub.f32 %v989_v4, %v997_v10 }
 0x9c0   : > { %v999_v12 = vmul.f32 1.442695, %v998_v11 }
 0x9c1   : > { %v1108_v25 = vpop.permute.xlu1 %1107 }
 0x9c2   : > { %2058 = vpow2.f32 %v999_v12  ;;  %v1113_v27 = vsel %vm308_vm2, %v1108_v25, 0 }
 0x9c5   : > { %v1106_v28 = vpop.permute.xlu1 %1105 }
 0x9cf   : > { %v2059_v13 = vpop.eup %2058 }
 0x9d0   : > { %v1001_v14 = vsel %vm355_vm3, %v2059_v13, 0.0 }
 0x9d1   : > { %1002 = vadd.xlane.f32.xlu0 %v1001_v14 }
 0x9e7   : > { %1007 = vrot.lane.b32.xlu0 %v2423_v5, %s2248_s12  ;;  %s2590_s12 = scalar_lea.hbm %s2638_s4, %s1738_s26 }
 0x9ed   : > { %v938_v15 = vpop.f32.mrf.mxu0 }
 0x9ee   : > { %v944_v16 = vadd.f32 %v938_v15, %v784_v49 }
 0x9ef   : > { %v1870_v17 = vpop.f32.mrf.mxu0 }
 0x9f1   : > { %v941_v18 = vpop.f32.mrf.mxu0 }
 0x9f3   : > { %v1871_v19 = vpop.f32.mrf.mxu0 }
 0xa5a   : > { %v1003_v20 = vpop.xlane.xlu0 %1002 }
 0xa5b   : > { %2060 = vrcp.f32 %v1003_v20 }
 0xa5e   : > { %v1008_v21 = vpop.permute.xlu0 %1007 }
 0xa5f   : > { %v1013_v22 = vsel %vm373_vm4, %v1008_v21, 0 }
 0xa60   : > { %1879 = vmatpush3.bf16.msra.mxu0 %v1013_v22 }
 0xa61   : > { %1890 = vmatprep.subr.bf16.mxu0 %v2231_v0 }
 0xa68   : > { %v2061_v23 = vpop.eup %2060 }
 0xa69   : > { %v1005_v24 = vmul.f32 %v2061_v23, %v2059_v13 }
 0xa6b   : > { %v1006_v26 = vpack.c.bf16 %v1005_v24, %v1005_v24 }
 0xa6d   : > { %1881 = vmatmul.mubr.msk.bf16.vlgmr.msra.gmra.mxu0 %vm355_vm3, %v1006_v26 }
 0xa6e   : > { %1891 = vmatpush3.bf16.xpose.msra.mxu0 %v1113_v27  ;;  %1892 = vmatprep.mubr.msk.bf16.mxu0 %vm2232_vm0, %v2231_v0 }
 0xa6f   : > { %1902 = vmatprep.subr.bf16.mxu0 %v2231_v0 }
 0xa75   : > { %1893 = vmatmul.mubr.msk.bf16.vlgmr.msra.gmra.mxu0 %vm308_vm2, %v1106_v28 }
 0xa76   : > { %1904 = vmatprep.mubr.msk.bf16.mxu0 %vm2232_vm0, %v2231_v0  ;;  %1903 = vmatpush3.bf16.msra.mxu0 %v1222_v61 }
 0xa77   : > { %1914 = vmatprep.subr.bf16.mxu0 %v2231_v0 }
 0xb2d   : > { %v1049_v31 = vpop.f32.mrf.mxu0 }
 0xb2e   : > { %v1055_v32 = vpack.c.bf16 %v1049_v31, %v1049_v31 }
 0xb2f   : > { %v1882_v33 = vpop.f32.mrf.mxu0 }
 0xb30   : > { %1887 = vmatmul.mubr.msk.bf16.vlgmr.msra.gmra.mxu1 %vm308_vm2, %v1055_v32 }
 0xb31   : > { %v1052_v34 = vpop.f32.mrf.mxu0  ;;  %1898 = vmatprep.mubr.msk.bf16.mxu1 %vm2232_vm0, %v2231_v0 }
 0xb33   : > { %v1883_v35 = vpop.f32.mrf.mxu0 }
 0xb35   : > { %v1149_v36 = vpop.f32.mrf.mxu0 }
 0xb36   : > { %v1155_v37 = vsel %vm355_vm3, %v1149_v36, -inf }
 0xb37   : > { %1156 = vmax.xlane.f32.xlu0 %v1155_v37  ;;  %v1894_v38 = vpop.f32.mrf.mxu0 }
 0xb39   : > { %v1152_v39 = vpop.f32.mrf.mxu0 }
 0xb3b   : > { %v1895_v40 = vpop.f32.mrf.mxu0 }
 0xb4d   : > { %1167 = vrot.lane.b32.xlu0 %v2423_v5, %s2249_s21  ;;  %s2154_s21 = scalar_lea.vmem %s2592_s30, 128 }
 0xb4e   : > { %p2155_p7 = scmp.ne.s32.totalorder %s2592_s30, %s2154_s21 }
 0xb50   : > { %p2156_p1 = pnand %p2155_p7, %p2654_p11 }
 0xb51   : > { %1265 = vrot.lane.b32.xlu0 %v2423_v5, %s2250_s23  ;;  %s2256_s23 = smov [#allocation8]  }
 0xb52   : > { %p2157_p2 = pneg %p2156_p1 }
 0xbc0   : > { %v1157_v41 = vpop.xlane.xlu0 %1156 }
 0xbc1   : > { %v1158_v42 = vsub.f32 %v1149_v36, %v1157_v41 }
 0xbc3   : > { %v1159_v43 = vmul.f32 1.442695, %v1158_v42 }
 0xbc4   : > { %v1168_v44 = vpop.permute.xlu0 %1167 }
 0xbc5   : > { %2062 = vpow2.f32 %v1159_v43  ;;  %v1173_v45 = vsel %vm373_vm4, %v1168_v44, 0 }
 0xbc6   : > { %1897 = vmatpush3.bf16.msra.mxu1 %v1173_v45 }
 0xbc7   : > { %1908 = vmatprep.subr.bf16.mxu1 %v2231_v0 }
 0xbc8   : > { %v1266_v59 = vpop.permute.xlu0 %1265 }
 0xbd2   : > { %v2063_v46 = vpop.eup %2062 }
 0xbd3   : > { %v1161_v47 = vsel %vm355_vm3, %v2063_v46, 0.0 }
 0xbd4   : > { %1162 = vadd.xlane.f32.xlu1 %v1161_v47 }
 0xbe5   : > { %1267 = vrot.lane.b32.xlu1 %v2423_v5, %s2251_s5  ;;  %s2158_s5 = sshll.u32 %s2256_s23, 4  ;;  %s2159_s5 = int_to_ptr.vmem [resolvable:$false] %s2158_s5 }
 0xbe6   : > { %p2161_p6 = scmp.lt.s32.totalorder %s2592_s30, %s2159_s5 }
 0xbf0   : > { %v1098_v48 = vpop.f32.mrf.mxu1 }
 0xbf1   : > { %v1104_v49 = vadd.f32 %v1098_v48, %v944_v16  ;;  %v1537_v48 = vld [vmem:[#allocation7 + $0xe] sm:$0x3] }
 0xbf2   : > { %v1888_v50 = vpop.f32.mrf.mxu1 }
 0xbf3   : > { %v1542_v50 = vsel %vm535_vm5, %v1537_v48, 0 }
 0xbf4   : > { %v1101_v51 = vpop.f32.mrf.mxu1 }
 0xbf6   : > { %v1889_v52 = vpop.f32.mrf.mxu1 }
 0xc5d   : > { %v1163_v53 = vpop.xlane.xlu1 %1162 }
 0xc5e   : > { %2064 = vrcp.f32 %v1163_v53 }
 0xc61   : > { %v1268_v56 = vpop.permute.xlu1 %1267 }
 0xc62   : > { %v1273_v58 = vsel %vm308_vm2, %v1268_v56, 0 }
 0xc6b   : > { %v2065_v54 = vpop.eup %2064 }
 0xc6c   : > { %v1165_v55 = vmul.f32 %v2065_v54, %v2063_v46 }
 0xc6e   : > { %v1166_v57 = vpack.c.bf16 %v1165_v55, %v1165_v55 }
 0xc70   : > { %1899 = vmatmul.mubr.msk.bf16.vlgmr.msra.gmra.mxu1 %vm355_vm3, %v1166_v57 }
 0xc71   : > { %1909 = vmatpush3.bf16.xpose.msra.mxu1 %v1273_v58  ;;  %1910 = vmatprep.mubr.msk.bf16.mxu1 %vm2232_vm0, %v2231_v0 }
 0xc72   : > { %1920 = vmatprep.subr.bf16.mxu1 %v2231_v0 }
 0xc78   : > { %1911 = vmatmul.mubr.msk.bf16.vlgmr.msra.gmra.mxu1 %vm308_vm2, %v1266_v59 }
 0xc79   : > { %1922 = vmatprep.mubr.msk.bf16.mxu1 %vm2232_vm0, %v2231_v0  ;;  %1921 = vmatpush3.bf16.msra.mxu1 %v1382_v30 }
 0xc7a   : > { %1932 = vmatprep.subr.bf16.mxu1 %v2231_v0 }
 0xd30   : > { %v1209_v62 = vpop.f32.mrf.mxu1 }
 0xd31   : > { %v1215_v63 = vpack.c.bf16 %v1209_v62, %v1209_v62 }
 0xd32   : > { %v1900_v1 = vpop.f32.mrf.mxu1 }
 0xd33   : > { %1905 = vmatmul.mubr.msk.bf16.vlgmr.msra.gmra.mxu0 %vm308_vm2, %v1215_v63  ;;  %v1736_v63 = vld [vmem:[%s2637_s3] ss:$0 sm:$0xff] }
 0xd34   : > { %v1212_v2 = vpop.f32.mrf.mxu1  ;;  %1916 = vmatprep.mubr.msk.bf16.mxu0 %vm2232_vm0, %v2231_v0 }
 0xd36   : > { %v1901_v3 = vpop.f32.mrf.mxu1 }
 0xd38   : > { %v1309_v4 = vpop.f32.mrf.mxu1 }
 0xd39   : > { %v1315_v6 = vsel %vm355_vm3, %v1309_v4, -inf }
 0xd3a   : > { %1316 = vmax.xlane.f32.xlu1 %v1315_v6  ;;  %v1912_v7 = vpop.f32.mrf.mxu1 }
 0xd3c   : > { %v1312_v8 = vpop.f32.mrf.mxu1 }
 0xd3e   : > { %v1913_v9 = vpop.f32.mrf.mxu1 }
 0xd4b   : > { %1427 = vrot.lane.b32.xlu1 %v2423_v5, %s2252_s7  ;;  %s2160_s7 = scalar_lea.vmem %s2159_s5, 256 }
 0xd4c   : > { %p2162_p12 = scmp.lt.s32.totalorder %s2160_s7, %s2154_s21 }
 0xd4e   : > { %p2163_p3 = por %p2162_p12, %p2161_p6 }
 0xd4f   : > { %1425 = vrot.lane.b32.xlu1 %v2423_v5, %s2253_s8 }
 0xd50   : > { %p2164_p9 = pnand %p2163_p3, %p2157_p2 }
 0xdc3   : > { %v1317_v10 = vpop.xlane.xlu1 %1316 }
 0xdc4   : > { %v1318_v11 = vsub.f32 %v1309_v4, %v1317_v10 }
 0xdc6   : > { %v1319_v12 = vmul.f32 1.442695, %v1318_v11 }
 0xdc7   : > { %v1428_v25 = vpop.permute.xlu1 %1427 }
 0xdc8   : > { %2066 = vpow2.f32 %v1319_v12  ;;  %v1433_v27 = vsel %vm308_vm2, %v1428_v25, 0 }
 0xdcb   : > { %v1426_v28 = vpop.permute.xlu1 %1425 }
 0xdd5   : > { %v2067_v13 = vpop.eup %2066 }
 0xdd6   : > { %v1321_v14 = vsel %vm355_vm3, %v2067_v13, 0.0 }
 0xdd7   : > { %1322 = vadd.xlane.f32.xlu0 %v1321_v14 }
 0xded   : > { %1327 = vrot.lane.b32.xlu0 %v2423_v5, %s2254_s9 }
 0xdf3   : > { %v1258_v15 = vpop.f32.mrf.mxu0 }
 0xdf4   : > { %v1264_v16 = vadd.f32 %v1258_v15, %v1104_v49 }
 0xdf5   : > { %v1906_v17 = vpop.f32.mrf.mxu0 }
 0xdf7   : > { %v1261_v18 = vpop.f32.mrf.mxu0 }
 0xdf9   : > { %v1907_v19 = vpop.f32.mrf.mxu0 }
 0xe60   : > { %v1323_v20 = vpop.xlane.xlu0 %1322 }
 0xe61   : > { %2068 = vrcp.f32 %v1323_v20 }
 0xe64   : > { %v1328_v21 = vpop.permute.xlu0 %1327 }
 0xe65   : > { %v1333_v22 = vsel %vm373_vm4, %v1328_v21, 0 }
 0xe66   : > { %1915 = vmatpush3.bf16.msra.mxu0 %v1333_v22 }
 0xe67   : > { %1926 = vmatprep.subr.bf16.mxu0 %v2231_v0 }
 0xe6e   : > { %v2069_v23 = vpop.eup %2068 }
 0xe6f   : > { %v1325_v24 = vmul.f32 %v2069_v23, %v2067_v13 }
 0xe71   : > { %v1326_v26 = vpack.c.bf16 %v1325_v24, %v1325_v24 }
 0xe73   : > { %1917 = vmatmul.mubr.msk.bf16.vlgmr.msra.gmra.mxu0 %vm355_vm3, %v1326_v26 }
 0xe74   : > { %1927 = vmatpush3.bf16.xpose.msra.mxu0 %v1433_v27  ;;  %1928 = vmatprep.mubr.msk.bf16.mxu0 %vm2232_vm0, %v2231_v0 }
 0xe75   : > { %1938 = vmatprep.subr.bf16.mxu0 %v2231_v0 }
 0xe7b   : > { %1929 = vmatmul.mubr.msk.bf16.vlgmr.msra.gmra.mxu0 %vm308_vm2, %v1426_v28 }
 0xe7c   : > { %1940 = vmatprep.mubr.msk.bf16.mxu0 %vm2232_vm0, %v2231_v0  ;;  %1939 = vmatpush3.bf16.msra.mxu0 %v1542_v50 }
 0xf33   : > { %v1369_v31 = vpop.f32.mrf.mxu0 }
 0xf34   : > { %v1375_v32 = vpack.c.bf16 %v1369_v31, %v1369_v31 }
 0xf35   : > { %v1918_v33 = vpop.f32.mrf.mxu0 }
 0xf36   : > { %1923 = vmatmul.mubr.msk.bf16.vlgmr.msra.gmra.mxu1 %vm308_vm2, %v1375_v32 }
 0xf37   : > { %v1372_v34 = vpop.f32.mrf.mxu0  ;;  %1934 = vmatprep.mubr.msk.bf16.mxu1 %vm2232_vm0, %v2231_v0 }
 0xf39   : > { %v1919_v35 = vpop.f32.mrf.mxu0 }
 0xf3b   : > { %v1469_v36 = vpop.f32.mrf.mxu0 }
 0xf3c   : > { %v1475_v37 = vsel %vm355_vm3, %v1469_v36, -inf }
 0xf3d   : > { %1476 = vmax.xlane.f32.xlu0 %v1475_v37  ;;  %v1930_v38 = vpop.f32.mrf.mxu0 }
 0xf3f   : > { %v1472_v39 = vpop.f32.mrf.mxu0 }
 0xf41   : > { %v1931_v40 = vpop.f32.mrf.mxu0 }
 0xf53   : > { %1487 = vrot.lane.b32.xlu0 %v2423_v5, %s2255_s14 }
 0xfc6   : > { %v1477_v41 = vpop.xlane.xlu0 %1476 }
 0xfc7   : > { %v1478_v42 = vsub.f32 %v1469_v36, %v1477_v41 }
 0xfc9   : > { %v1479_v43 = vmul.f32 1.442695, %v1478_v42 }
 0xfca   : > { %v1488_v44 = vpop.permute.xlu0 %1487 }
 0xfcb   : > { %2070 = vpow2.f32 %v1479_v43  ;;  %v1493_v45 = vsel %vm373_vm4, %v1488_v44, 0 }
 0xfcc   : > { %1933 = vmatpush3.bf16.msra.mxu1 %v1493_v45 }
 0xfd8   : > { %v2071_v0 = vpop.eup %2070 }
 0xfd9   : > { %v1481_v46 = vsel %vm355_vm3, %v2071_v0, 0.0 }
 0xfda   : > { %1482 = vadd.xlane.f32.xlu1 %v1481_v46 }
 0xff6   : > { %v1418_v47 = vpop.f32.mrf.mxu1 }
 0xff7   : > { %v1424_v49 = vadd.f32 %v1418_v47, %v1264_v16 }
 0xff8   : > { %v1924_v51 = vpop.f32.mrf.mxu1 }
 0xffa   : > { %v1421_v5 = vpop.f32.mrf.mxu1 }
 0xffc   : > { %v1925_v52 = vpop.f32.mrf.mxu1 }
0x1063   : > { %v1483_v53 = vpop.xlane.xlu1 %1482 }
0x1064   : > { %2072 = vrcp.f32 %v1483_v53 }
0x1071   : > { %v2073_v54 = vpop.eup %2072 }
0x1072   : > { %v1485_v55 = vmul.f32 %v2073_v54, %v2071_v0 }
0x1074   : > { %v1486_v56 = vpack.c.bf16 %v1485_v55, %v1485_v55 }
0x1076   : > { %1935 = vmatmul.mubr.msk.bf16.vlgmr.msra.gmra.mxu1 %vm355_vm3, %v1486_v56 }
0x1136   : > { %v1529_v57 = vpop.f32.mrf.mxu1 }
0x1137   : > { %v1535_v58 = vpack.c.bf16 %v1529_v57, %v1529_v57 }
0x1138   : > { %v1936_v59 = vpop.f32.mrf.mxu1 }
0x1139   : > { %1941 = vmatmul.mubr.msk.bf16.vlgmr.msra.gmra.mxu0 %vm308_vm2, %v1535_v58 }
0x113a   : > { %v1532_v60 = vpop.f32.mrf.mxu1 }
0x113c   : > { %v1937_v61 = vpop.f32.mrf.mxu1 }
0x11f9   : > { %v1578_v62 = vpop.f32.mrf.mxu0 }
0x11fa   : > { %v1584_v1 = vadd.f32 %v1578_v62, %v1424_v49 }
0x11fb   : > { %v1942_v2 = vpop.f32.mrf.mxu0 }
0x11fc   : > { %v1592_v3 = vadd.f32 %v1736_v63, %v1584_v1 }
0x11fd   : > { %v1581_v4 = vpop.f32.mrf.mxu0 }
0x11fe   : > { %1593 = vst.msk [vmem:[%s241_s29] sm:$0xff] %vm260_vm1, %v1592_v3 }
0x11ff   : > { %v1943_v6 = vpop.f32.mrf.mxu0 }
0x1200   : > { %2167 = shalt.err (!%p2164_p9)
}
0x1201   : > { %s2168_s8 = scalar_lea.hbm %s2590_s12, 128  ;;  %s2172_s14 = scalar_lea.hbm %s2638_s4, 256 }
0x1202   : > { %p2169_p13 = scmp.ne.s32.totalorder %s2590_s12, %s2168_s8  ;;  %p2173_p0 = scmp.lt.s32.totalorder %s2590_s12, %s2638_s4 }
0x1203   : > { %p2174_p4 = scmp.lt.s32.totalorder %s2172_s14, %s2168_s8 }
0x1204   : > { %p2170_p5 = pnand %p2169_p13, %p2654_p11 }
0x1205   : > { %p2175_p8 = por %p2174_p4, %p2173_p0 }
0x1206   : > { %p2171_p10 = pneg %p2170_p5 }
0x1208   : > { %p2176_p7 = pnand %p2175_p8, %p2171_p10 }
0x120a   : > { %2179 = shalt.err (!%p2176_p7)
}
0x120b   : > { %1954 = dma.vmem_to_hbm [thread:$0]  (%p2654_p11), %s2592_s30, 128, %s2590_s12, %s1595_s19  }
0x120c PF: > { %s1620_s28 = sand.u32 1, %s2210_s15   ;;  %p2655_p1 = scmp.ne.s32.totalorder %s2644_s22, 0 }
0x120d   : > { %p2656_p2 = scmp.ge.s32.totalorder %s2222_s18, 2  ;;  %s1621_s26 = scalar_lea.sflag [#allocation4], %s1620_s28 }
0x120f   : > { %p1968_p6 = pnand %p2656_p2, %p2655_p1 }
0x1211   : > { %p1969_p12 = pneg %p1968_p6 }
0x1213   : > { %2205 = dma.done.wait (%p1969_p12), %s1621_s26, 128  }
0x1214   : > { %2207 = vsyncadd (%p1969_p12), %s1621_s26, 4294967168  ;;  %p18_p3 = scmp.ge.s32.totalorder %s2354_s13, 4   ;;  %s2657_s15 = smov %s2214_s16 }
0x1215   : > { %s2658_s16 = smov %s2218_s17  ;;  %s2659_s17 = smov %s2363_s24 }
0x1216   : > { %s2660_s18 = smov %s2354_s13  ;;  %20 = sbr.rel (!%p18_p3) target bundleno = 6 (0x6), region = 96 }
0x121b   :  { %1626 = vsyncpa [#allocation3], 1 }
0x121c   :  { %1628 = vsyncpa [#allocation3 + $0x1], 1 }
0x121d   :  { %1629 = vsyncpa [#allocation6], 1 }
0x121e   :  { %1630 = vsyncpa [#allocation4], 1 }
0x121f   :  { %1632 = vsyncpa [#allocation4 + $0x1], 1 }

</bundles_post_ra>
